<compile_context>
chip_gen: v6e
topology: v6e:2x2x1
jax: 0.10.0
libtpu: 0.0.40
codegen_flags: <defaults>
</compile_context>

<pallas_src>
import jax
import jax.numpy as jnp
from jax import lax
from jax.experimental import pallas as pl
from jax.experimental.pallas import tpu as pltpu

EPS = 1e-5  # BatchNorm1d default eps


# ---------------------------------------------------------------------------
# Fused Pallas kernel: full autoencoder forward for one batch element.
# ---------------------------------------------------------------------------
def _fused_forward_kernel(x_ref, *refs):
    """refs = [w0, scale0, shift0, ..., w15, scale15, shift15, o_ref].

    x_ref : (1, L, C_in)      f32 input block (one batch element)
    w_i   : (3, Cin_i, Cout_i) bf16 conv weights (tap-major)
    scale : (1, Cout_i)        f32  gamma / sqrt(running_var + eps)
    shift : (1, Cout_i)        f32  beta - scale*mean + scale*conv_bias
    o_ref : (1, L, C_out)      f32 output block
    """
    o_ref = refs[-1]
    params = refs[:-1]
    num_layers = len(params) // 3
    n_enc = num_layers // 2
    L = x_ref.shape[1]

    # Constant tap-gather matrix (built from iota, lives in vregs, shared by
    # all layers):  rows [0, L)  pick h[l-1] (zero row at l = 0),
    #               rows [L, 2L) pick h[l+1] (zero row at l = L-1).
    r = lax.broadcasted_iota(jnp.int32, (2 * L, L), 0)
    c = lax.broadcasted_iota(jnp.int32, (2 * L, L), 1)
    gather = jnp.where(
        ((r < L) & (c == r - 1)) | ((r >= L) & (c == r - L + 1)),
        1.0, 0.0).astype(jnp.bfloat16)

    def conv_bn(h, layer, relu):
        """Conv1d(k=3, stride=1, pad=1) + folded BatchNorm (+ optional ReLU)."""
        w_ref = params[3 * layer]
        scale = params[3 * layer + 1][...]
        shift = params[3 * layer + 2][...]
        hb = h.astype(jnp.bfloat16)                       # bf16 MXU operand
        # Zero-padded shifted taps via one exact 0/1 matmul (MXU, no HBM copies).
        taps = jnp.dot(gather, hb,
                       preferred_element_type=jnp.float32).astype(jnp.bfloat16)
        acc = (jnp.dot(taps[:L], w_ref[0], preferred_element_type=jnp.float32)
               + jnp.dot(hb, w_ref[1], preferred_element_type=jnp.float32)
               + jnp.dot(taps[L:], w_ref[2], preferred_element_type=jnp.float32))
        y = acc * scale + shift                           # f32 epilogue
        return jnp.maximum(y, 0.0) if relu else y

    # ---- encoder: 4 conv blocks (Conv+BN+ReLU+Dropout[=id]+Conv+BN) ----
    h = x_ref[0].astype(jnp.float32)                      # (L, C_in)
    for layer in range(n_enc):
        h = conv_bn(h, layer, relu=(layer % 2 == 0))

    # ---- bottleneck: torch.sum(x, dim=2) fused in-kernel, then broadcast ----
    latent = jnp.sum(h, axis=0, keepdims=True)            # (1, C4)
    d = jnp.broadcast_to(latent, (L, latent.shape[-1]))   # repeat over seqlen

    # ---- decoder: 4 conv blocks ----
    for layer in range(n_enc, num_layers):
        d = conv_bn(d, layer, relu=(layer % 2 == 0))

    o_ref[0] = d.astype(o_ref.dtype)                      # single dense store


# ---------------------------------------------------------------------------
# Wrapper: one pallas_call for the whole forward, grid over batch.
# ---------------------------------------------------------------------------
def conv_autoencoder_forward(x, layers):
    """x: (N, L, C_in) f32; layers: 16 tuples (w_bf16, scale_f32, shift_f32)."""
    N, L, c_in = x.shape
    c_out = layers[-1][0].shape[-1]

    flat_params = []
    in_specs = [pl.BlockSpec((1, L, c_in), lambda n: (n, 0, 0))]
    for (w, scale, shift) in layers:
        flat_params += [w, scale, shift]
        in_specs += [
            pl.BlockSpec(w.shape, lambda n: (0, 0, 0)),       # weights resident
            pl.BlockSpec(scale.shape, lambda n: (0, 0)),
            pl.BlockSpec(shift.shape, lambda n: (0, 0)),
        ]
    out_spec = pl.BlockSpec((1, L, c_out), lambda n: (n, 0, 0))

    return pl.pallas_call(
        _fused_forward_kernel,
        out_shape=jax.ShapeDtypeStruct((N, L, c_out), x.dtype),
        grid_spec=pltpu.PrefetchScalarGridSpec(
            num_scalar_prefetch=0,
            grid=(N,),                                    # batch-parallel grid
            in_specs=in_specs,
            out_specs=out_spec,
        ),
        compiler_params=pltpu.CompilerParams(
            dimension_semantics=("parallel",),            # both TCs on v7x
        ),
    )(x, *flat_params)


# ---------------------------------------------------------------------------
# Deterministic parameter init (folds Conv bias + BatchNorm into scale/shift).
# ---------------------------------------------------------------------------
def _init_conv_bn(key, cin, cout):
    kw, kb, kg, kbt, km, kv = jax.random.split(key, 6)
    w = 0.1 * jax.random.normal(kw, (3, cin, cout), jnp.float32)   # (tap, in, out)
    b = 0.1 * jax.random.normal(kb, (cout,), jnp.float32)
    gamma = 1.0 + 0.1 * jax.random.normal(kg, (cout,), jnp.float32)
    beta = 0.1 * jax.random.normal(kbt, (cout,), jnp.float32)
    running_mean = 0.1 * jax.random.normal(km, (cout,), jnp.float32)
    running_var = jax.random.uniform(kv, (cout,), jnp.float32, 0.5, 1.5)
    scale = gamma / jnp.sqrt(running_var + EPS)
    shift = beta - scale * running_mean + scale * b
    return (w.astype(jnp.bfloat16),                # bf16 MXU operands
            scale.reshape(1, cout), shift.reshape(1, cout))


def init_conv_block(key, cin, cout):
    k1, k2 = jax.random.split(key)
    return [_init_conv_bn(k1, cin, cout), _init_conv_bn(k2, cout, cout)]


# ---------------------------------------------------------------------------
# Pure-JAX reference (same bf16-input / f32-accumulate numerics as the kernel).
# ---------------------------------------------------------------------------
def _ref_conv_bn(x, w_bf16, scale, shift, relu):
    xb = x.astype(jnp.bfloat16).astype(jnp.float32)
    wb = w_bf16.astype(jnp.float32)
    y = lax.conv_general_dilated(
        xb, wb, window_strides=(1,), padding=((1, 1),),
        dimension_numbers=('NWC', 'WIO', 'NWC'),
        precision=lax.Precision.HIGHEST)
    y = y * scale + shift
    return jnp.maximum(y, 0.0) if relu else y


def ref_forward(x, layers):
    n_enc = len(layers) // 2
    h = x
    for i in range(n_enc):
        w, s, sh = layers[i]
        h = _ref_conv_bn(h, w, s, sh, relu=(i % 2 == 0))
    h = jnp.sum(h, axis=1)                                          # (N, C4)
    d = jnp.broadcast_to(h[:, None, :], (x.shape[0], x.shape[1], h.shape[-1]))
    for i in range(n_enc, len(layers)):
        w, s, sh = layers[i]
        d = _ref_conv_bn(d, w, s, sh, relu=(i % 2 == 0))
    return d


# ---------------------------------------------------------------------------
if __name__ == "__main__":
    key = jax.random.PRNGKey(0)
    n_channel, c1, c2, c3, c4 = 4, 8, 16, 32, 64
    N, L = 2, 16                     # batch, seqlen (x is (N, seqlen, n_channel))

    k_x, k_p = jax.random.split(key)
    x = jax.random.normal(k_x, (N, L, n_channel), jnp.float32)

    block_dims = [(n_channel, c1), (c1, c2), (c2, c3), (c3, c4),     # encoder
                  (c4, c3), (c3, c2), (c2, c1), (c1, n_channel)]     # decoder
    keys = jax.random.split(k_p, len(block_dims))
    layers = []
    for i, (ci, co) in enumerate(block_dims):
        layers += init_conv_block(keys[i], ci, co)                   # 16 layers

    out = jax.block_until_ready(conv_autoencoder_forward(x, layers))
    ref = jax.block_until_ready(ref_forward(x, layers))

    assert out.shape == (N, L, n_channel), out.shape
    assert jnp.allclose(out, ref, rtol=1e-3, atol=1e-3), float(
        jnp.max(jnp.abs(out - ref)))
    print("KERNEL_OK")
</pallas_src>

<mosaic_0001>
module attributes {stable_mosaic.version = 11 : i64} {
  func.func @_fused_forward_kernel(%arg0: i32, %arg1: memref<1x16x4xf32, #tpu.memory_space<vmem>>, %arg2: memref<3x4x8xbf16, #tpu.memory_space<vmem>>, %arg3: memref<1x8xf32, #tpu.memory_space<vmem>>, %arg4: memref<1x8xf32, #tpu.memory_space<vmem>>, %arg5: memref<3x8x8xbf16, #tpu.memory_space<vmem>>, %arg6: memref<1x8xf32, #tpu.memory_space<vmem>>, %arg7: memref<1x8xf32, #tpu.memory_space<vmem>>, %arg8: memref<3x8x16xbf16, #tpu.memory_space<vmem>>, %arg9: memref<1x16xf32, #tpu.memory_space<vmem>>, %arg10: memref<1x16xf32, #tpu.memory_space<vmem>>, %arg11: memref<3x16x16xbf16, #tpu.memory_space<vmem>>, %arg12: memref<1x16xf32, #tpu.memory_space<vmem>>, %arg13: memref<1x16xf32, #tpu.memory_space<vmem>>, %arg14: memref<3x16x32xbf16, #tpu.memory_space<vmem>>, %arg15: memref<1x32xf32, #tpu.memory_space<vmem>>, %arg16: memref<1x32xf32, #tpu.memory_space<vmem>>, %arg17: memref<3x32x32xbf16, #tpu.memory_space<vmem>>, %arg18: memref<1x32xf32, #tpu.memory_space<vmem>>, %arg19: memref<1x32xf32, #tpu.memory_space<vmem>>, %arg20: memref<3x32x64xbf16, #tpu.memory_space<vmem>>, %arg21: memref<1x64xf32, #tpu.memory_space<vmem>>, %arg22: memref<1x64xf32, #tpu.memory_space<vmem>>, %arg23: memref<3x64x64xbf16, #tpu.memory_space<vmem>>, %arg24: memref<1x64xf32, #tpu.memory_space<vmem>>, %arg25: memref<1x64xf32, #tpu.memory_space<vmem>>, %arg26: memref<3x64x32xbf16, #tpu.memory_space<vmem>>, %arg27: memref<1x32xf32, #tpu.memory_space<vmem>>, %arg28: memref<1x32xf32, #tpu.memory_space<vmem>>, %arg29: memref<3x32x32xbf16, #tpu.memory_space<vmem>>, %arg30: memref<1x32xf32, #tpu.memory_space<vmem>>, %arg31: memref<1x32xf32, #tpu.memory_space<vmem>>, %arg32: memref<3x32x16xbf16, #tpu.memory_space<vmem>>, %arg33: memref<1x16xf32, #tpu.memory_space<vmem>>, %arg34: memref<1x16xf32, #tpu.memory_space<vmem>>, %arg35: memref<3x16x16xbf16, #tpu.memory_space<vmem>>, %arg36: memref<1x16xf32, #tpu.memory_space<vmem>>, %arg37: memref<1x16xf32, #tpu.memory_space<vmem>>, %arg38: memref<3x16x8xbf16, #tpu.memory_space<vmem>>, %arg39: memref<1x8xf32, #tpu.memory_space<vmem>>, %arg40: memref<1x8xf32, #tpu.memory_space<vmem>>, %arg41: memref<3x8x8xbf16, #tpu.memory_space<vmem>>, %arg42: memref<1x8xf32, #tpu.memory_space<vmem>>, %arg43: memref<1x8xf32, #tpu.memory_space<vmem>>, %arg44: memref<3x8x4xbf16, #tpu.memory_space<vmem>>, %arg45: memref<1x4xf32, #tpu.memory_space<vmem>>, %arg46: memref<1x4xf32, #tpu.memory_space<vmem>>, %arg47: memref<3x4x4xbf16, #tpu.memory_space<vmem>>, %arg48: memref<1x4xf32, #tpu.memory_space<vmem>>, %arg49: memref<1x4xf32, #tpu.memory_space<vmem>>, %arg50: memref<1x16x4xf32, #tpu.memory_space<vmem>>) attributes {dimension_semantics = [#tpu.dimension_semantics<parallel>], iteration_bounds = array<i64: 2>, scalar_prefetch = 0 : i64, scratch_operands = 0 : i64, tpu.core_type = #tpu.core_type<tc>, window_params = [{transform_indices = @transform_0, window_bounds = array<i64: 1, 16, 4>}, {pipeline_mode = #tpu.pipeline_mode<synchronous>, transform_indices = @transform_1, window_bounds = array<i64: 3, 4, 8>}, {pipeline_mode = #tpu.pipeline_mode<synchronous>, transform_indices = @transform_2, window_bounds = array<i64: 1, 8>}, {pipeline_mode = #tpu.pipeline_mode<synchronous>, transform_indices = @transform_3, window_bounds = array<i64: 1, 8>}, {pipeline_mode = #tpu.pipeline_mode<synchronous>, transform_indices = @transform_4, window_bounds = array<i64: 3, 8, 8>}, {pipeline_mode = #tpu.pipeline_mode<synchronous>, transform_indices = @transform_5, window_bounds = array<i64: 1, 8>}, {pipeline_mode = #tpu.pipeline_mode<synchronous>, transform_indices = @transform_6, window_bounds = array<i64: 1, 8>}, {pipeline_mode = #tpu.pipeline_mode<synchronous>, transform_indices = @transform_7, window_bounds = array<i64: 3, 8, 16>}, {pipeline_mode = #tpu.pipeline_mode<synchronous>, transform_indices = @transform_8, window_bounds = array<i64: 1, 16>}, {pipeline_mode = #tpu.pipeline_mode<synchronous>, transform_indices = @transform_9, window_bounds = array<i64: 1, 16>}, {pipeline_mode = #tpu.pipeline_mode<synchronous>, transform_indices = @transform_10, window_bounds = array<i64: 3, 16, 16>}, {pipeline_mode = #tpu.pipeline_mode<synchronous>, transform_indices = @transform_11, window_bounds = array<i64: 1, 16>}, {pipeline_mode = #tpu.pipeline_mode<synchronous>, transform_indices = @transform_12, window_bounds = array<i64: 1, 16>}, {pipeline_mode = #tpu.pipeline_mode<synchronous>, transform_indices = @transform_13, window_bounds = array<i64: 3, 16, 32>}, {pipeline_mode = #tpu.pipeline_mode<synchronous>, transform_indices = @transform_14, window_bounds = array<i64: 1, 32>}, {pipeline_mode = #tpu.pipeline_mode<synchronous>, transform_indices = @transform_15, window_bounds = array<i64: 1, 32>}, {pipeline_mode = #tpu.pipeline_mode<synchronous>, transform_indices = @transform_16, window_bounds = array<i64: 3, 32, 32>}, {pipeline_mode = #tpu.pipeline_mode<synchronous>, transform_indices = @transform_17, window_bounds = array<i64: 1, 32>}, {pipeline_mode = #tpu.pipeline_mode<synchronous>, transform_indices = @transform_18, window_bounds = array<i64: 1, 32>}, {pipeline_mode = #tpu.pipeline_mode<synchronous>, transform_indices = @transform_19, window_bounds = array<i64: 3, 32, 64>}, {pipeline_mode = #tpu.pipeline_mode<synchronous>, transform_indices = @transform_20, window_bounds = array<i64: 1, 64>}, {pipeline_mode = #tpu.pipeline_mode<synchronous>, transform_indices = @transform_21, window_bounds = array<i64: 1, 64>}, {pipeline_mode = #tpu.pipeline_mode<synchronous>, transform_indices = @transform_22, window_bounds = array<i64: 3, 64, 64>}, {pipeline_mode = #tpu.pipeline_mode<synchronous>, transform_indices = @transform_23, window_bounds = array<i64: 1, 64>}, {pipeline_mode = #tpu.pipeline_mode<synchronous>, transform_indices = @transform_24, window_bounds = array<i64: 1, 64>}, {pipeline_mode = #tpu.pipeline_mode<synchronous>, transform_indices = @transform_25, window_bounds = array<i64: 3, 64, 32>}, {pipeline_mode = #tpu.pipeline_mode<synchronous>, transform_indices = @transform_26, window_bounds = array<i64: 1, 32>}, {pipeline_mode = #tpu.pipeline_mode<synchronous>, transform_indices = @transform_27, window_bounds = array<i64: 1, 32>}, {pipeline_mode = #tpu.pipeline_mode<synchronous>, transform_indices = @transform_28, window_bounds = array<i64: 3, 32, 32>}, {pipeline_mode = #tpu.pipeline_mode<synchronous>, transform_indices = @transform_29, window_bounds = array<i64: 1, 32>}, {pipeline_mode = #tpu.pipeline_mode<synchronous>, transform_indices = @transform_30, window_bounds = array<i64: 1, 32>}, {pipeline_mode = #tpu.pipeline_mode<synchronous>, transform_indices = @transform_31, window_bounds = array<i64: 3, 32, 16>}, {pipeline_mode = #tpu.pipeline_mode<synchronous>, transform_indices = @transform_32, window_bounds = array<i64: 1, 16>}, {pipeline_mode = #tpu.pipeline_mode<synchronous>, transform_indices = @transform_33, window_bounds = array<i64: 1, 16>}, {pipeline_mode = #tpu.pipeline_mode<synchronous>, transform_indices = @transform_34, window_bounds = array<i64: 3, 16, 16>}, {pipeline_mode = #tpu.pipeline_mode<synchronous>, transform_indices = @transform_35, window_bounds = array<i64: 1, 16>}, {pipeline_mode = #tpu.pipeline_mode<synchronous>, transform_indices = @transform_36, window_bounds = array<i64: 1, 16>}, {pipeline_mode = #tpu.pipeline_mode<synchronous>, transform_indices = @transform_37, window_bounds = array<i64: 3, 16, 8>}, {pipeline_mode = #tpu.pipeline_mode<synchronous>, transform_indices = @transform_38, window_bounds = array<i64: 1, 8>}, {pipeline_mode = #tpu.pipeline_mode<synchronous>, transform_indices = @transform_39, window_bounds = array<i64: 1, 8>}, {pipeline_mode = #tpu.pipeline_mode<synchronous>, transform_indices = @transform_40, window_bounds = array<i64: 3, 8, 8>}, {pipeline_mode = #tpu.pipeline_mode<synchronous>, transform_indices = @transform_41, window_bounds = array<i64: 1, 8>}, {pipeline_mode = #tpu.pipeline_mode<synchronous>, transform_indices = @transform_42, window_bounds = array<i64: 1, 8>}, {pipeline_mode = #tpu.pipeline_mode<synchronous>, transform_indices = @transform_43, window_bounds = array<i64: 3, 8, 4>}, {pipeline_mode = #tpu.pipeline_mode<synchronous>, transform_indices = @transform_44, window_bounds = array<i64: 1, 4>}, {pipeline_mode = #tpu.pipeline_mode<synchronous>, transform_indices = @transform_45, window_bounds = array<i64: 1, 4>}, {pipeline_mode = #tpu.pipeline_mode<synchronous>, transform_indices = @transform_46, window_bounds = array<i64: 3, 4, 4>}, {pipeline_mode = #tpu.pipeline_mode<synchronous>, transform_indices = @transform_47, window_bounds = array<i64: 1, 4>}, {pipeline_mode = #tpu.pipeline_mode<synchronous>, transform_indices = @transform_48, window_bounds = array<i64: 1, 4>}, {transform_indices = @transform_49, window_bounds = array<i64: 1, 16, 4>}]} {
    %0 = tpu.iota {dimensions = array<i32: 0>} : vector<32x16xi32>
    %1 = tpu.iota {dimensions = array<i32: 1>} : vector<32x16xi32>
    %c16_i32 = arith.constant 16 : i32
    %2 = vector.broadcast %c16_i32 : i32 to vector<32x16xi32>
    %3 = arith.cmpi slt, %0, %2 : vector<32x16xi32>
    %c1_i32 = arith.constant 1 : i32
    %4 = vector.broadcast %c1_i32 : i32 to vector<32x16xi32>
    %5 = arith.subi %0, %4 : vector<32x16xi32>
    %6 = arith.cmpi eq, %1, %5 : vector<32x16xi32>
    %7 = arith.andi %3, %6 : vector<32x16xi1>
    %c16_i32_0 = arith.constant 16 : i32
    %8 = vector.broadcast %c16_i32_0 : i32 to vector<32x16xi32>
    %9 = arith.cmpi sge, %0, %8 : vector<32x16xi32>
    %c16_i32_1 = arith.constant 16 : i32
    %10 = vector.broadcast %c16_i32_1 : i32 to vector<32x16xi32>
    %11 = arith.subi %0, %10 : vector<32x16xi32>
    %c1_i32_2 = arith.constant 1 : i32
    %12 = vector.broadcast %c1_i32_2 : i32 to vector<32x16xi32>
    %13 = arith.addi %11, %12 : vector<32x16xi32>
    %14 = arith.cmpi eq, %1, %13 : vector<32x16xi32>
    %15 = arith.andi %9, %14 : vector<32x16xi1>
    %16 = arith.ori %7, %15 : vector<32x16xi1>
    %cst = arith.constant 1.000000e+00 : f32
    %cst_3 = arith.constant 0.000000e+00 : f32
    %17 = vector.broadcast %cst : f32 to vector<32x16xf32>
    %18 = vector.broadcast %cst_3 : f32 to vector<32x16xf32>
    %19 = arith.select %16, %17, %18 : vector<32x16xi1>, vector<32x16xf32>
    %20 = arith.truncf %19 : vector<32x16xf32> to vector<32x16xbf16>
    %c0 = arith.constant 0 : index
    %c0_4 = arith.constant 0 : index
    %c0_5 = arith.constant 0 : index
    %21 = vector.load %arg1[%c0, %c0_4, %c0_5] : memref<1x16x4xf32, #tpu.memory_space<vmem>>, vector<1x16x4xf32>
    %22 = vector.shape_cast %21 : vector<1x16x4xf32> to vector<16x4xf32>
    %c0_6 = arith.constant 0 : index
    %c0_7 = arith.constant 0 : index
    %23 = vector.load %arg3[%c0_6, %c0_7] : memref<1x8xf32, #tpu.memory_space<vmem>>, vector<1x8xf32>
    %c0_8 = arith.constant 0 : index
    %c0_9 = arith.constant 0 : index
    %24 = vector.load %arg4[%c0_8, %c0_9] : memref<1x8xf32, #tpu.memory_space<vmem>>, vector<1x8xf32>
    %25 = arith.truncf %22 : vector<16x4xf32> to vector<16x4xbf16>
    %cst_10 = arith.constant dense<0.000000e+00> : vector<32x4xf32>
    %26 = tpu.matmul %20, %25, %cst_10 {dimension_numbers = #tpu.dot_dimension_numbers<[1], [0], [0], [1], [0, 0, 1, 1], [], []>} : vector<32x16xbf16>, vector<16x4xbf16>, vector<32x4xf32> -> vector<32x4xf32>
    %27 = arith.truncf %26 : vector<32x4xf32> to vector<32x4xbf16>
    %28 = vector.extract_strided_slice %27 {offsets = [0, 0], sizes = [16, 4], strides = [1, 1]} : vector<32x4xbf16> to vector<16x4xbf16>
    %c0_11 = arith.constant 0 : index
    %c0_12 = arith.constant 0 : index
    %c0_13 = arith.constant 0 : index
    %29 = vector.load %arg2[%c0_11, %c0_12, %c0_13] : memref<3x4x8xbf16, #tpu.memory_space<vmem>>, vector<1x4x8xbf16>
    %30 = vector.shape_cast %29 : vector<1x4x8xbf16> to vector<4x8xbf16>
    %cst_14 = arith.constant dense<0.000000e+00> : vector<16x8xf32>
    %31 = tpu.matmul %28, %30, %cst_14 {dimension_numbers = #tpu.dot_dimension_numbers<[1], [0], [0], [1], [0, 0, 1, 1], [], []>} : vector<16x4xbf16>, vector<4x8xbf16>, vector<16x8xf32> -> vector<16x8xf32>
    %c1 = arith.constant 1 : index
    %c0_15 = arith.constant 0 : index
    %c0_16 = arith.constant 0 : index
    %32 = vector.load %arg2[%c1, %c0_15, %c0_16] : memref<3x4x8xbf16, #tpu.memory_space<vmem>>, vector<1x4x8xbf16>
    %33 = vector.shape_cast %32 : vector<1x4x8xbf16> to vector<4x8xbf16>
    %cst_17 = arith.constant dense<0.000000e+00> : vector<16x8xf32>
    %34 = tpu.matmul %25, %33, %cst_17 {dimension_numbers = #tpu.dot_dimension_numbers<[1], [0], [0], [1], [0, 0, 1, 1], [], []>} : vector<16x4xbf16>, vector<4x8xbf16>, vector<16x8xf32> -> vector<16x8xf32>
    %35 = arith.addf %31, %34 : vector<16x8xf32>
    %36 = vector.extract_strided_slice %27 {offsets = [16, 0], sizes = [16, 4], strides = [1, 1]} : vector<32x4xbf16> to vector<16x4xbf16>
    %c2 = arith.constant 2 : index
    %c0_18 = arith.constant 0 : index
    %c0_19 = arith.constant 0 : index
    %37 = vector.load %arg2[%c2, %c0_18, %c0_19] : memref<3x4x8xbf16, #tpu.memory_space<vmem>>, vector<1x4x8xbf16>
    %38 = vector.shape_cast %37 : vector<1x4x8xbf16> to vector<4x8xbf16>
    %cst_20 = arith.constant dense<0.000000e+00> : vector<16x8xf32>
    %39 = tpu.matmul %36, %38, %cst_20 {dimension_numbers = #tpu.dot_dimension_numbers<[1], [0], [0], [1], [0, 0, 1, 1], [], []>} : vector<16x4xbf16>, vector<4x8xbf16>, vector<16x8xf32> -> vector<16x8xf32>
    %40 = arith.addf %35, %39 : vector<16x8xf32>
    %41 = vector.broadcast %23 : vector<1x8xf32> to vector<16x8xf32>
    %42 = arith.mulf %40, %41 : vector<16x8xf32>
    %43 = vector.broadcast %24 : vector<1x8xf32> to vector<16x8xf32>
    %44 = arith.addf %42, %43 : vector<16x8xf32>
    %cst_21 = arith.constant 0.000000e+00 : f32
    %45 = vector.broadcast %cst_21 : f32 to vector<16x8xf32>
    %46 = arith.maximumf %44, %45 : vector<16x8xf32>
    %c0_22 = arith.constant 0 : index
    %c0_23 = arith.constant 0 : index
    %47 = vector.load %arg6[%c0_22, %c0_23] : memref<1x8xf32, #tpu.memory_space<vmem>>, vector<1x8xf32>
    %c0_24 = arith.constant 0 : index
    %c0_25 = arith.constant 0 : index
    %48 = vector.load %arg7[%c0_24, %c0_25] : memref<1x8xf32, #tpu.memory_space<vmem>>, vector<1x8xf32>
    %49 = arith.truncf %46 : vector<16x8xf32> to vector<16x8xbf16>
    %cst_26 = arith.constant dense<0.000000e+00> : vector<32x8xf32>
    %50 = tpu.matmul %20, %49, %cst_26 {dimension_numbers = #tpu.dot_dimension_numbers<[1], [0], [0], [1], [0, 0, 1, 1], [], []>} : vector<32x16xbf16>, vector<16x8xbf16>, vector<32x8xf32> -> vector<32x8xf32>
    %51 = arith.truncf %50 : vector<32x8xf32> to vector<32x8xbf16>
    %52 = vector.extract_strided_slice %51 {offsets = [0, 0], sizes = [16, 8], strides = [1, 1]} : vector<32x8xbf16> to vector<16x8xbf16>
    %c0_27 = arith.constant 0 : index
    %c0_28 = arith.constant 0 : index
    %c0_29 = arith.constant 0 : index
    %53 = vector.load %arg5[%c0_27, %c0_28, %c0_29] : memref<3x8x8xbf16, #tpu.memory_space<vmem>>, vector<1x8x8xbf16>
    %54 = vector.shape_cast %53 : vector<1x8x8xbf16> to vector<8x8xbf16>
    %cst_30 = arith.constant dense<0.000000e+00> : vector<16x8xf32>
    %55 = tpu.matmul %52, %54, %cst_30 {dimension_numbers = #tpu.dot_dimension_numbers<[1], [0], [0], [1], [0, 0, 1, 1], [], []>} : vector<16x8xbf16>, vector<8x8xbf16>, vector<16x8xf32> -> vector<16x8xf32>
    %c1_31 = arith.constant 1 : index
    %c0_32 = arith.constant 0 : index
    %c0_33 = arith.constant 0 : index
    %56 = vector.load %arg5[%c1_31, %c0_32, %c0_33] : memref<3x8x8xbf16, #tpu.memory_space<vmem>>, vector<1x8x8xbf16>
    %57 = vector.shape_cast %56 : vector<1x8x8xbf16> to vector<8x8xbf16>
    %cst_34 = arith.constant dense<0.000000e+00> : vector<16x8xf32>
    %58 = tpu.matmul %49, %57, %cst_34 {dimension_numbers = #tpu.dot_dimension_numbers<[1], [0], [0], [1], [0, 0, 1, 1], [], []>} : vector<16x8xbf16>, vector<8x8xbf16>, vector<16x8xf32> -> vector<16x8xf32>
    %59 = arith.addf %55, %58 : vector<16x8xf32>
    %60 = vector.extract_strided_slice %51 {offsets = [16, 0], sizes = [16, 8], strides = [1, 1]} : vector<32x8xbf16> to vector<16x8xbf16>
    %c2_35 = arith.constant 2 : index
    %c0_36 = arith.constant 0 : index
    %c0_37 = arith.constant 0 : index
    %61 = vector.load %arg5[%c2_35, %c0_36, %c0_37] : memref<3x8x8xbf16, #tpu.memory_space<vmem>>, vector<1x8x8xbf16>
    %62 = vector.shape_cast %61 : vector<1x8x8xbf16> to vector<8x8xbf16>
    %cst_38 = arith.constant dense<0.000000e+00> : vector<16x8xf32>
    %63 = tpu.matmul %60, %62, %cst_38 {dimension_numbers = #tpu.dot_dimension_numbers<[1], [0], [0], [1], [0, 0, 1, 1], [], []>} : vector<16x8xbf16>, vector<8x8xbf16>, vector<16x8xf32> -> vector<16x8xf32>
    %64 = arith.addf %59, %63 : vector<16x8xf32>
    %65 = vector.broadcast %47 : vector<1x8xf32> to vector<16x8xf32>
    %66 = arith.mulf %64, %65 : vector<16x8xf32>
    %67 = vector.broadcast %48 : vector<1x8xf32> to vector<16x8xf32>
    %68 = arith.addf %66, %67 : vector<16x8xf32>
    %c0_39 = arith.constant 0 : index
    %c0_40 = arith.constant 0 : index
    %69 = vector.load %arg9[%c0_39, %c0_40] : memref<1x16xf32, #tpu.memory_space<vmem>>, vector<1x16xf32>
    %c0_41 = arith.constant 0 : index
    %c0_42 = arith.constant 0 : index
    %70 = vector.load %arg10[%c0_41, %c0_42] : memref<1x16xf32, #tpu.memory_space<vmem>>, vector<1x16xf32>
    %71 = arith.truncf %68 : vector<16x8xf32> to vector<16x8xbf16>
    %cst_43 = arith.constant dense<0.000000e+00> : vector<32x8xf32>
    %72 = tpu.matmul %20, %71, %cst_43 {dimension_numbers = #tpu.dot_dimension_numbers<[1], [0], [0], [1], [0, 0, 1, 1], [], []>} : vector<32x16xbf16>, vector<16x8xbf16>, vector<32x8xf32> -> vector<32x8xf32>
    %73 = arith.truncf %72 : vector<32x8xf32> to vector<32x8xbf16>
    %74 = vector.extract_strided_slice %73 {offsets = [0, 0], sizes = [16, 8], strides = [1, 1]} : vector<32x8xbf16> to vector<16x8xbf16>
    %c0_44 = arith.constant 0 : index
    %c0_45 = arith.constant 0 : index
    %c0_46 = arith.constant 0 : index
    %75 = vector.load %arg8[%c0_44, %c0_45, %c0_46] : memref<3x8x16xbf16, #tpu.memory_space<vmem>>, vector<1x8x16xbf16>
    %76 = vector.shape_cast %75 : vector<1x8x16xbf16> to vector<8x16xbf16>
    %cst_47 = arith.constant dense<0.000000e+00> : vector<16x16xf32>
    %77 = tpu.matmul %74, %76, %cst_47 {dimension_numbers = #tpu.dot_dimension_numbers<[1], [0], [0], [1], [0, 0, 1, 1], [], []>} : vector<16x8xbf16>, vector<8x16xbf16>, vector<16x16xf32> -> vector<16x16xf32>
    %c1_48 = arith.constant 1 : index
    %c0_49 = arith.constant 0 : index
    %c0_50 = arith.constant 0 : index
    %78 = vector.load %arg8[%c1_48, %c0_49, %c0_50] : memref<3x8x16xbf16, #tpu.memory_space<vmem>>, vector<1x8x16xbf16>
    %79 = vector.shape_cast %78 : vector<1x8x16xbf16> to vector<8x16xbf16>
    %cst_51 = arith.constant dense<0.000000e+00> : vector<16x16xf32>
    %80 = tpu.matmul %71, %79, %cst_51 {dimension_numbers = #tpu.dot_dimension_numbers<[1], [0], [0], [1], [0, 0, 1, 1], [], []>} : vector<16x8xbf16>, vector<8x16xbf16>, vector<16x16xf32> -> vector<16x16xf32>
    %81 = arith.addf %77, %80 : vector<16x16xf32>
    %82 = vector.extract_strided_slice %73 {offsets = [16, 0], sizes = [16, 8], strides = [1, 1]} : vector<32x8xbf16> to vector<16x8xbf16>
    %c2_52 = arith.constant 2 : index
    %c0_53 = arith.constant 0 : index
    %c0_54 = arith.constant 0 : index
    %83 = vector.load %arg8[%c2_52, %c0_53, %c0_54] : memref<3x8x16xbf16, #tpu.memory_space<vmem>>, vector<1x8x16xbf16>
    %84 = vector.shape_cast %83 : vector<1x8x16xbf16> to vector<8x16xbf16>
    %cst_55 = arith.constant dense<0.000000e+00> : vector<16x16xf32>
    %85 = tpu.matmul %82, %84, %cst_55 {dimension_numbers = #tpu.dot_dimension_numbers<[1], [0], [0], [1], [0, 0, 1, 1], [], []>} : vector<16x8xbf16>, vector<8x16xbf16>, vector<16x16xf32> -> vector<16x16xf32>
    %86 = arith.addf %81, %85 : vector<16x16xf32>
    %87 = vector.broadcast %69 : vector<1x16xf32> to vector<16x16xf32>
    %88 = arith.mulf %86, %87 : vector<16x16xf32>
    %89 = vector.broadcast %70 : vector<1x16xf32> to vector<16x16xf32>
    %90 = arith.addf %88, %89 : vector<16x16xf32>
    %cst_56 = arith.constant 0.000000e+00 : f32
    %91 = vector.broadcast %cst_56 : f32 to vector<16x16xf32>
    %92 = arith.maximumf %90, %91 : vector<16x16xf32>
    %c0_57 = arith.constant 0 : index
    %c0_58 = arith.constant 0 : index
    %93 = vector.load %arg12[%c0_57, %c0_58] : memref<1x16xf32, #tpu.memory_space<vmem>>, vector<1x16xf32>
    %c0_59 = arith.constant 0 : index
    %c0_60 = arith.constant 0 : index
    %94 = vector.load %arg13[%c0_59, %c0_60] : memref<1x16xf32, #tpu.memory_space<vmem>>, vector<1x16xf32>
    %95 = arith.truncf %92 : vector<16x16xf32> to vector<16x16xbf16>
    %cst_61 = arith.constant dense<0.000000e+00> : vector<32x16xf32>
    %96 = tpu.matmul %20, %95, %cst_61 {dimension_numbers = #tpu.dot_dimension_numbers<[1], [0], [0], [1], [0, 0, 1, 1], [], []>} : vector<32x16xbf16>, vector<16x16xbf16>, vector<32x16xf32> -> vector<32x16xf32>
    %97 = arith.truncf %96 : vector<32x16xf32> to vector<32x16xbf16>
    %98 = vector.extract_strided_slice %97 {offsets = [0, 0], sizes = [16, 16], strides = [1, 1]} : vector<32x16xbf16> to vector<16x16xbf16>
    %c0_62 = arith.constant 0 : index
    %c0_63 = arith.constant 0 : index
    %c0_64 = arith.constant 0 : index
    %99 = vector.load %arg11[%c0_62, %c0_63, %c0_64] : memref<3x16x16xbf16, #tpu.memory_space<vmem>>, vector<1x16x16xbf16>
    %100 = vector.shape_cast %99 : vector<1x16x16xbf16> to vector<16x16xbf16>
    %cst_65 = arith.constant dense<0.000000e+00> : vector<16x16xf32>
    %101 = tpu.matmul %98, %100, %cst_65 {dimension_numbers = #tpu.dot_dimension_numbers<[1], [0], [0], [1], [0, 0, 1, 1], [], []>} : vector<16x16xbf16>, vector<16x16xbf16>, vector<16x16xf32> -> vector<16x16xf32>
    %c1_66 = arith.constant 1 : index
    %c0_67 = arith.constant 0 : index
    %c0_68 = arith.constant 0 : index
    %102 = vector.load %arg11[%c1_66, %c0_67, %c0_68] : memref<3x16x16xbf16, #tpu.memory_space<vmem>>, vector<1x16x16xbf16>
    %103 = vector.shape_cast %102 : vector<1x16x16xbf16> to vector<16x16xbf16>
    %cst_69 = arith.constant dense<0.000000e+00> : vector<16x16xf32>
    %104 = tpu.matmul %95, %103, %cst_69 {dimension_numbers = #tpu.dot_dimension_numbers<[1], [0], [0], [1], [0, 0, 1, 1], [], []>} : vector<16x16xbf16>, vector<16x16xbf16>, vector<16x16xf32> -> vector<16x16xf32>
    %105 = arith.addf %101, %104 : vector<16x16xf32>
    %106 = vector.extract_strided_slice %97 {offsets = [16, 0], sizes = [16, 16], strides = [1, 1]} : vector<32x16xbf16> to vector<16x16xbf16>
    %c2_70 = arith.constant 2 : index
    %c0_71 = arith.constant 0 : index
    %c0_72 = arith.constant 0 : index
    %107 = vector.load %arg11[%c2_70, %c0_71, %c0_72] : memref<3x16x16xbf16, #tpu.memory_space<vmem>>, vector<1x16x16xbf16>
    %108 = vector.shape_cast %107 : vector<1x16x16xbf16> to vector<16x16xbf16>
    %cst_73 = arith.constant dense<0.000000e+00> : vector<16x16xf32>
    %109 = tpu.matmul %106, %108, %cst_73 {dimension_numbers = #tpu.dot_dimension_numbers<[1], [0], [0], [1], [0, 0, 1, 1], [], []>} : vector<16x16xbf16>, vector<16x16xbf16>, vector<16x16xf32> -> vector<16x16xf32>
    %110 = arith.addf %105, %109 : vector<16x16xf32>
    %111 = vector.broadcast %93 : vector<1x16xf32> to vector<16x16xf32>
    %112 = arith.mulf %110, %111 : vector<16x16xf32>
    %113 = vector.broadcast %94 : vector<1x16xf32> to vector<16x16xf32>
    %114 = arith.addf %112, %113 : vector<16x16xf32>
    %c0_74 = arith.constant 0 : index
    %c0_75 = arith.constant 0 : index
    %115 = vector.load %arg15[%c0_74, %c0_75] : memref<1x32xf32, #tpu.memory_space<vmem>>, vector<1x32xf32>
    %c0_76 = arith.constant 0 : index
    %c0_77 = arith.constant 0 : index
    %116 = vector.load %arg16[%c0_76, %c0_77] : memref<1x32xf32, #tpu.memory_space<vmem>>, vector<1x32xf32>
    %117 = arith.truncf %114 : vector<16x16xf32> to vector<16x16xbf16>
    %cst_78 = arith.constant dense<0.000000e+00> : vector<32x16xf32>
    %118 = tpu.matmul %20, %117, %cst_78 {dimension_numbers = #tpu.dot_dimension_numbers<[1], [0], [0], [1], [0, 0, 1, 1], [], []>} : vector<32x16xbf16>, vector<16x16xbf16>, vector<32x16xf32> -> vector<32x16xf32>
    %119 = arith.truncf %118 : vector<32x16xf32> to vector<32x16xbf16>
    %120 = vector.extract_strided_slice %119 {offsets = [0, 0], sizes = [16, 16], strides = [1, 1]} : vector<32x16xbf16> to vector<16x16xbf16>
    %c0_79 = arith.constant 0 : index
    %c0_80 = arith.constant 0 : index
    %c0_81 = arith.constant 0 : index
    %121 = vector.load %arg14[%c0_79, %c0_80, %c0_81] : memref<3x16x32xbf16, #tpu.memory_space<vmem>>, vector<1x16x32xbf16>
    %122 = vector.shape_cast %121 : vector<1x16x32xbf16> to vector<16x32xbf16>
    %cst_82 = arith.constant dense<0.000000e+00> : vector<16x32xf32>
    %123 = tpu.matmul %120, %122, %cst_82 {dimension_numbers = #tpu.dot_dimension_numbers<[1], [0], [0], [1], [0, 0, 1, 1], [], []>} : vector<16x16xbf16>, vector<16x32xbf16>, vector<16x32xf32> -> vector<16x32xf32>
    %c1_83 = arith.constant 1 : index
    %c0_84 = arith.constant 0 : index
    %c0_85 = arith.constant 0 : index
    %124 = vector.load %arg14[%c1_83, %c0_84, %c0_85] : memref<3x16x32xbf16, #tpu.memory_space<vmem>>, vector<1x16x32xbf16>
    %125 = vector.shape_cast %124 : vector<1x16x32xbf16> to vector<16x32xbf16>
    %cst_86 = arith.constant dense<0.000000e+00> : vector<16x32xf32>
    %126 = tpu.matmul %117, %125, %cst_86 {dimension_numbers = #tpu.dot_dimension_numbers<[1], [0], [0], [1], [0, 0, 1, 1], [], []>} : vector<16x16xbf16>, vector<16x32xbf16>, vector<16x32xf32> -> vector<16x32xf32>
    %127 = arith.addf %123, %126 : vector<16x32xf32>
    %128 = vector.extract_strided_slice %119 {offsets = [16, 0], sizes = [16, 16], strides = [1, 1]} : vector<32x16xbf16> to vector<16x16xbf16>
    %c2_87 = arith.constant 2 : index
    %c0_88 = arith.constant 0 : index
    %c0_89 = arith.constant 0 : index
    %129 = vector.load %arg14[%c2_87, %c0_88, %c0_89] : memref<3x16x32xbf16, #tpu.memory_space<vmem>>, vector<1x16x32xbf16>
    %130 = vector.shape_cast %129 : vector<1x16x32xbf16> to vector<16x32xbf16>
    %cst_90 = arith.constant dense<0.000000e+00> : vector<16x32xf32>
    %131 = tpu.matmul %128, %130, %cst_90 {dimension_numbers = #tpu.dot_dimension_numbers<[1], [0], [0], [1], [0, 0, 1, 1], [], []>} : vector<16x16xbf16>, vector<16x32xbf16>, vector<16x32xf32> -> vector<16x32xf32>
    %132 = arith.addf %127, %131 : vector<16x32xf32>
    %133 = vector.broadcast %115 : vector<1x32xf32> to vector<16x32xf32>
    %134 = arith.mulf %132, %133 : vector<16x32xf32>
    %135 = vector.broadcast %116 : vector<1x32xf32> to vector<16x32xf32>
    %136 = arith.addf %134, %135 : vector<16x32xf32>
    %cst_91 = arith.constant 0.000000e+00 : f32
    %137 = vector.broadcast %cst_91 : f32 to vector<16x32xf32>
    %138 = arith.maximumf %136, %137 : vector<16x32xf32>
    %c0_92 = arith.constant 0 : index
    %c0_93 = arith.constant 0 : index
    %139 = vector.load %arg18[%c0_92, %c0_93] : memref<1x32xf32, #tpu.memory_space<vmem>>, vector<1x32xf32>
    %c0_94 = arith.constant 0 : index
    %c0_95 = arith.constant 0 : index
    %140 = vector.load %arg19[%c0_94, %c0_95] : memref<1x32xf32, #tpu.memory_space<vmem>>, vector<1x32xf32>
    %141 = arith.truncf %138 : vector<16x32xf32> to vector<16x32xbf16>
    %cst_96 = arith.constant dense<0.000000e+00> : vector<32x32xf32>
    %142 = tpu.matmul %20, %141, %cst_96 {dimension_numbers = #tpu.dot_dimension_numbers<[1], [0], [0], [1], [0, 0, 1, 1], [], []>} : vector<32x16xbf16>, vector<16x32xbf16>, vector<32x32xf32> -> vector<32x32xf32>
    %143 = arith.truncf %142 : vector<32x32xf32> to vector<32x32xbf16>
    %144 = vector.extract_strided_slice %143 {offsets = [0, 0], sizes = [16, 32], strides = [1, 1]} : vector<32x32xbf16> to vector<16x32xbf16>
    %c0_97 = arith.constant 0 : index
    %c0_98 = arith.constant 0 : index
    %c0_99 = arith.constant 0 : index
    %145 = vector.load %arg17[%c0_97, %c0_98, %c0_99] : memref<3x32x32xbf16, #tpu.memory_space<vmem>>, vector<1x32x32xbf16>
    %146 = vector.shape_cast %145 : vector<1x32x32xbf16> to vector<32x32xbf16>
    %cst_100 = arith.constant dense<0.000000e+00> : vector<16x32xf32>
    %147 = tpu.matmul %144, %146, %cst_100 {dimension_numbers = #tpu.dot_dimension_numbers<[1], [0], [0], [1], [0, 0, 1, 1], [], []>} : vector<16x32xbf16>, vector<32x32xbf16>, vector<16x32xf32> -> vector<16x32xf32>
    %c1_101 = arith.constant 1 : index
    %c0_102 = arith.constant 0 : index
    %c0_103 = arith.constant 0 : index
    %148 = vector.load %arg17[%c1_101, %c0_102, %c0_103] : memref<3x32x32xbf16, #tpu.memory_space<vmem>>, vector<1x32x32xbf16>
    %149 = vector.shape_cast %148 : vector<1x32x32xbf16> to vector<32x32xbf16>
    %cst_104 = arith.constant dense<0.000000e+00> : vector<16x32xf32>
    %150 = tpu.matmul %141, %149, %cst_104 {dimension_numbers = #tpu.dot_dimension_numbers<[1], [0], [0], [1], [0, 0, 1, 1], [], []>} : vector<16x32xbf16>, vector<32x32xbf16>, vector<16x32xf32> -> vector<16x32xf32>
    %151 = arith.addf %147, %150 : vector<16x32xf32>
    %152 = vector.extract_strided_slice %143 {offsets = [16, 0], sizes = [16, 32], strides = [1, 1]} : vector<32x32xbf16> to vector<16x32xbf16>
    %c2_105 = arith.constant 2 : index
    %c0_106 = arith.constant 0 : index
    %c0_107 = arith.constant 0 : index
    %153 = vector.load %arg17[%c2_105, %c0_106, %c0_107] : memref<3x32x32xbf16, #tpu.memory_space<vmem>>, vector<1x32x32xbf16>
    %154 = vector.shape_cast %153 : vector<1x32x32xbf16> to vector<32x32xbf16>
    %cst_108 = arith.constant dense<0.000000e+00> : vector<16x32xf32>
    %155 = tpu.matmul %152, %154, %cst_108 {dimension_numbers = #tpu.dot_dimension_numbers<[1], [0], [0], [1], [0, 0, 1, 1], [], []>} : vector<16x32xbf16>, vector<32x32xbf16>, vector<16x32xf32> -> vector<16x32xf32>
    %156 = arith.addf %151, %155 : vector<16x32xf32>
    %157 = vector.broadcast %139 : vector<1x32xf32> to vector<16x32xf32>
    %158 = arith.mulf %156, %157 : vector<16x32xf32>
    %159 = vector.broadcast %140 : vector<1x32xf32> to vector<16x32xf32>
    %160 = arith.addf %158, %159 : vector<16x32xf32>
    %c0_109 = arith.constant 0 : index
    %c0_110 = arith.constant 0 : index
    %161 = vector.load %arg21[%c0_109, %c0_110] : memref<1x64xf32, #tpu.memory_space<vmem>>, vector<1x64xf32>
    %c0_111 = arith.constant 0 : index
    %c0_112 = arith.constant 0 : index
    %162 = vector.load %arg22[%c0_111, %c0_112] : memref<1x64xf32, #tpu.memory_space<vmem>>, vector<1x64xf32>
    %163 = arith.truncf %160 : vector<16x32xf32> to vector<16x32xbf16>
    %cst_113 = arith.constant dense<0.000000e+00> : vector<32x32xf32>
    %164 = tpu.matmul %20, %163, %cst_113 {dimension_numbers = #tpu.dot_dimension_numbers<[1], [0], [0], [1], [0, 0, 1, 1], [], []>} : vector<32x16xbf16>, vector<16x32xbf16>, vector<32x32xf32> -> vector<32x32xf32>
    %165 = arith.truncf %164 : vector<32x32xf32> to vector<32x32xbf16>
    %166 = vector.extract_strided_slice %165 {offsets = [0, 0], sizes = [16, 32], strides = [1, 1]} : vector<32x32xbf16> to vector<16x32xbf16>
    %c0_114 = arith.constant 0 : index
    %c0_115 = arith.constant 0 : index
    %c0_116 = arith.constant 0 : index
    %167 = vector.load %arg20[%c0_114, %c0_115, %c0_116] : memref<3x32x64xbf16, #tpu.memory_space<vmem>>, vector<1x32x64xbf16>
    %168 = vector.shape_cast %167 : vector<1x32x64xbf16> to vector<32x64xbf16>
    %cst_117 = arith.constant dense<0.000000e+00> : vector<16x64xf32>
    %169 = tpu.matmul %166, %168, %cst_117 {dimension_numbers = #tpu.dot_dimension_numbers<[1], [0], [0], [1], [0, 0, 1, 1], [], []>} : vector<16x32xbf16>, vector<32x64xbf16>, vector<16x64xf32> -> vector<16x64xf32>
    %c1_118 = arith.constant 1 : index
    %c0_119 = arith.constant 0 : index
    %c0_120 = arith.constant 0 : index
    %170 = vector.load %arg20[%c1_118, %c0_119, %c0_120] : memref<3x32x64xbf16, #tpu.memory_space<vmem>>, vector<1x32x64xbf16>
    %171 = vector.shape_cast %170 : vector<1x32x64xbf16> to vector<32x64xbf16>
    %cst_121 = arith.constant dense<0.000000e+00> : vector<16x64xf32>
    %172 = tpu.matmul %163, %171, %cst_121 {dimension_numbers = #tpu.dot_dimension_numbers<[1], [0], [0], [1], [0, 0, 1, 1], [], []>} : vector<16x32xbf16>, vector<32x64xbf16>, vector<16x64xf32> -> vector<16x64xf32>
    %173 = arith.addf %169, %172 : vector<16x64xf32>
    %174 = vector.extract_strided_slice %165 {offsets = [16, 0], sizes = [16, 32], strides = [1, 1]} : vector<32x32xbf16> to vector<16x32xbf16>
    %c2_122 = arith.constant 2 : index
    %c0_123 = arith.constant 0 : index
    %c0_124 = arith.constant 0 : index
    %175 = vector.load %arg20[%c2_122, %c0_123, %c0_124] : memref<3x32x64xbf16, #tpu.memory_space<vmem>>, vector<1x32x64xbf16>
    %176 = vector.shape_cast %175 : vector<1x32x64xbf16> to vector<32x64xbf16>
    %cst_125 = arith.constant dense<0.000000e+00> : vector<16x64xf32>
    %177 = tpu.matmul %174, %176, %cst_125 {dimension_numbers = #tpu.dot_dimension_numbers<[1], [0], [0], [1], [0, 0, 1, 1], [], []>} : vector<16x32xbf16>, vector<32x64xbf16>, vector<16x64xf32> -> vector<16x64xf32>
    %178 = arith.addf %173, %177 : vector<16x64xf32>
    %179 = vector.broadcast %161 : vector<1x64xf32> to vector<16x64xf32>
    %180 = arith.mulf %178, %179 : vector<16x64xf32>
    %181 = vector.broadcast %162 : vector<1x64xf32> to vector<16x64xf32>
    %182 = arith.addf %180, %181 : vector<16x64xf32>
    %cst_126 = arith.constant 0.000000e+00 : f32
    %183 = vector.broadcast %cst_126 : f32 to vector<16x64xf32>
    %184 = arith.maximumf %182, %183 : vector<16x64xf32>
    %c0_127 = arith.constant 0 : index
    %c0_128 = arith.constant 0 : index
    %185 = vector.load %arg24[%c0_127, %c0_128] : memref<1x64xf32, #tpu.memory_space<vmem>>, vector<1x64xf32>
    %c0_129 = arith.constant 0 : index
    %c0_130 = arith.constant 0 : index
    %186 = vector.load %arg25[%c0_129, %c0_130] : memref<1x64xf32, #tpu.memory_space<vmem>>, vector<1x64xf32>
    %187 = arith.truncf %184 : vector<16x64xf32> to vector<16x64xbf16>
    %cst_131 = arith.constant dense<0.000000e+00> : vector<32x64xf32>
    %188 = tpu.matmul %20, %187, %cst_131 {dimension_numbers = #tpu.dot_dimension_numbers<[1], [0], [0], [1], [0, 0, 1, 1], [], []>} : vector<32x16xbf16>, vector<16x64xbf16>, vector<32x64xf32> -> vector<32x64xf32>
    %189 = arith.truncf %188 : vector<32x64xf32> to vector<32x64xbf16>
    %190 = vector.extract_strided_slice %189 {offsets = [0, 0], sizes = [16, 64], strides = [1, 1]} : vector<32x64xbf16> to vector<16x64xbf16>
    %c0_132 = arith.constant 0 : index
    %c0_133 = arith.constant 0 : index
    %c0_134 = arith.constant 0 : index
    %191 = vector.load %arg23[%c0_132, %c0_133, %c0_134] : memref<3x64x64xbf16, #tpu.memory_space<vmem>>, vector<1x64x64xbf16>
    %192 = vector.shape_cast %191 : vector<1x64x64xbf16> to vector<64x64xbf16>
    %cst_135 = arith.constant dense<0.000000e+00> : vector<16x64xf32>
    %193 = tpu.matmul %190, %192, %cst_135 {dimension_numbers = #tpu.dot_dimension_numbers<[1], [0], [0], [1], [0, 0, 1, 1], [], []>} : vector<16x64xbf16>, vector<64x64xbf16>, vector<16x64xf32> -> vector<16x64xf32>
    %c1_136 = arith.constant 1 : index
    %c0_137 = arith.constant 0 : index
    %c0_138 = arith.constant 0 : index
    %194 = vector.load %arg23[%c1_136, %c0_137, %c0_138] : memref<3x64x64xbf16, #tpu.memory_space<vmem>>, vector<1x64x64xbf16>
    %195 = vector.shape_cast %194 : vector<1x64x64xbf16> to vector<64x64xbf16>
    %cst_139 = arith.constant dense<0.000000e+00> : vector<16x64xf32>
    %196 = tpu.matmul %187, %195, %cst_139 {dimension_numbers = #tpu.dot_dimension_numbers<[1], [0], [0], [1], [0, 0, 1, 1], [], []>} : vector<16x64xbf16>, vector<64x64xbf16>, vector<16x64xf32> -> vector<16x64xf32>
    %197 = arith.addf %193, %196 : vector<16x64xf32>
    %198 = vector.extract_strided_slice %189 {offsets = [16, 0], sizes = [16, 64], strides = [1, 1]} : vector<32x64xbf16> to vector<16x64xbf16>
    %c2_140 = arith.constant 2 : index
    %c0_141 = arith.constant 0 : index
    %c0_142 = arith.constant 0 : index
    %199 = vector.load %arg23[%c2_140, %c0_141, %c0_142] : memref<3x64x64xbf16, #tpu.memory_space<vmem>>, vector<1x64x64xbf16>
    %200 = vector.shape_cast %199 : vector<1x64x64xbf16> to vector<64x64xbf16>
    %cst_143 = arith.constant dense<0.000000e+00> : vector<16x64xf32>
    %201 = tpu.matmul %198, %200, %cst_143 {dimension_numbers = #tpu.dot_dimension_numbers<[1], [0], [0], [1], [0, 0, 1, 1], [], []>} : vector<16x64xbf16>, vector<64x64xbf16>, vector<16x64xf32> -> vector<16x64xf32>
    %202 = arith.addf %197, %201 : vector<16x64xf32>
    %203 = vector.broadcast %185 : vector<1x64xf32> to vector<16x64xf32>
    %204 = arith.mulf %202, %203 : vector<16x64xf32>
    %205 = vector.broadcast %186 : vector<1x64xf32> to vector<16x64xf32>
    %206 = arith.addf %204, %205 : vector<16x64xf32>
    %cst_144 = arith.constant dense<0.000000e+00> : vector<64xf32>
    %207 = vector.multi_reduction <add>, %206, %cst_144 [0] : vector<16x64xf32> to vector<64xf32>
    %208 = vector.shape_cast %207 : vector<64xf32> to vector<1x64xf32>
    %209 = vector.shape_cast %208 : vector<1x64xf32> to vector<1x64xf32>
    %210 = vector.broadcast %209 : vector<1x64xf32> to vector<16x64xf32>
    %c0_145 = arith.constant 0 : index
    %c0_146 = arith.constant 0 : index
    %211 = vector.load %arg27[%c0_145, %c0_146] : memref<1x32xf32, #tpu.memory_space<vmem>>, vector<1x32xf32>
    %c0_147 = arith.constant 0 : index
    %c0_148 = arith.constant 0 : index
    %212 = vector.load %arg28[%c0_147, %c0_148] : memref<1x32xf32, #tpu.memory_space<vmem>>, vector<1x32xf32>
    %213 = arith.truncf %210 : vector<16x64xf32> to vector<16x64xbf16>
    %cst_149 = arith.constant dense<0.000000e+00> : vector<32x64xf32>
    %214 = tpu.matmul %20, %213, %cst_149 {dimension_numbers = #tpu.dot_dimension_numbers<[1], [0], [0], [1], [0, 0, 1, 1], [], []>} : vector<32x16xbf16>, vector<16x64xbf16>, vector<32x64xf32> -> vector<32x64xf32>
    %215 = arith.truncf %214 : vector<32x64xf32> to vector<32x64xbf16>
    %216 = vector.extract_strided_slice %215 {offsets = [0, 0], sizes = [16, 64], strides = [1, 1]} : vector<32x64xbf16> to vector<16x64xbf16>
    %c0_150 = arith.constant 0 : index
    %c0_151 = arith.constant 0 : index
    %c0_152 = arith.constant 0 : index
    %217 = vector.load %arg26[%c0_150, %c0_151, %c0_152] : memref<3x64x32xbf16, #tpu.memory_space<vmem>>, vector<1x64x32xbf16>
    %218 = vector.shape_cast %217 : vector<1x64x32xbf16> to vector<64x32xbf16>
    %cst_153 = arith.constant dense<0.000000e+00> : vector<16x32xf32>
    %219 = tpu.matmul %216, %218, %cst_153 {dimension_numbers = #tpu.dot_dimension_numbers<[1], [0], [0], [1], [0, 0, 1, 1], [], []>} : vector<16x64xbf16>, vector<64x32xbf16>, vector<16x32xf32> -> vector<16x32xf32>
    %c1_154 = arith.constant 1 : index
    %c0_155 = arith.constant 0 : index
    %c0_156 = arith.constant 0 : index
    %220 = vector.load %arg26[%c1_154, %c0_155, %c0_156] : memref<3x64x32xbf16, #tpu.memory_space<vmem>>, vector<1x64x32xbf16>
    %221 = vector.shape_cast %220 : vector<1x64x32xbf16> to vector<64x32xbf16>
    %cst_157 = arith.constant dense<0.000000e+00> : vector<16x32xf32>
    %222 = tpu.matmul %213, %221, %cst_157 {dimension_numbers = #tpu.dot_dimension_numbers<[1], [0], [0], [1], [0, 0, 1, 1], [], []>} : vector<16x64xbf16>, vector<64x32xbf16>, vector<16x32xf32> -> vector<16x32xf32>
    %223 = arith.addf %219, %222 : vector<16x32xf32>
    %224 = vector.extract_strided_slice %215 {offsets = [16, 0], sizes = [16, 64], strides = [1, 1]} : vector<32x64xbf16> to vector<16x64xbf16>
    %c2_158 = arith.constant 2 : index
    %c0_159 = arith.constant 0 : index
    %c0_160 = arith.constant 0 : index
    %225 = vector.load %arg26[%c2_158, %c0_159, %c0_160] : memref<3x64x32xbf16, #tpu.memory_space<vmem>>, vector<1x64x32xbf16>
    %226 = vector.shape_cast %225 : vector<1x64x32xbf16> to vector<64x32xbf16>
    %cst_161 = arith.constant dense<0.000000e+00> : vector<16x32xf32>
    %227 = tpu.matmul %224, %226, %cst_161 {dimension_numbers = #tpu.dot_dimension_numbers<[1], [0], [0], [1], [0, 0, 1, 1], [], []>} : vector<16x64xbf16>, vector<64x32xbf16>, vector<16x32xf32> -> vector<16x32xf32>
    %228 = arith.addf %223, %227 : vector<16x32xf32>
    %229 = vector.broadcast %211 : vector<1x32xf32> to vector<16x32xf32>
    %230 = arith.mulf %228, %229 : vector<16x32xf32>
    %231 = vector.broadcast %212 : vector<1x32xf32> to vector<16x32xf32>
    %232 = arith.addf %230, %231 : vector<16x32xf32>
    %cst_162 = arith.constant 0.000000e+00 : f32
    %233 = vector.broadcast %cst_162 : f32 to vector<16x32xf32>
    %234 = arith.maximumf %232, %233 : vector<16x32xf32>
    %c0_163 = arith.constant 0 : index
    %c0_164 = arith.constant 0 : index
    %235 = vector.load %arg30[%c0_163, %c0_164] : memref<1x32xf32, #tpu.memory_space<vmem>>, vector<1x32xf32>
    %c0_165 = arith.constant 0 : index
    %c0_166 = arith.constant 0 : index
    %236 = vector.load %arg31[%c0_165, %c0_166] : memref<1x32xf32, #tpu.memory_space<vmem>>, vector<1x32xf32>
    %237 = arith.truncf %234 : vector<16x32xf32> to vector<16x32xbf16>
    %cst_167 = arith.constant dense<0.000000e+00> : vector<32x32xf32>
    %238 = tpu.matmul %20, %237, %cst_167 {dimension_numbers = #tpu.dot_dimension_numbers<[1], [0], [0], [1], [0, 0, 1, 1], [], []>} : vector<32x16xbf16>, vector<16x32xbf16>, vector<32x32xf32> -> vector<32x32xf32>
    %239 = arith.truncf %238 : vector<32x32xf32> to vector<32x32xbf16>
    %240 = vector.extract_strided_slice %239 {offsets = [0, 0], sizes = [16, 32], strides = [1, 1]} : vector<32x32xbf16> to vector<16x32xbf16>
    %c0_168 = arith.constant 0 : index
    %c0_169 = arith.constant 0 : index
    %c0_170 = arith.constant 0 : index
    %241 = vector.load %arg29[%c0_168, %c0_169, %c0_170] : memref<3x32x32xbf16, #tpu.memory_space<vmem>>, vector<1x32x32xbf16>
    %242 = vector.shape_cast %241 : vector<1x32x32xbf16> to vector<32x32xbf16>
    %cst_171 = arith.constant dense<0.000000e+00> : vector<16x32xf32>
    %243 = tpu.matmul %240, %242, %cst_171 {dimension_numbers = #tpu.dot_dimension_numbers<[1], [0], [0], [1], [0, 0, 1, 1], [], []>} : vector<16x32xbf16>, vector<32x32xbf16>, vector<16x32xf32> -> vector<16x32xf32>
    %c1_172 = arith.constant 1 : index
    %c0_173 = arith.constant 0 : index
    %c0_174 = arith.constant 0 : index
    %244 = vector.load %arg29[%c1_172, %c0_173, %c0_174] : memref<3x32x32xbf16, #tpu.memory_space<vmem>>, vector<1x32x32xbf16>
    %245 = vector.shape_cast %244 : vector<1x32x32xbf16> to vector<32x32xbf16>
    %cst_175 = arith.constant dense<0.000000e+00> : vector<16x32xf32>
    %246 = tpu.matmul %237, %245, %cst_175 {dimension_numbers = #tpu.dot_dimension_numbers<[1], [0], [0], [1], [0, 0, 1, 1], [], []>} : vector<16x32xbf16>, vector<32x32xbf16>, vector<16x32xf32> -> vector<16x32xf32>
    %247 = arith.addf %243, %246 : vector<16x32xf32>
    %248 = vector.extract_strided_slice %239 {offsets = [16, 0], sizes = [16, 32], strides = [1, 1]} : vector<32x32xbf16> to vector<16x32xbf16>
    %c2_176 = arith.constant 2 : index
    %c0_177 = arith.constant 0 : index
    %c0_178 = arith.constant 0 : index
    %249 = vector.load %arg29[%c2_176, %c0_177, %c0_178] : memref<3x32x32xbf16, #tpu.memory_space<vmem>>, vector<1x32x32xbf16>
    %250 = vector.shape_cast %249 : vector<1x32x32xbf16> to vector<32x32xbf16>
    %cst_179 = arith.constant dense<0.000000e+00> : vector<16x32xf32>
    %251 = tpu.matmul %248, %250, %cst_179 {dimension_numbers = #tpu.dot_dimension_numbers<[1], [0], [0], [1], [0, 0, 1, 1], [], []>} : vector<16x32xbf16>, vector<32x32xbf16>, vector<16x32xf32> -> vector<16x32xf32>
    %252 = arith.addf %247, %251 : vector<16x32xf32>
    %253 = vector.broadcast %235 : vector<1x32xf32> to vector<16x32xf32>
    %254 = arith.mulf %252, %253 : vector<16x32xf32>
    %255 = vector.broadcast %236 : vector<1x32xf32> to vector<16x32xf32>
    %256 = arith.addf %254, %255 : vector<16x32xf32>
    %c0_180 = arith.constant 0 : index
    %c0_181 = arith.constant 0 : index
    %257 = vector.load %arg33[%c0_180, %c0_181] : memref<1x16xf32, #tpu.memory_space<vmem>>, vector<1x16xf32>
    %c0_182 = arith.constant 0 : index
    %c0_183 = arith.constant 0 : index
    %258 = vector.load %arg34[%c0_182, %c0_183] : memref<1x16xf32, #tpu.memory_space<vmem>>, vector<1x16xf32>
    %259 = arith.truncf %256 : vector<16x32xf32> to vector<16x32xbf16>
    %cst_184 = arith.constant dense<0.000000e+00> : vector<32x32xf32>
    %260 = tpu.matmul %20, %259, %cst_184 {dimension_numbers = #tpu.dot_dimension_numbers<[1], [0], [0], [1], [0, 0, 1, 1], [], []>} : vector<32x16xbf16>, vector<16x32xbf16>, vector<32x32xf32> -> vector<32x32xf32>
    %261 = arith.truncf %260 : vector<32x32xf32> to vector<32x32xbf16>
    %262 = vector.extract_strided_slice %261 {offsets = [0, 0], sizes = [16, 32], strides = [1, 1]} : vector<32x32xbf16> to vector<16x32xbf16>
    %c0_185 = arith.constant 0 : index
    %c0_186 = arith.constant 0 : index
    %c0_187 = arith.constant 0 : index
    %263 = vector.load %arg32[%c0_185, %c0_186, %c0_187] : memref<3x32x16xbf16, #tpu.memory_space<vmem>>, vector<1x32x16xbf16>
    %264 = vector.shape_cast %263 : vector<1x32x16xbf16> to vector<32x16xbf16>
    %cst_188 = arith.constant dense<0.000000e+00> : vector<16x16xf32>
    %265 = tpu.matmul %262, %264, %cst_188 {dimension_numbers = #tpu.dot_dimension_numbers<[1], [0], [0], [1], [0, 0, 1, 1], [], []>} : vector<16x32xbf16>, vector<32x16xbf16>, vector<16x16xf32> -> vector<16x16xf32>
    %c1_189 = arith.constant 1 : index
    %c0_190 = arith.constant 0 : index
    %c0_191 = arith.constant 0 : index
    %266 = vector.load %arg32[%c1_189, %c0_190, %c0_191] : memref<3x32x16xbf16, #tpu.memory_space<vmem>>, vector<1x32x16xbf16>
    %267 = vector.shape_cast %266 : vector<1x32x16xbf16> to vector<32x16xbf16>
    %cst_192 = arith.constant dense<0.000000e+00> : vector<16x16xf32>
    %268 = tpu.matmul %259, %267, %cst_192 {dimension_numbers = #tpu.dot_dimension_numbers<[1], [0], [0], [1], [0, 0, 1, 1], [], []>} : vector<16x32xbf16>, vector<32x16xbf16>, vector<16x16xf32> -> vector<16x16xf32>
    %269 = arith.addf %265, %268 : vector<16x16xf32>
    %270 = vector.extract_strided_slice %261 {offsets = [16, 0], sizes = [16, 32], strides = [1, 1]} : vector<32x32xbf16> to vector<16x32xbf16>
    %c2_193 = arith.constant 2 : index
    %c0_194 = arith.constant 0 : index
    %c0_195 = arith.constant 0 : index
    %271 = vector.load %arg32[%c2_193, %c0_194, %c0_195] : memref<3x32x16xbf16, #tpu.memory_space<vmem>>, vector<1x32x16xbf16>
    %272 = vector.shape_cast %271 : vector<1x32x16xbf16> to vector<32x16xbf16>
    %cst_196 = arith.constant dense<0.000000e+00> : vector<16x16xf32>
    %273 = tpu.matmul %270, %272, %cst_196 {dimension_numbers = #tpu.dot_dimension_numbers<[1], [0], [0], [1], [0, 0, 1, 1], [], []>} : vector<16x32xbf16>, vector<32x16xbf16>, vector<16x16xf32> -> vector<16x16xf32>
    %274 = arith.addf %269, %273 : vector<16x16xf32>
    %275 = vector.broadcast %257 : vector<1x16xf32> to vector<16x16xf32>
    %276 = arith.mulf %274, %275 : vector<16x16xf32>
    %277 = vector.broadcast %258 : vector<1x16xf32> to vector<16x16xf32>
    %278 = arith.addf %276, %277 : vector<16x16xf32>
    %cst_197 = arith.constant 0.000000e+00 : f32
    %279 = vector.broadcast %cst_197 : f32 to vector<16x16xf32>
    %280 = arith.maximumf %278, %279 : vector<16x16xf32>
    %c0_198 = arith.constant 0 : index
    %c0_199 = arith.constant 0 : index
    %281 = vector.load %arg36[%c0_198, %c0_199] : memref<1x16xf32, #tpu.memory_space<vmem>>, vector<1x16xf32>
    %c0_200 = arith.constant 0 : index
    %c0_201 = arith.constant 0 : index
    %282 = vector.load %arg37[%c0_200, %c0_201] : memref<1x16xf32, #tpu.memory_space<vmem>>, vector<1x16xf32>
    %283 = arith.truncf %280 : vector<16x16xf32> to vector<16x16xbf16>
    %cst_202 = arith.constant dense<0.000000e+00> : vector<32x16xf32>
    %284 = tpu.matmul %20, %283, %cst_202 {dimension_numbers = #tpu.dot_dimension_numbers<[1], [0], [0], [1], [0, 0, 1, 1], [], []>} : vector<32x16xbf16>, vector<16x16xbf16>, vector<32x16xf32> -> vector<32x16xf32>
    %285 = arith.truncf %284 : vector<32x16xf32> to vector<32x16xbf16>
    %286 = vector.extract_strided_slice %285 {offsets = [0, 0], sizes = [16, 16], strides = [1, 1]} : vector<32x16xbf16> to vector<16x16xbf16>
    %c0_203 = arith.constant 0 : index
    %c0_204 = arith.constant 0 : index
    %c0_205 = arith.constant 0 : index
    %287 = vector.load %arg35[%c0_203, %c0_204, %c0_205] : memref<3x16x16xbf16, #tpu.memory_space<vmem>>, vector<1x16x16xbf16>
    %288 = vector.shape_cast %287 : vector<1x16x16xbf16> to vector<16x16xbf16>
    %cst_206 = arith.constant dense<0.000000e+00> : vector<16x16xf32>
    %289 = tpu.matmul %286, %288, %cst_206 {dimension_numbers = #tpu.dot_dimension_numbers<[1], [0], [0], [1], [0, 0, 1, 1], [], []>} : vector<16x16xbf16>, vector<16x16xbf16>, vector<16x16xf32> -> vector<16x16xf32>
    %c1_207 = arith.constant 1 : index
    %c0_208 = arith.constant 0 : index
    %c0_209 = arith.constant 0 : index
    %290 = vector.load %arg35[%c1_207, %c0_208, %c0_209] : memref<3x16x16xbf16, #tpu.memory_space<vmem>>, vector<1x16x16xbf16>
    %291 = vector.shape_cast %290 : vector<1x16x16xbf16> to vector<16x16xbf16>
    %cst_210 = arith.constant dense<0.000000e+00> : vector<16x16xf32>
    %292 = tpu.matmul %283, %291, %cst_210 {dimension_numbers = #tpu.dot_dimension_numbers<[1], [0], [0], [1], [0, 0, 1, 1], [], []>} : vector<16x16xbf16>, vector<16x16xbf16>, vector<16x16xf32> -> vector<16x16xf32>
    %293 = arith.addf %289, %292 : vector<16x16xf32>
    %294 = vector.extract_strided_slice %285 {offsets = [16, 0], sizes = [16, 16], strides = [1, 1]} : vector<32x16xbf16> to vector<16x16xbf16>
    %c2_211 = arith.constant 2 : index
    %c0_212 = arith.constant 0 : index
    %c0_213 = arith.constant 0 : index
    %295 = vector.load %arg35[%c2_211, %c0_212, %c0_213] : memref<3x16x16xbf16, #tpu.memory_space<vmem>>, vector<1x16x16xbf16>
    %296 = vector.shape_cast %295 : vector<1x16x16xbf16> to vector<16x16xbf16>
    %cst_214 = arith.constant dense<0.000000e+00> : vector<16x16xf32>
    %297 = tpu.matmul %294, %296, %cst_214 {dimension_numbers = #tpu.dot_dimension_numbers<[1], [0], [0], [1], [0, 0, 1, 1], [], []>} : vector<16x16xbf16>, vector<16x16xbf16>, vector<16x16xf32> -> vector<16x16xf32>
    %298 = arith.addf %293, %297 : vector<16x16xf32>
    %299 = vector.broadcast %281 : vector<1x16xf32> to vector<16x16xf32>
    %300 = arith.mulf %298, %299 : vector<16x16xf32>
    %301 = vector.broadcast %282 : vector<1x16xf32> to vector<16x16xf32>
    %302 = arith.addf %300, %301 : vector<16x16xf32>
    %c0_215 = arith.constant 0 : index
    %c0_216 = arith.constant 0 : index
    %303 = vector.load %arg39[%c0_215, %c0_216] : memref<1x8xf32, #tpu.memory_space<vmem>>, vector<1x8xf32>
    %c0_217 = arith.constant 0 : index
    %c0_218 = arith.constant 0 : index
    %304 = vector.load %arg40[%c0_217, %c0_218] : memref<1x8xf32, #tpu.memory_space<vmem>>, vector<1x8xf32>
    %305 = arith.truncf %302 : vector<16x16xf32> to vector<16x16xbf16>
    %cst_219 = arith.constant dense<0.000000e+00> : vector<32x16xf32>
    %306 = tpu.matmul %20, %305, %cst_219 {dimension_numbers = #tpu.dot_dimension_numbers<[1], [0], [0], [1], [0, 0, 1, 1], [], []>} : vector<32x16xbf16>, vector<16x16xbf16>, vector<32x16xf32> -> vector<32x16xf32>
    %307 = arith.truncf %306 : vector<32x16xf32> to vector<32x16xbf16>
    %308 = vector.extract_strided_slice %307 {offsets = [0, 0], sizes = [16, 16], strides = [1, 1]} : vector<32x16xbf16> to vector<16x16xbf16>
    %c0_220 = arith.constant 0 : index
    %c0_221 = arith.constant 0 : index
    %c0_222 = arith.constant 0 : index
    %309 = vector.load %arg38[%c0_220, %c0_221, %c0_222] : memref<3x16x8xbf16, #tpu.memory_space<vmem>>, vector<1x16x8xbf16>
    %310 = vector.shape_cast %309 : vector<1x16x8xbf16> to vector<16x8xbf16>
    %cst_223 = arith.constant dense<0.000000e+00> : vector<16x8xf32>
    %311 = tpu.matmul %308, %310, %cst_223 {dimension_numbers = #tpu.dot_dimension_numbers<[1], [0], [0], [1], [0, 0, 1, 1], [], []>} : vector<16x16xbf16>, vector<16x8xbf16>, vector<16x8xf32> -> vector<16x8xf32>
    %c1_224 = arith.constant 1 : index
    %c0_225 = arith.constant 0 : index
    %c0_226 = arith.constant 0 : index
    %312 = vector.load %arg38[%c1_224, %c0_225, %c0_226] : memref<3x16x8xbf16, #tpu.memory_space<vmem>>, vector<1x16x8xbf16>
    %313 = vector.shape_cast %312 : vector<1x16x8xbf16> to vector<16x8xbf16>
    %cst_227 = arith.constant dense<0.000000e+00> : vector<16x8xf32>
    %314 = tpu.matmul %305, %313, %cst_227 {dimension_numbers = #tpu.dot_dimension_numbers<[1], [0], [0], [1], [0, 0, 1, 1], [], []>} : vector<16x16xbf16>, vector<16x8xbf16>, vector<16x8xf32> -> vector<16x8xf32>
    %315 = arith.addf %311, %314 : vector<16x8xf32>
    %316 = vector.extract_strided_slice %307 {offsets = [16, 0], sizes = [16, 16], strides = [1, 1]} : vector<32x16xbf16> to vector<16x16xbf16>
    %c2_228 = arith.constant 2 : index
    %c0_229 = arith.constant 0 : index
    %c0_230 = arith.constant 0 : index
    %317 = vector.load %arg38[%c2_228, %c0_229, %c0_230] : memref<3x16x8xbf16, #tpu.memory_space<vmem>>, vector<1x16x8xbf16>
    %318 = vector.shape_cast %317 : vector<1x16x8xbf16> to vector<16x8xbf16>
    %cst_231 = arith.constant dense<0.000000e+00> : vector<16x8xf32>
    %319 = tpu.matmul %316, %318, %cst_231 {dimension_numbers = #tpu.dot_dimension_numbers<[1], [0], [0], [1], [0, 0, 1, 1], [], []>} : vector<16x16xbf16>, vector<16x8xbf16>, vector<16x8xf32> -> vector<16x8xf32>
    %320 = arith.addf %315, %319 : vector<16x8xf32>
    %321 = vector.broadcast %303 : vector<1x8xf32> to vector<16x8xf32>
    %322 = arith.mulf %320, %321 : vector<16x8xf32>
    %323 = vector.broadcast %304 : vector<1x8xf32> to vector<16x8xf32>
    %324 = arith.addf %322, %323 : vector<16x8xf32>
    %cst_232 = arith.constant 0.000000e+00 : f32
    %325 = vector.broadcast %cst_232 : f32 to vector<16x8xf32>
    %326 = arith.maximumf %324, %325 : vector<16x8xf32>
    %c0_233 = arith.constant 0 : index
    %c0_234 = arith.constant 0 : index
    %327 = vector.load %arg42[%c0_233, %c0_234] : memref<1x8xf32, #tpu.memory_space<vmem>>, vector<1x8xf32>
    %c0_235 = arith.constant 0 : index
    %c0_236 = arith.constant 0 : index
    %328 = vector.load %arg43[%c0_235, %c0_236] : memref<1x8xf32, #tpu.memory_space<vmem>>, vector<1x8xf32>
    %329 = arith.truncf %326 : vector<16x8xf32> to vector<16x8xbf16>
    %cst_237 = arith.constant dense<0.000000e+00> : vector<32x8xf32>
    %330 = tpu.matmul %20, %329, %cst_237 {dimension_numbers = #tpu.dot_dimension_numbers<[1], [0], [0], [1], [0, 0, 1, 1], [], []>} : vector<32x16xbf16>, vector<16x8xbf16>, vector<32x8xf32> -> vector<32x8xf32>
    %331 = arith.truncf %330 : vector<32x8xf32> to vector<32x8xbf16>
    %332 = vector.extract_strided_slice %331 {offsets = [0, 0], sizes = [16, 8], strides = [1, 1]} : vector<32x8xbf16> to vector<16x8xbf16>
    %c0_238 = arith.constant 0 : index
    %c0_239 = arith.constant 0 : index
    %c0_240 = arith.constant 0 : index
    %333 = vector.load %arg41[%c0_238, %c0_239, %c0_240] : memref<3x8x8xbf16, #tpu.memory_space<vmem>>, vector<1x8x8xbf16>
    %334 = vector.shape_cast %333 : vector<1x8x8xbf16> to vector<8x8xbf16>
    %cst_241 = arith.constant dense<0.000000e+00> : vector<16x8xf32>
    %335 = tpu.matmul %332, %334, %cst_241 {dimension_numbers = #tpu.dot_dimension_numbers<[1], [0], [0], [1], [0, 0, 1, 1], [], []>} : vector<16x8xbf16>, vector<8x8xbf16>, vector<16x8xf32> -> vector<16x8xf32>
    %c1_242 = arith.constant 1 : index
    %c0_243 = arith.constant 0 : index
    %c0_244 = arith.constant 0 : index
    %336 = vector.load %arg41[%c1_242, %c0_243, %c0_244] : memref<3x8x8xbf16, #tpu.memory_space<vmem>>, vector<1x8x8xbf16>
    %337 = vector.shape_cast %336 : vector<1x8x8xbf16> to vector<8x8xbf16>
    %cst_245 = arith.constant dense<0.000000e+00> : vector<16x8xf32>
    %338 = tpu.matmul %329, %337, %cst_245 {dimension_numbers = #tpu.dot_dimension_numbers<[1], [0], [0], [1], [0, 0, 1, 1], [], []>} : vector<16x8xbf16>, vector<8x8xbf16>, vector<16x8xf32> -> vector<16x8xf32>
    %339 = arith.addf %335, %338 : vector<16x8xf32>
    %340 = vector.extract_strided_slice %331 {offsets = [16, 0], sizes = [16, 8], strides = [1, 1]} : vector<32x8xbf16> to vector<16x8xbf16>
    %c2_246 = arith.constant 2 : index
    %c0_247 = arith.constant 0 : index
    %c0_248 = arith.constant 0 : index
    %341 = vector.load %arg41[%c2_246, %c0_247, %c0_248] : memref<3x8x8xbf16, #tpu.memory_space<vmem>>, vector<1x8x8xbf16>
    %342 = vector.shape_cast %341 : vector<1x8x8xbf16> to vector<8x8xbf16>
    %cst_249 = arith.constant dense<0.000000e+00> : vector<16x8xf32>
    %343 = tpu.matmul %340, %342, %cst_249 {dimension_numbers = #tpu.dot_dimension_numbers<[1], [0], [0], [1], [0, 0, 1, 1], [], []>} : vector<16x8xbf16>, vector<8x8xbf16>, vector<16x8xf32> -> vector<16x8xf32>
    %344 = arith.addf %339, %343 : vector<16x8xf32>
    %345 = vector.broadcast %327 : vector<1x8xf32> to vector<16x8xf32>
    %346 = arith.mulf %344, %345 : vector<16x8xf32>
    %347 = vector.broadcast %328 : vector<1x8xf32> to vector<16x8xf32>
    %348 = arith.addf %346, %347 : vector<16x8xf32>
    %c0_250 = arith.constant 0 : index
    %c0_251 = arith.constant 0 : index
    %349 = vector.load %arg45[%c0_250, %c0_251] : memref<1x4xf32, #tpu.memory_space<vmem>>, vector<1x4xf32>
    %c0_252 = arith.constant 0 : index
    %c0_253 = arith.constant 0 : index
    %350 = vector.load %arg46[%c0_252, %c0_253] : memref<1x4xf32, #tpu.memory_space<vmem>>, vector<1x4xf32>
    %351 = arith.truncf %348 : vector<16x8xf32> to vector<16x8xbf16>
    %cst_254 = arith.constant dense<0.000000e+00> : vector<32x8xf32>
    %352 = tpu.matmul %20, %351, %cst_254 {dimension_numbers = #tpu.dot_dimension_numbers<[1], [0], [0], [1], [0, 0, 1, 1], [], []>} : vector<32x16xbf16>, vector<16x8xbf16>, vector<32x8xf32> -> vector<32x8xf32>
    %353 = arith.truncf %352 : vector<32x8xf32> to vector<32x8xbf16>
    %354 = vector.extract_strided_slice %353 {offsets = [0, 0], sizes = [16, 8], strides = [1, 1]} : vector<32x8xbf16> to vector<16x8xbf16>
    %c0_255 = arith.constant 0 : index
    %c0_256 = arith.constant 0 : index
    %c0_257 = arith.constant 0 : index
    %355 = vector.load %arg44[%c0_255, %c0_256, %c0_257] : memref<3x8x4xbf16, #tpu.memory_space<vmem>>, vector<1x8x4xbf16>
    %356 = vector.shape_cast %355 : vector<1x8x4xbf16> to vector<8x4xbf16>
    %cst_258 = arith.constant dense<0.000000e+00> : vector<16x4xf32>
    %357 = tpu.matmul %354, %356, %cst_258 {dimension_numbers = #tpu.dot_dimension_numbers<[1], [0], [0], [1], [0, 0, 1, 1], [], []>} : vector<16x8xbf16>, vector<8x4xbf16>, vector<16x4xf32> -> vector<16x4xf32>
    %c1_259 = arith.constant 1 : index
    %c0_260 = arith.constant 0 : index
    %c0_261 = arith.constant 0 : index
    %358 = vector.load %arg44[%c1_259, %c0_260, %c0_261] : memref<3x8x4xbf16, #tpu.memory_space<vmem>>, vector<1x8x4xbf16>
    %359 = vector.shape_cast %358 : vector<1x8x4xbf16> to vector<8x4xbf16>
    %cst_262 = arith.constant dense<0.000000e+00> : vector<16x4xf32>
    %360 = tpu.matmul %351, %359, %cst_262 {dimension_numbers = #tpu.dot_dimension_numbers<[1], [0], [0], [1], [0, 0, 1, 1], [], []>} : vector<16x8xbf16>, vector<8x4xbf16>, vector<16x4xf32> -> vector<16x4xf32>
    %361 = arith.addf %357, %360 : vector<16x4xf32>
    %362 = vector.extract_strided_slice %353 {offsets = [16, 0], sizes = [16, 8], strides = [1, 1]} : vector<32x8xbf16> to vector<16x8xbf16>
    %c2_263 = arith.constant 2 : index
    %c0_264 = arith.constant 0 : index
    %c0_265 = arith.constant 0 : index
    %363 = vector.load %arg44[%c2_263, %c0_264, %c0_265] : memref<3x8x4xbf16, #tpu.memory_space<vmem>>, vector<1x8x4xbf16>
    %364 = vector.shape_cast %363 : vector<1x8x4xbf16> to vector<8x4xbf16>
    %cst_266 = arith.constant dense<0.000000e+00> : vector<16x4xf32>
    %365 = tpu.matmul %362, %364, %cst_266 {dimension_numbers = #tpu.dot_dimension_numbers<[1], [0], [0], [1], [0, 0, 1, 1], [], []>} : vector<16x8xbf16>, vector<8x4xbf16>, vector<16x4xf32> -> vector<16x4xf32>
    %366 = arith.addf %361, %365 : vector<16x4xf32>
    %367 = vector.broadcast %349 : vector<1x4xf32> to vector<16x4xf32>
    %368 = arith.mulf %366, %367 : vector<16x4xf32>
    %369 = vector.broadcast %350 : vector<1x4xf32> to vector<16x4xf32>
    %370 = arith.addf %368, %369 : vector<16x4xf32>
    %cst_267 = arith.constant 0.000000e+00 : f32
    %371 = vector.broadcast %cst_267 : f32 to vector<16x4xf32>
    %372 = arith.maximumf %370, %371 : vector<16x4xf32>
    %c0_268 = arith.constant 0 : index
    %c0_269 = arith.constant 0 : index
    %373 = vector.load %arg48[%c0_268, %c0_269] : memref<1x4xf32, #tpu.memory_space<vmem>>, vector<1x4xf32>
    %c0_270 = arith.constant 0 : index
    %c0_271 = arith.constant 0 : index
    %374 = vector.load %arg49[%c0_270, %c0_271] : memref<1x4xf32, #tpu.memory_space<vmem>>, vector<1x4xf32>
    %375 = arith.truncf %372 : vector<16x4xf32> to vector<16x4xbf16>
    %cst_272 = arith.constant dense<0.000000e+00> : vector<32x4xf32>
    %376 = tpu.matmul %20, %375, %cst_272 {dimension_numbers = #tpu.dot_dimension_numbers<[1], [0], [0], [1], [0, 0, 1, 1], [], []>} : vector<32x16xbf16>, vector<16x4xbf16>, vector<32x4xf32> -> vector<32x4xf32>
    %377 = arith.truncf %376 : vector<32x4xf32> to vector<32x4xbf16>
    %378 = vector.extract_strided_slice %377 {offsets = [0, 0], sizes = [16, 4], strides = [1, 1]} : vector<32x4xbf16> to vector<16x4xbf16>
    %c0_273 = arith.constant 0 : index
    %c0_274 = arith.constant 0 : index
    %c0_275 = arith.constant 0 : index
    %379 = vector.load %arg47[%c0_273, %c0_274, %c0_275] : memref<3x4x4xbf16, #tpu.memory_space<vmem>>, vector<1x4x4xbf16>
    %380 = vector.shape_cast %379 : vector<1x4x4xbf16> to vector<4x4xbf16>
    %cst_276 = arith.constant dense<0.000000e+00> : vector<16x4xf32>
    %381 = tpu.matmul %378, %380, %cst_276 {dimension_numbers = #tpu.dot_dimension_numbers<[1], [0], [0], [1], [0, 0, 1, 1], [], []>} : vector<16x4xbf16>, vector<4x4xbf16>, vector<16x4xf32> -> vector<16x4xf32>
    %c1_277 = arith.constant 1 : index
    %c0_278 = arith.constant 0 : index
    %c0_279 = arith.constant 0 : index
    %382 = vector.load %arg47[%c1_277, %c0_278, %c0_279] : memref<3x4x4xbf16, #tpu.memory_space<vmem>>, vector<1x4x4xbf16>
    %383 = vector.shape_cast %382 : vector<1x4x4xbf16> to vector<4x4xbf16>
    %cst_280 = arith.constant dense<0.000000e+00> : vector<16x4xf32>
    %384 = tpu.matmul %375, %383, %cst_280 {dimension_numbers = #tpu.dot_dimension_numbers<[1], [0], [0], [1], [0, 0, 1, 1], [], []>} : vector<16x4xbf16>, vector<4x4xbf16>, vector<16x4xf32> -> vector<16x4xf32>
    %385 = arith.addf %381, %384 : vector<16x4xf32>
    %386 = vector.extract_strided_slice %377 {offsets = [16, 0], sizes = [16, 4], strides = [1, 1]} : vector<32x4xbf16> to vector<16x4xbf16>
    %c2_281 = arith.constant 2 : index
    %c0_282 = arith.constant 0 : index
    %c0_283 = arith.constant 0 : index
    %387 = vector.load %arg47[%c2_281, %c0_282, %c0_283] : memref<3x4x4xbf16, #tpu.memory_space<vmem>>, vector<1x4x4xbf16>
    %388 = vector.shape_cast %387 : vector<1x4x4xbf16> to vector<4x4xbf16>
    %cst_284 = arith.constant dense<0.000000e+00> : vector<16x4xf32>
    %389 = tpu.matmul %386, %388, %cst_284 {dimension_numbers = #tpu.dot_dimension_numbers<[1], [0], [0], [1], [0, 0, 1, 1], [], []>} : vector<16x4xbf16>, vector<4x4xbf16>, vector<16x4xf32> -> vector<16x4xf32>
    %390 = arith.addf %385, %389 : vector<16x4xf32>
    %391 = vector.broadcast %373 : vector<1x4xf32> to vector<16x4xf32>
    %392 = arith.mulf %390, %391 : vector<16x4xf32>
    %393 = vector.broadcast %374 : vector<1x4xf32> to vector<16x4xf32>
    %394 = arith.addf %392, %393 : vector<16x4xf32>
    %c0_285 = arith.constant 0 : index
    %c0_286 = arith.constant 0 : index
    %c0_287 = arith.constant 0 : index
    %395 = vector.load %arg50[%c0_285, %c0_286, %c0_287] : memref<1x16x4xf32, #tpu.memory_space<vmem>>, vector<1x16x4xf32>
    %396 = vector.shape_cast %395 : vector<1x16x4xf32> to vector<16x4xf32>
    %397 = vector.shape_cast %394 : vector<16x4xf32> to vector<1x16x4xf32>
    tpu.vector_store %arg50[%c0_285, %c0_286, %c0_287], %397 {strides = array<i32>} : memref<1x16x4xf32, #tpu.memory_space<vmem>>, vector<1x16x4xf32>,
    return
  }
  func.func @transform_0(%arg0: i32) -> (i32, i32, i32) {
    %c0_i32 = arith.constant 0 : i32
    %c0_i32_0 = arith.constant 0 : i32
    %c0_i32_1 = arith.constant 0 : i32
    return %arg0, %c0_i32, %c0_i32_0 : i32, i32, i32
  }
  func.func @transform_1(%arg0: i32) -> (i32, i32, i32) {
    %c0_i32 = arith.constant 0 : i32
    %c0_i32_0 = arith.constant 0 : i32
    %c0_i32_1 = arith.constant 0 : i32
    %c0_i32_2 = arith.constant 0 : i32
    return %c0_i32, %c0_i32_0, %c0_i32_1 : i32, i32, i32
  }
  func.func @transform_2(%arg0: i32) -> (i32, i32) {
    %c0_i32 = arith.constant 0 : i32
    %c0_i32_0 = arith.constant 0 : i32
    %c0_i32_1 = arith.constant 0 : i32
    return %c0_i32, %c0_i32_0 : i32, i32
  }
  func.func @transform_3(%arg0: i32) -> (i32, i32) {
    %c0_i32 = arith.constant 0 : i32
    %c0_i32_0 = arith.constant 0 : i32
    %c0_i32_1 = arith.constant 0 : i32
    return %c0_i32, %c0_i32_0 : i32, i32
  }
  func.func @transform_4(%arg0: i32) -> (i32, i32, i32) {
    %c0_i32 = arith.constant 0 : i32
    %c0_i32_0 = arith.constant 0 : i32
    %c0_i32_1 = arith.constant 0 : i32
    %c0_i32_2 = arith.constant 0 : i32
    return %c0_i32, %c0_i32_0, %c0_i32_1 : i32, i32, i32
  }
  func.func @transform_5(%arg0: i32) -> (i32, i32) {
    %c0_i32 = arith.constant 0 : i32
    %c0_i32_0 = arith.constant 0 : i32
    %c0_i32_1 = arith.constant 0 : i32
    return %c0_i32, %c0_i32_0 : i32, i32
  }
  func.func @transform_6(%arg0: i32) -> (i32, i32) {
    %c0_i32 = arith.constant 0 : i32
    %c0_i32_0 = arith.constant 0 : i32
    %c0_i32_1 = arith.constant 0 : i32
    return %c0_i32, %c0_i32_0 : i32, i32
  }
  func.func @transform_7(%arg0: i32) -> (i32, i32, i32) {
    %c0_i32 = arith.constant 0 : i32
    %c0_i32_0 = arith.constant 0 : i32
    %c0_i32_1 = arith.constant 0 : i32
    %c0_i32_2 = arith.constant 0 : i32
    return %c0_i32, %c0_i32_0, %c0_i32_1 : i32, i32, i32
  }
  func.func @transform_8(%arg0: i32) -> (i32, i32) {
    %c0_i32 = arith.constant 0 : i32
    %c0_i32_0 = arith.constant 0 : i32
    %c0_i32_1 = arith.constant 0 : i32
    return %c0_i32, %c0_i32_0 : i32, i32
  }
  func.func @transform_9(%arg0: i32) -> (i32, i32) {
    %c0_i32 = arith.constant 0 : i32
    %c0_i32_0 = arith.constant 0 : i32
    %c0_i32_1 = arith.constant 0 : i32
    return %c0_i32, %c0_i32_0 : i32, i32
  }
  func.func @transform_10(%arg0: i32) -> (i32, i32, i32) {
    %c0_i32 = arith.constant 0 : i32
    %c0_i32_0 = arith.constant 0 : i32
    %c0_i32_1 = arith.constant 0 : i32
    %c0_i32_2 = arith.constant 0 : i32
    return %c0_i32, %c0_i32_0, %c0_i32_1 : i32, i32, i32
  }
  func.func @transform_11(%arg0: i32) -> (i32, i32) {
    %c0_i32 = arith.constant 0 : i32
    %c0_i32_0 = arith.constant 0 : i32
    %c0_i32_1 = arith.constant 0 : i32
    return %c0_i32, %c0_i32_0 : i32, i32
  }
  func.func @transform_12(%arg0: i32) -> (i32, i32) {
    %c0_i32 = arith.constant 0 : i32
    %c0_i32_0 = arith.constant 0 : i32
    %c0_i32_1 = arith.constant 0 : i32
    return %c0_i32, %c0_i32_0 : i32, i32
  }
  func.func @transform_13(%arg0: i32) -> (i32, i32, i32) {
    %c0_i32 = arith.constant 0 : i32
    %c0_i32_0 = arith.constant 0 : i32
    %c0_i32_1 = arith.constant 0 : i32
    %c0_i32_2 = arith.constant 0 : i32
    return %c0_i32, %c0_i32_0, %c0_i32_1 : i32, i32, i32
  }
  func.func @transform_14(%arg0: i32) -> (i32, i32) {
    %c0_i32 = arith.constant 0 : i32
    %c0_i32_0 = arith.constant 0 : i32
    %c0_i32_1 = arith.constant 0 : i32
    return %c0_i32, %c0_i32_0 : i32, i32
  }
  func.func @transform_15(%arg0: i32) -> (i32, i32) {
    %c0_i32 = arith.constant 0 : i32
    %c0_i32_0 = arith.constant 0 : i32
    %c0_i32_1 = arith.constant 0 : i32
    return %c0_i32, %c0_i32_0 : i32, i32
  }
  func.func @transform_16(%arg0: i32) -> (i32, i32, i32) {
    %c0_i32 = arith.constant 0 : i32
    %c0_i32_0 = arith.constant 0 : i32
    %c0_i32_1 = arith.constant 0 : i32
    %c0_i32_2 = arith.constant 0 : i32
    return %c0_i32, %c0_i32_0, %c0_i32_1 : i32, i32, i32
  }
  func.func @transform_17(%arg0: i32) -> (i32, i32) {
    %c0_i32 = arith.constant 0 : i32
    %c0_i32_0 = arith.constant 0 : i32
    %c0_i32_1 = arith.constant 0 : i32
    return %c0_i32, %c0_i32_0 : i32, i32
  }
  func.func @transform_18(%arg0: i32) -> (i32, i32) {
    %c0_i32 = arith.constant 0 : i32
    %c0_i32_0 = arith.constant 0 : i32
    %c0_i32_1 = arith.constant 0 : i32
    return %c0_i32, %c0_i32_0 : i32, i32
  }
  func.func @transform_19(%arg0: i32) -> (i32, i32, i32) {
    %c0_i32 = arith.constant 0 : i32
    %c0_i32_0 = arith.constant 0 : i32
    %c0_i32_1 = arith.constant 0 : i32
    %c0_i32_2 = arith.constant 0 : i32
    return %c0_i32, %c0_i32_0, %c0_i32_1 : i32, i32, i32
  }
  func.func @transform_20(%arg0: i32) -> (i32, i32) {
    %c0_i32 = arith.constant 0 : i32
    %c0_i32_0 = arith.constant 0 : i32
    %c0_i32_1 = arith.constant 0 : i32
    return %c0_i32, %c0_i32_0 : i32, i32
  }
  func.func @transform_21(%arg0: i32) -> (i32, i32) {
    %c0_i32 = arith.constant 0 : i32
    %c0_i32_0 = arith.constant 0 : i32
    %c0_i32_1 = arith.constant 0 : i32
    return %c0_i32, %c0_i32_0 : i32, i32
  }
  func.func @transform_22(%arg0: i32) -> (i32, i32, i32) {
    %c0_i32 = arith.constant 0 : i32
    %c0_i32_0 = arith.constant 0 : i32
    %c0_i32_1 = arith.constant 0 : i32
    %c0_i32_2 = arith.constant 0 : i32
    return %c0_i32, %c0_i32_0, %c0_i32_1 : i32, i32, i32
  }
  func.func @transform_23(%arg0: i32) -> (i32, i32) {
    %c0_i32 = arith.constant 0 : i32
    %c0_i32_0 = arith.constant 0 : i32
    %c0_i32_1 = arith.constant 0 : i32
    return %c0_i32, %c0_i32_0 : i32, i32
  }
  func.func @transform_24(%arg0: i32) -> (i32, i32) {
    %c0_i32 = arith.constant 0 : i32
    %c0_i32_0 = arith.constant 0 : i32
    %c0_i32_1 = arith.constant 0 : i32
    return %c0_i32, %c0_i32_0 : i32, i32
  }
  func.func @transform_25(%arg0: i32) -> (i32, i32, i32) {
    %c0_i32 = arith.constant 0 : i32
    %c0_i32_0 = arith.constant 0 : i32
    %c0_i32_1 = arith.constant 0 : i32
    %c0_i32_2 = arith.constant 0 : i32
    return %c0_i32, %c0_i32_0, %c0_i32_1 : i32, i32, i32
  }
  func.func @transform_26(%arg0: i32) -> (i32, i32) {
    %c0_i32 = arith.constant 0 : i32
    %c0_i32_0 = arith.constant 0 : i32
    %c0_i32_1 = arith.constant 0 : i32
    return %c0_i32, %c0_i32_0 : i32, i32
  }
  func.func @transform_27(%arg0: i32) -> (i32, i32) {
    %c0_i32 = arith.constant 0 : i32
    %c0_i32_0 = arith.constant 0 : i32
    %c0_i32_1 = arith.constant 0 : i32
    return %c0_i32, %c0_i32_0 : i32, i32
  }
  func.func @transform_28(%arg0: i32) -> (i32, i32, i32) {
    %c0_i32 = arith.constant 0 : i32
    %c0_i32_0 = arith.constant 0 : i32
    %c0_i32_1 = arith.constant 0 : i32
    %c0_i32_2 = arith.constant 0 : i32
    return %c0_i32, %c0_i32_0, %c0_i32_1 : i32, i32, i32
  }
  func.func @transform_29(%arg0: i32) -> (i32, i32) {
    %c0_i32 = arith.constant 0 : i32
    %c0_i32_0 = arith.constant 0 : i32
    %c0_i32_1 = arith.constant 0 : i32
    return %c0_i32, %c0_i32_0 : i32, i32
  }
  func.func @transform_30(%arg0: i32) -> (i32, i32) {
    %c0_i32 = arith.constant 0 : i32
    %c0_i32_0 = arith.constant 0 : i32
    %c0_i32_1 = arith.constant 0 : i32
    return %c0_i32, %c0_i32_0 : i32, i32
  }
  func.func @transform_31(%arg0: i32) -> (i32, i32, i32) {
    %c0_i32 = arith.constant 0 : i32
    %c0_i32_0 = arith.constant 0 : i32
    %c0_i32_1 = arith.constant 0 : i32
    %c0_i32_2 = arith.constant 0 : i32
    return %c0_i32, %c0_i32_0, %c0_i32_1 : i32, i32, i32
  }
  func.func @transform_32(%arg0: i32) -> (i32, i32) {
    %c0_i32 = arith.constant 0 : i32
    %c0_i32_0 = arith.constant 0 : i32
    %c0_i32_1 = arith.constant 0 : i32
    return %c0_i32, %c0_i32_0 : i32, i32
  }
  func.func @transform_33(%arg0: i32) -> (i32, i32) {
    %c0_i32 = arith.constant 0 : i32
    %c0_i32_0 = arith.constant 0 : i32
    %c0_i32_1 = arith.constant 0 : i32
    return %c0_i32, %c0_i32_0 : i32, i32
  }
  func.func @transform_34(%arg0: i32) -> (i32, i32, i32) {
    %c0_i32 = arith.constant 0 : i32
    %c0_i32_0 = arith.constant 0 : i32
    %c0_i32_1 = arith.constant 0 : i32
    %c0_i32_2 = arith.constant 0 : i32
    return %c0_i32, %c0_i32_0, %c0_i32_1 : i32, i32, i32
  }
  func.func @transform_35(%arg0: i32) -> (i32, i32) {
    %c0_i32 = arith.constant 0 : i32
    %c0_i32_0 = arith.constant 0 : i32
    %c0_i32_1 = arith.constant 0 : i32
    return %c0_i32, %c0_i32_0 : i32, i32
  }
  func.func @transform_36(%arg0: i32) -> (i32, i32) {
    %c0_i32 = arith.constant 0 : i32
    %c0_i32_0 = arith.constant 0 : i32
    %c0_i32_1 = arith.constant 0 : i32
    return %c0_i32, %c0_i32_0 : i32, i32
  }
  func.func @transform_37(%arg0: i32) -> (i32, i32, i32) {
    %c0_i32 = arith.constant 0 : i32
    %c0_i32_0 = arith.constant 0 : i32
    %c0_i32_1 = arith.constant 0 : i32
    %c0_i32_2 = arith.constant 0 : i32
    return %c0_i32, %c0_i32_0, %c0_i32_1 : i32, i32, i32
  }
  func.func @transform_38(%arg0: i32) -> (i32, i32) {
    %c0_i32 = arith.constant 0 : i32
    %c0_i32_0 = arith.constant 0 : i32
    %c0_i32_1 = arith.constant 0 : i32
    return %c0_i32, %c0_i32_0 : i32, i32
  }
  func.func @transform_39(%arg0: i32) -> (i32, i32) {
    %c0_i32 = arith.constant 0 : i32
    %c0_i32_0 = arith.constant 0 : i32
    %c0_i32_1 = arith.constant 0 : i32
    return %c0_i32, %c0_i32_0 : i32, i32
  }
  func.func @transform_40(%arg0: i32) -> (i32, i32, i32) {
    %c0_i32 = arith.constant 0 : i32
    %c0_i32_0 = arith.constant 0 : i32
    %c0_i32_1 = arith.constant 0 : i32
    %c0_i32_2 = arith.constant 0 : i32
    return %c0_i32, %c0_i32_0, %c0_i32_1 : i32, i32, i32
  }
  func.func @transform_41(%arg0: i32) -> (i32, i32) {
    %c0_i32 = arith.constant 0 : i32
    %c0_i32_0 = arith.constant 0 : i32
    %c0_i32_1 = arith.constant 0 : i32
    return %c0_i32, %c0_i32_0 : i32, i32
  }
  func.func @transform_42(%arg0: i32) -> (i32, i32) {
    %c0_i32 = arith.constant 0 : i32
    %c0_i32_0 = arith.constant 0 : i32
    %c0_i32_1 = arith.constant 0 : i32
    return %c0_i32, %c0_i32_0 : i32, i32
  }
  func.func @transform_43(%arg0: i32) -> (i32, i32, i32) {
    %c0_i32 = arith.constant 0 : i32
    %c0_i32_0 = arith.constant 0 : i32
    %c0_i32_1 = arith.constant 0 : i32
    %c0_i32_2 = arith.constant 0 : i32
    return %c0_i32, %c0_i32_0, %c0_i32_1 : i32, i32, i32
  }
  func.func @transform_44(%arg0: i32) -> (i32, i32) {
    %c0_i32 = arith.constant 0 : i32
    %c0_i32_0 = arith.constant 0 : i32
    %c0_i32_1 = arith.constant 0 : i32
    return %c0_i32, %c0_i32_0 : i32, i32
  }
  func.func @transform_45(%arg0: i32) -> (i32, i32) {
    %c0_i32 = arith.constant 0 : i32
    %c0_i32_0 = arith.constant 0 : i32
    %c0_i32_1 = arith.constant 0 : i32
    return %c0_i32, %c0_i32_0 : i32, i32
  }
  func.func @transform_46(%arg0: i32) -> (i32, i32, i32) {
    %c0_i32 = arith.constant 0 : i32
    %c0_i32_0 = arith.constant 0 : i32
    %c0_i32_1 = arith.constant 0 : i32
    %c0_i32_2 = arith.constant 0 : i32
    return %c0_i32, %c0_i32_0, %c0_i32_1 : i32, i32, i32
  }
  func.func @transform_47(%arg0: i32) -> (i32, i32) {
    %c0_i32 = arith.constant 0 : i32
    %c0_i32_0 = arith.constant 0 : i32
    %c0_i32_1 = arith.constant 0 : i32
    return %c0_i32, %c0_i32_0 : i32, i32
  }
  func.func @transform_48(%arg0: i32) -> (i32, i32) {
    %c0_i32 = arith.constant 0 : i32
    %c0_i32_0 = arith.constant 0 : i32
    %c0_i32_1 = arith.constant 0 : i32
    return %c0_i32, %c0_i32_0 : i32, i32
  }
  func.func @transform_49(%arg0: i32) -> (i32, i32, i32) {
    %c0_i32 = arith.constant 0 : i32
    %c0_i32_0 = arith.constant 0 : i32
    %c0_i32_1 = arith.constant 0 : i32
    return %arg0, %c0_i32, %c0_i32_0 : i32, i32, i32
  }
}

</mosaic_0001>

<bundles_post_ra>
// kernel: tpu_custom_call.1
= control target key start
LH: loop header
LB: loop body
LE: loop exit
PB: predicated region body
PF: predicated region fallthrough
CT: control target
= control target key end

     0   :  { %s8219_s6 = smov 1   ;;  %s8220_s10 = smov 2   ;;  %s9211_s0 = inlined_call_operand.smem [shape: u32[50], index: -1, kind: input, shape index: {}] }
   0x1   :  { %s8309_s5 = sld [smem:[%s9211_s0]]   ;;  %s8221_s14 = smov 3  }
   0x2   :  { %s8314_s9 = sld [smem:[%s9211_s0 + %s8219_s6]]   ;;  %s8222_s18 = smov 4  }
   0x3   :  { %s8319_s13 = sld [smem:[%s9211_s0 + %s8220_s10]]   ;;  %s8223_s22 = smov 5  }
   0x4   :  { %s8324_s17 = sld [smem:[%s9211_s0 + %s8221_s14]]   ;;  %s8224_s26 = smov 6  }
   0x5   :  { %s8329_s21 = sld [smem:[%s9211_s0 + %s8222_s18]]   ;;  %s8225_s30 = smov 7  }
   0x6   :  { %s8334_s25 = sld [smem:[%s9211_s0 + %s8223_s22]]   ;;  %s8226_s4 = smov 8  }
   0x7   :  { %9228 = sst [smem:[#allocation57_spill]] %s8309_s5  ;;  %s8227_s10 = smov 9  }
   0x8   :  { %s8339_s29 = sld [smem:[%s9211_s0 + %s8224_s26]]   ;;  %s8228_s15 = smov 10  }
   0x9   :  { %9229 = sst [smem:[#allocation58_spill]] %s8319_s13  ;;  %s8229_s20 = smov 11  }
   0xa   :  { %9230 = sst [smem:[#allocation59_spill]] %s8324_s17  ;;  %s8230_s26 = smov 12  }
   0xb   :  { %s8344_s3 = sld [smem:[%s9211_s0 + %s8225_s30]]   ;;  %s8231_s1 = smov 13  }
   0xc   :  { %9231 = sst [smem:[#allocation60_spill]] %s8334_s25  ;;  %s8232_s7 = smov 14  }
   0xd   :  { %s8349_s8 = sld [smem:[%s9211_s0 + %s8226_s4]]   ;;  %s8234_s22 = smov 16  }
   0xe   :  { %s8354_s14 = sld [smem:[%s9211_s0 + %s8227_s10]]   ;;  %s8235_s28 = smov 17  }
   0xf   :  { %s8359_s19 = sld [smem:[%s9211_s0 + %s8228_s15]]   ;;  %s8233_s15 = smov 15  }
  0x10   :  { %s8364_s24 = sld [smem:[%s9211_s0 + %s8229_s20]]  }
  0x11   :  { %9232 = sst [smem:[#allocation61_spill]] %s8344_s3 }
  0x12   :  { %s8369_s30 = sld [smem:[%s9211_s0 + %s8230_s26]]  }
  0x13   :  { %9233 = sst [smem:[#allocation62_spill]] %s8349_s8 }
  0x14   :  { %9234 = sst [smem:[#allocation63_spill]] %s8354_s14 }
  0x15   :  { %9235 = sst [smem:[#allocation64_spill]] %s8359_s19 }
  0x16   :  { %9236 = sst [smem:[#allocation65_spill]] %s8364_s24 }
  0x17   :  { %s8374_s6 = sld [smem:[%s9211_s0 + %s8231_s1]]  }
  0x18   :  { %s8379_s12 = sld [smem:[%s9211_s0 + %s8232_s7]]   ;;  %s8236_s7 = smov 18  }
  0x19   :  { %s8384_s20 = sld [smem:[%s9211_s0 + %s8233_s15]]   ;;  %s8237_s15 = smov 19  }
  0x1a   :  { %s8389_s27 = sld [smem:[%s9211_s0 + %s8234_s22]]   ;;  %s8238_s22 = smov 20  }
  0x1b   :  { %s8394_s4 = sld [smem:[%s9211_s0 + %s8235_s28]]   ;;  %s8239_s28 = smov 21  }
  0x1c   :  { %s8399_s5 = sld [smem:[%s9211_s0 + %s8236_s7]]   ;;  %s8240_s7 = smov 22  }
  0x1d   :  { %9237 = sst [smem:[#allocation66_spill]] %s8374_s6 }
  0x1e   :  { %s8414_s6 = sld [smem:[%s9211_s0 + %s8239_s28]]   ;;  %s8243_s28 = smov 25  }
  0x1f   :  { %9238 = sst [smem:[#allocation67_spill]] %s8384_s20 }
  0x20   :  { %9239 = sst [smem:[#allocation68_spill]] %s8389_s27 }
  0x21   :  { %9240 = sst [smem:[#allocation69_spill]] %s8394_s4 }
  0x22   :  { %9241 = sst [smem:[#allocation70_spill]] %s8399_s5 }
  0x23   :  { %s8404_s20 = sld [smem:[%s9211_s0 + %s8237_s15]]   ;;  %s8241_s15 = smov 23  }
  0x24   :  { %s8409_s27 = sld [smem:[%s9211_s0 + %s8238_s22]]   ;;  %s8242_s22 = smov 24  }
  0x25   :  { %9243 = sst [smem:[#allocation72_spill]] %s8414_s6 }
  0x26   :  { %s8419_s5 = sld [smem:[%s9211_s0 + %s8240_s7]]   ;;  %s8244_s7 = smov 26  }
  0x27   :  { %s8429_s24 = sld [smem:[%s9211_s0 + %s8242_s22]]   ;;  %s8246_s22 = smov 28  }
  0x28   :  { %s8434_s6 = sld [smem:[%s9211_s0 + %s8243_s28]]   ;;  %s8247_s28 = smov 29  }
  0x29   :  { %9242 = sst [smem:[#allocation71_spill]] %s8404_s20 }
  0x2a   :  { %s8424_s20 = sld [smem:[%s9211_s0 + %s8241_s15]]   ;;  %s8245_s15 = smov 27  }
  0x2b   :  { %s8444_s14 = sld [smem:[%s9211_s0 + %s8245_s15]]   ;;  %s8249_s15 = smov 31  }
  0x2c   :  { %9244 = sst [smem:[#allocation73_spill]] %s8419_s5 }
  0x2d   :  { %9245 = sst [smem:[#allocation74_spill]] %s8429_s24 }
  0x2e   :  { %9246 = sst [smem:[#allocation75_spill]] %s8434_s6 }
  0x2f   :  { %s8439_s5 = sld [smem:[%s9211_s0 + %s8244_s7]]   ;;  %s8248_s7 = smov 30  }
  0x30   :  { %s8449_s24 = sld [smem:[%s9211_s0 + %s8246_s22]]   ;;  %s8250_s22 = smov 32  }
  0x31   :  { %9247 = sst [smem:[#allocation76_spill]] %s8444_s14 }
  0x32   :  { %s8454_s6 = sld [smem:[%s9211_s0 + %s8247_s28]]   ;;  %s8251_s28 = smov 33  }
  0x33   :  { %s8459_s3 = sld [smem:[%s9211_s0 + %s8248_s7]]   ;;  %s8252_s7 = smov 34  }
  0x34   :  { %s8464_s14 = sld [smem:[%s9211_s0 + %s8249_s15]]   ;;  %s8253_s15 = smov 35  }
  0x35   :  { %s8474_s25 = sld [smem:[%s9211_s0 + %s8251_s28]]   ;;  %s8255_s28 = smov 37  }
  0x36   :  { %9248 = sst [smem:[#allocation77_spill]] %s8449_s24 }
  0x37   :  { %s8469_s24 = sld [smem:[%s9211_s0 + %s8250_s22]]   ;;  %s8254_s22 = smov 36  }
  0x38   :  { %s8489_s17 = sld [smem:[%s9211_s0 + %s8254_s22]]   ;;  %s8258_s22 = smov 40  }
  0x39   :  { %9249 = sst [smem:[#allocation78_spill]] %s8459_s3 }
  0x3a   :  { %9250 = sst [smem:[#allocation79_spill]] %s8464_s14 }
  0x3b   :  { %9251 = sst [smem:[#allocation80_spill]] %s8474_s25 }
  0x3c   :  { %s8479_s3 = sld [smem:[%s9211_s0 + %s8252_s7]]   ;;  %s8256_s7 = smov 38  }
  0x3d   :  { %s8484_s14 = sld [smem:[%s9211_s0 + %s8253_s15]]   ;;  %s8257_s15 = smov 39  }
  0x3e   :  { %9254 = sst [smem:[#allocation83_spill]] %s8489_s17 }
  0x3f   :  { %s8494_s25 = sld [smem:[%s9211_s0 + %s8255_s28]]   ;;  %s8259_s28 = smov 41  }
  0x40   :  { %s8509_s17 = sld [smem:[%s9211_s0 + %s8258_s22]]   ;;  %s8262_s22 = smov 44  }
  0x42   :  { %9252 = sst [smem:[#allocation81_spill]] %s8479_s3 }
  0x43   :  { %9253 = sst [smem:[#allocation82_spill]] %s8484_s14 }
  0x44   :  { %s8499_s3 = sld [smem:[%s9211_s0 + %s8256_s7]]   ;;  %s8260_s7 = smov 42  }
  0x45   :  { %9255 = sst [smem:[#allocation84_spill]] %s8494_s25 }
  0x46   :  { %s8504_s14 = sld [smem:[%s9211_s0 + %s8257_s15]]   ;;  %s8261_s15 = smov 43  }
  0x47   :  { %9258 = sst [smem:[#allocation87_spill]] %s8509_s17 }
  0x48   :  { %s8514_s25 = sld [smem:[%s9211_s0 + %s8259_s28]]   ;;  %s8263_s28 = smov 45  }
  0x49   :  { %s8529_s17 = sld [smem:[%s9211_s0 + %s8262_s22]]   ;;  %s8266_s22 = smov 48  }
  0x4a   :  { %9256 = sst [smem:[#allocation85_spill]] %s8499_s3 }
  0x4b   :  { %s8519_s3 = sld [smem:[%s9211_s0 + %s8260_s7]]   ;;  %s8264_s7 = smov 46  }
  0x4c   :  { %9257 = sst [smem:[#allocation86_spill]] %s8504_s14 }
  0x4d   :  { %s8524_s14 = sld [smem:[%s9211_s0 + %s8261_s15]]   ;;  %s8265_s15 = smov 47  }
  0x4e   :  { %9259 = sst [smem:[#allocation88_spill]] %s8514_s25 }
  0x4f   :  { %9262 = sst [smem:[#allocation91_spill]] %s8529_s17 }
  0x50   :  { %s8534_s25 = sld [smem:[%s9211_s0 + %s8263_s28]]   ;;  %s8267_s28 = smov 49  }
  0x51   :  { %9260 = sst [smem:[#allocation89_spill]] %s8519_s3 }
  0x52   :  { %s8539_s3 = sld [smem:[%s9211_s0 + %s8264_s7]]  }
  0x53   :  { %9261 = sst [smem:[#allocation90_spill]] %s8524_s14 }
  0x54   :  { %s8544_s14 = sld [smem:[%s9211_s0 + %s8265_s15]]  }
  0x55   :  { %s8549_s17 = sld [smem:[%s9211_s0 + %s8266_s22]]  }
  0x56   :  { %9263 = sst [smem:[#allocation92_spill]] %s8534_s25 }
  0x57   :  { %s8554_s25 = sld [smem:[%s9211_s0 + %s8267_s28]]  }
  0x58   :  { %104 = vsyncpa [#allocation3], 0 }
  0x59   :  { %105 = vsyncpa [#allocation5], 0 }
  0x5a   :  { %106 = vsyncpa [#allocation8], 0 }
  0x5b   :  { %107 = vsyncpa [#allocation11], 0 }
  0x5c   :  { %108 = vsyncpa [#allocation14], 0 }
  0x5d   :  { %109 = vsyncpa [#allocation17], 0 }
  0x5e   :  { %110 = vsyncpa [#allocation20], 0 }
  0x5f   :  { %111 = vsyncpa [#allocation23], 0 }
  0x60   :  { %112 = vsyncpa [#allocation26], 0 }
  0x61   :  { %113 = vsyncpa [#allocation29], 0 }
  0x62   :  { %114 = vsyncpa [#allocation32], 0 }
  0x63   :  { %115 = vsyncpa [#allocation35], 0 }
  0x64   :  { %116 = vsyncpa [#allocation38], 0 }
  0x65   :  { %117 = vsyncpa [#allocation41], 0  ;;  %s8556_s7 = smov 0  }
  0x66 LB: > { %s8268_s0 = smov [#allocation4]   ;;  %s8562_s11 = sadd.s32 4294967295, %s8217_s7   ;;  %s8217_s7 = sphi %s8556_s7, %s123_s7  }
  0x67   : > { %s1214_s10 = sshll.u32 %s8268_s0, 4  ;;  %p6119_p0 = scmp.ge.s32.totalorder %s8217_s7, 1  ;;  %s1215_s10 = int_to_ptr.vmem [resolvable:$true] %s1214_s10 }
  0x68   : > { %p1188_p1 = scmp.lt.s32.totalorder %s8217_s7, 3  ;;  %p9222_p2 = scmp.eq.s32.totalorder %s8562_s11, 0 }
  0x69   : > { %s8269_s16 = smov [#allocation7]   ;;  %s8270_s23 = smov [#allocation10]  }
  0x6a   : > { %p8567_p3 = pnand %p6119_p0, %p1188_p1  ;;  %s1235_s18 = sshll.u32 %s8269_s16, 4  ;;  %s8573_s18 = int_to_ptr.vmem [resolvable:$true] %s1235_s18 }
  0x6b   : > { %s1260_s26 = sshll.u32 %s8270_s23, 4  ;;  %s8271_s28 = smov [#allocation13]   ;;  %s8581_s26 = int_to_ptr.vmem [resolvable:$true] %s1260_s26 }
  0x6c   : > { %s9264_s15 = scalar_select %p8567_p3, 1, 0 }
  0x6d   : > { %p7167_p4 = pneg %p8567_p3  ;;  %s8583_s1 = sshll.u32 %s8271_s28, 4  ;;  %s1285_s1 = int_to_ptr.vmem [resolvable:$true] %s8583_s1 }
  0x6e   : > { %s7464_s0 = scalar_lea.vmem %s1215_s10, 16  ;;  %s7471_s16 = scalar_lea.vmem %s1215_s10, 32 }
  0x6f   : > { %p8577_p5 = pnand %p9222_p2, %p7167_p4  ;;  %p7465_p7 = scmp.ne.s32.totalorder %s1215_s10, %s7464_s0 }
  0x70   : > { %p7472_p10 = scmp.lt.s32.totalorder %s1215_s10, %s1215_s10  ;;  %p7473_p11 = scmp.lt.s32.totalorder %s7471_s16, %s7464_s0 }
  0x71   : > { %p8587_p6 = pneg %p8577_p5 }
  0x72   : > { %p7474_p12 = por %p7473_p11, %p7472_p10 }
  0x73   : > { %p7467_p8 = pnand %p7465_p7, %p8587_p6 }
  0x75   : > { %p7468_p9 = pneg %p7467_p8 }
  0x77   : > { %p7475_p13 = pnand %p7474_p12, %p7468_p9 }
  0x79   : > { %7478 = shalt.err (!%p7475_p13)
}
  0x7a   : > { %s9267_s13 = sld [smem:[#allocation58_spill]]  ;;  %s7490_s23 = scalar_lea.vmem %s8573_s18, 192 }
  0x7b   : > { %p7491_p0 = scmp.ne.s32.totalorder %s8573_s18, %s7490_s23  ;;  %p7498_p7 = scmp.lt.s32.totalorder %s8573_s18, %s8573_s18 }
  0x7c   : > { %p7499_p8 = scmp.lt.s32.totalorder %s7490_s23, %s7490_s23 }
  0x7d   : > { %p7493_p1 = pnand %p7491_p0, %p8587_p6 }
  0x7e   : > { %p7500_p2 = por %p7499_p8, %p7498_p7 }
  0x7f   : > { %p7494_p4 = pneg %p7493_p1 }
  0x80   : > { %7173 = dma.hbm_to_vmem [thread:$0]  (!%p8577_p5), %s9267_s13, 16, %s1215_s10, [#allocation5]  }
  0x81   : > { %p7501_p10 = pnand %p7500_p2, %p7494_p4 }
  0x83   : > { %7504 = shalt.err (!%p7501_p10)
}
  0x84   : > { %s9223_s28 = smov 64   ;;  %s9225_s10 = smov 4  }
  0x85   : > { %7179 = dma.hbm_to_vmem [thread:$0]  (!%p8577_p5), %s8329_s21, 192, %s8573_s18, [#allocation8], %s9223_s28, %s9223_s28, %s9225_s10  }
  0x86   : > { %s7516_s0 = scalar_lea.vmem %s8581_s26, 16  ;;  %s7523_s16 = scalar_lea.vmem %s8581_s26, 32 }
  0x87   : > { %p7517_p9 = scmp.ne.s32.totalorder %s8581_s26, %s7516_s0  ;;  %p7524_p12 = scmp.lt.s32.totalorder %s8581_s26, %s8581_s26 }
  0x88   : > { %p7525_p13 = scmp.lt.s32.totalorder %s7523_s16, %s7516_s0 }
  0x89   : > { %p7519_p2 = pnand %p7517_p9, %p8587_p6 }
  0x8a   : > { %p7526_p0 = por %p7525_p13, %p7524_p12 }
  0x8b   : > { %p7520_p11 = pneg %p7519_p2 }
  0x8d   : > { %p7527_p1 = pnand %p7526_p0, %p7520_p11 }
  0x8f   : > { %7530 = shalt.err (!%p7527_p1)
}
  0x90   : > { %7185 = dma.hbm_to_vmem [thread:$0]  (!%p8577_p5), %s8339_s29, 16, %s8581_s26, [#allocation11]  }
  0x91   : > { %s7542_s18 = scalar_lea.vmem %s1285_s1, 16  ;;  %s7549_s23 = scalar_lea.vmem %s1285_s1, 32 }
  0x92   : > { %p7543_p4 = scmp.ne.s32.totalorder %s1285_s1, %s7542_s18  ;;  %p7550_p10 = scmp.lt.s32.totalorder %s1285_s1, %s1285_s1 }
  0x93   : > { %p7551_p9 = scmp.lt.s32.totalorder %s7549_s23, %s7542_s18 }
  0x94   : > { %p7545_p7 = pnand %p7543_p4, %p8587_p6 }
  0x95   : > { %p7552_p2 = por %p7551_p9, %p7550_p10 }
  0x96   : > { %p7546_p8 = pneg %p7545_p7 }
  0x98   : > { %p7553_p12 = pnand %p7552_p2, %p7546_p8 }
  0x9a   : > { %7556 = shalt.err (!%p7553_p12)
}
  0x9b   : > { %s9268_s8 = sld [smem:[#allocation62_spill]]  ;;  %s8274_s0 = smov [#allocation16]  }
  0x9c   : > { %s1305_s16 = sshll.u32 %s8274_s0, 4  ;;  %s8275_s26 = smov [#allocation19]   ;;  %s1306_s16 = int_to_ptr.vmem [resolvable:$true] %s1305_s16 }
  0x9d   : > { %s1330_s28 = sshll.u32 %s8275_s26, 4  ;;  %s7568_s10 = scalar_lea.vmem %s1306_s16, 384  ;;  %s1331_s28 = int_to_ptr.vmem [resolvable:$true] %s1330_s28 }
  0x9e   : > { %p7569_p11 = scmp.ne.s32.totalorder %s1306_s16, %s7568_s10  ;;  %p7576_p1 = scmp.lt.s32.totalorder %s1306_s16, %s1306_s16 }
  0x9f   : > { %p7577_p4 = scmp.lt.s32.totalorder %s7568_s10, %s7568_s10 }
  0xa0   : > { %p7571_p13 = pnand %p7569_p11, %p8587_p6 }
  0xa1   : > { %7191 = dma.hbm_to_vmem [thread:$0]  (!%p8577_p5), %s9268_s8, 16, %s1285_s1, [#allocation14]  }
  0xa2   : > { %p7572_p0 = pneg %p7571_p13  ;;  %p7578_p7 = por %p7577_p4, %p7576_p1 }
  0xa4   : > { %p7579_p8 = pnand %p7578_p7, %p7572_p0 }
  0xa6   : > { %7582 = shalt.err (!%p7579_p8)
}
  0xa7   : > { %s9269_s18 = smov 4   ;;  %s9270_s23 = smov 64  }
  0xa8   : > { %s9271_s19 = sld [smem:[#allocation64_spill]]  ;;  %s7594_s1 = scalar_lea.vmem %s1331_s28, 16 }
  0xa9   : > { %p7595_p10 = scmp.ne.s32.totalorder %s1331_s28, %s7594_s1  ;;  %s7601_s0 = scalar_lea.vmem %s1331_s28, 32 }
  0xaa   : > { %p7602_p12 = scmp.lt.s32.totalorder %s1331_s28, %s1331_s28  ;;  %p7603_p11 = scmp.lt.s32.totalorder %s7601_s0, %s7594_s1 }
  0xab   : > { %p7597_p9 = pnand %p7595_p10, %p8587_p6 }
  0xac   : > { %p7604_p13 = por %p7603_p11, %p7602_p12 }
  0xad   : > { %p7598_p2 = pneg %p7597_p9 }
  0xae   : > { %7197 = dma.hbm_to_vmem [thread:$0]  (!%p8577_p5), %s9271_s19, 384, %s1306_s16, [#allocation17], %s9270_s23, %s9270_s23, %s9269_s18  }
  0xaf   : > { %p7605_p0 = pnand %p7604_p13, %p7598_p2 }
  0xb1   : > { %7608 = shalt.err (!%p7605_p0)
}
  0xb2   : > { %7203 = dma.hbm_to_vmem [thread:$0]  (!%p8577_p5), %s8369_s30, 16, %s1331_s28, [#allocation20]  }
  0xb3   : > { %s8276_s10 = smov [#allocation22]   ;;  %s8277_s16 = smov [#allocation25]  }
  0xb4   : > { %s1354_s26 = sshll.u32 %s8276_s10, 4  ;;  %s1379_s8 = sshll.u32 %s8277_s16, 4  ;;  %s1355_s26 = int_to_ptr.vmem [resolvable:$true] %s1354_s26  ;;  %s1380_s8 = int_to_ptr.vmem [resolvable:$true] %s1379_s8 }
  0xb5   : > { %s7620_s13 = scalar_lea.vmem %s1355_s26, 16  ;;  %s7627_s19 = scalar_lea.vmem %s1355_s26, 32 }
  0xb6   : > { %p7621_p1 = scmp.ne.s32.totalorder %s1355_s26, %s7620_s13  ;;  %p7628_p8 = scmp.lt.s32.totalorder %s1355_s26, %s1355_s26 }
  0xb7   : > { %p7629_p10 = scmp.lt.s32.totalorder %s7627_s19, %s7620_s13 }
  0xb8   : > { %p7623_p4 = pnand %p7621_p1, %p8587_p6 }
  0xb9   : > { %p7630_p9 = por %p7629_p10, %p7628_p8 }
  0xba   : > { %p7624_p7 = pneg %p7623_p4 }
  0xbc   : > { %p7631_p2 = pnand %p7630_p9, %p7624_p7 }
  0xbe   : > { %7634 = shalt.err (!%p7631_p2)
}
  0xbf   : > { %7209 = dma.hbm_to_vmem [thread:$0]  (!%p8577_p5), %s8379_s12, 16, %s1355_s26, [#allocation23]  }
  0xc0   : > { %s7646_s28 = scalar_lea.vmem %s1380_s8, 16  ;;  %s7653_s1 = scalar_lea.vmem %s1380_s8, 32 }
  0xc1   : > { %p7647_p12 = scmp.ne.s32.totalorder %s1380_s8, %s7646_s28  ;;  %p7654_p0 = scmp.lt.s32.totalorder %s1380_s8, %s1380_s8 }
  0xc2   : > { %p7655_p1 = scmp.lt.s32.totalorder %s7653_s1, %s7646_s28 }
  0xc3   : > { %p7649_p11 = pnand %p7647_p12, %p8587_p6 }
  0xc4   : > { %p7656_p4 = por %p7655_p1, %p7654_p0 }
  0xc5   : > { %p7650_p13 = pneg %p7649_p11 }
  0xc7   : > { %p7657_p3 = pnand %p7656_p4, %p7650_p13 }
  0xc9   : > { %7660 = shalt.err (!%p7657_p3)
}
  0xca   : > { %s9272_s4 = sld [smem:[#allocation69_spill]]  ;;  %s8278_s13 = smov [#allocation28]  }
  0xcb   : > { %s1404_s19 = sshll.u32 %s8278_s13, 4  ;;  %s8279_s0 = smov [#allocation31]   ;;  %s1405_s19 = int_to_ptr.vmem [resolvable:$true] %s1404_s19 }
  0xcc   : > { %s1429_s10 = sshll.u32 %s8279_s0, 4  ;;  %s7672_s26 = scalar_lea.vmem %s1405_s19, 16  ;;  %s1430_s10 = int_to_ptr.vmem [resolvable:$true] %s1429_s10 }
  0xcd   : > { %p7673_p7 = scmp.ne.s32.totalorder %s1405_s19, %s7672_s26  ;;  %s7679_s16 = scalar_lea.vmem %s1405_s19, 32 }
  0xce   : > { %p7680_p9 = scmp.lt.s32.totalorder %s1405_s19, %s1405_s19  ;;  %p7681_p2 = scmp.lt.s32.totalorder %s7679_s16, %s7672_s26 }
  0xcf   : > { %p7675_p8 = pnand %p7673_p7, %p8587_p6 }
  0xd0   : > { %7215 = dma.hbm_to_vmem [thread:$0]  (!%p8577_p5), %s9272_s4, 16, %s1380_s8, [#allocation26]  }
  0xd1   : > { %p7676_p10 = pneg %p7675_p8  ;;  %p7682_p12 = por %p7681_p2, %p7680_p9 }
  0xd3   : > { %p7683_p3 = pnand %p7682_p12, %p7676_p10 }
  0xd5   : > { %7686 = shalt.err (!%p7683_p3)
}
  0xd6   : > { %7221 = dma.hbm_to_vmem [thread:$0]  (!%p8577_p5), %s8409_s27, 16, %s1405_s19, [#allocation29]  }
  0xd7   : > { %s7698_s8 = scalar_lea.vmem %s1430_s10, 16  ;;  %s7705_s28 = scalar_lea.vmem %s1430_s10, 32 }
  0xd8   : > { %p7699_p11 = scmp.ne.s32.totalorder %s1430_s10, %s7698_s8  ;;  %p7706_p1 = scmp.lt.s32.totalorder %s1430_s10, %s1430_s10 }
  0xd9   : > { %p7707_p4 = scmp.lt.s32.totalorder %s7705_s28, %s7698_s8 }
  0xda   : > { %p7701_p13 = pnand %p7699_p11, %p8587_p6 }
  0xdb   : > { %p7708_p7 = por %p7707_p4, %p7706_p1 }
  0xdc   : > { %p7702_p0 = pneg %p7701_p13 }
  0xde   : > { %p7709_p8 = pnand %p7708_p7, %p7702_p0 }
  0xe0   : > { %7712 = shalt.err (!%p7709_p8)
}
  0xe1   : > { %7227 = dma.hbm_to_vmem [thread:$0]  (!%p8577_p5), %s8424_s20, 16, %s1430_s10, [#allocation32]  }
  0xe2   : > { %s8280_s1 = smov [#allocation34]   ;;  %s8281_s19 = smov [#allocation37]  }
  0xe3   : > { %s1454_s13 = sshll.u32 %s8280_s1, 4  ;;  %s1479_s0 = sshll.u32 %s8281_s19, 4  ;;  %s1455_s13 = int_to_ptr.vmem [resolvable:$true] %s1454_s13  ;;  %s1480_s0 = int_to_ptr.vmem [resolvable:$true] %s1479_s0 }
  0xe4   : > { %s7724_s26 = scalar_lea.vmem %s1455_s13, 16  ;;  %s7731_s16 = scalar_lea.vmem %s1455_s13, 32 }
  0xe5   : > { %p7725_p10 = scmp.ne.s32.totalorder %s1455_s13, %s7724_s26  ;;  %p7732_p12 = scmp.lt.s32.totalorder %s1455_s13, %s1455_s13 }
  0xe6   : > { %p7733_p3 = scmp.lt.s32.totalorder %s7731_s16, %s7724_s26 }
  0xe7   : > { %p7727_p9 = pnand %p7725_p10, %p8587_p6 }
  0xe8   : > { %p7734_p11 = por %p7733_p3, %p7732_p12 }
  0xe9   : > { %p7728_p2 = pneg %p7727_p9 }
  0xeb   : > { %p7735_p13 = pnand %p7734_p11, %p7728_p2 }
  0xed   : > { %7738 = shalt.err (!%p7735_p13)
}
  0xee   : > { %7233 = dma.hbm_to_vmem [thread:$0]  (!%p8577_p5), %s8439_s5, 16, %s1455_s13, [#allocation35]  }
  0xef   : > { %s7750_s10 = scalar_lea.vmem %s1480_s0, 16  ;;  %s7757_s8 = scalar_lea.vmem %s1480_s0, 32 }
  0xf0   : > { %p7751_p0 = scmp.ne.s32.totalorder %s1480_s0, %s7750_s10  ;;  %p7758_p7 = scmp.lt.s32.totalorder %s1480_s0, %s1480_s0 }
  0xf1   : > { %p7759_p8 = scmp.lt.s32.totalorder %s7757_s8, %s7750_s10 }
  0xf2   : > { %p7753_p1 = pnand %p7751_p0, %p8587_p6 }
  0xf3   : > { %p7760_p10 = por %p7759_p8, %p7758_p7 }
  0xf4   : > { %p7754_p4 = pneg %p7753_p1 }
  0xf6   : > { %p7761_p9 = pnand %p7760_p10, %p7754_p4 }
  0xf8   : > { %7764 = shalt.err (!%p7761_p9)
}
  0xf9   : > { %7239 = dma.hbm_to_vmem [thread:$0]  (!%p8577_p5), %s8454_s6, 16, %s1480_s0, [#allocation38]  }
  0xfa   : > { %s8282_s28 = smov [#allocation40]   ;;  %s8283_s13 = smov [#allocation2]  }
  0xfb   : > { %s1504_s1 = sshll.u32 %s8282_s28, 4  ;;  %s1200_s19 = sshll.u32 %s8283_s13, 4  ;;  %s1505_s1 = int_to_ptr.vmem [resolvable:$true] %s1504_s1  ;;  %s1201_s19 = int_to_ptr.vmem [resolvable:$true] %s1200_s19 }
  0xfc   : > { %s7776_s26 = scalar_lea.vmem %s1505_s1, 16  ;;  %s7783_s16 = scalar_lea.vmem %s1505_s1, 32 }
  0xfd   : > { %p7777_p2 = scmp.ne.s32.totalorder %s1505_s1, %s7776_s26  ;;  %p7784_p11 = scmp.lt.s32.totalorder %s1505_s1, %s1505_s1 }
  0xfe   : > { %p7785_p13 = scmp.lt.s32.totalorder %s7783_s16, %s7776_s26 }
  0xff   : > { %p7779_p12 = pnand %p7777_p2, %p8587_p6 }
 0x100   : > { %p7786_p0 = por %p7785_p13, %p7784_p11 }
 0x101   : > { %p7780_p3 = pneg %p7779_p12 }
 0x103   : > { %p7787_p1 = pnand %p7786_p0, %p7780_p3 }
 0x105   : > { %7790 = shalt.err (!%p7787_p1)
}
 0x106   : > { %7245 = dma.hbm_to_vmem [thread:$0]  (!%p8577_p5), %s8469_s24, 16, %s1505_s1, [#allocation41]  }
 0x107   : > { %s7802_s0 = scalar_lea.vmem %s1201_s19, 96  ;;  %p7810_p10 = scmp.lt.s32.totalorder %s1201_s19, %s1201_s19 }
 0x108   : > { %p7803_p4 = scmp.ne.s32.totalorder %s1201_s19, %s7802_s0  ;;  %p7811_p9 = scmp.lt.s32.totalorder %s7802_s0, %s7802_s0 }
 0x10a   : > { %p7805_p7 = pnand %p7803_p4, %p8587_p6  ;;  %p7812_p2 = por %p7811_p9, %p7810_p10 }
 0x10c   : > { %p7806_p8 = pneg %p7805_p7 }
 0x10e   : > { %p7813_p12 = pnand %p7812_p2, %p7806_p8 }
 0x110   : > { %7816 = shalt.err (!%p7813_p12)
}
 0x111   : > { %s8284_s10 = smov 32   ;;  %s8285_s8 = smov 2  }
 0x112   : > { %7170 = dma.hbm_to_vmem [thread:$0]  (!%p8577_p5), %s8314_s9, 96, %s1201_s19, [#allocation3], %s8284_s10, %s8284_s10, %s8285_s8  }
 0x113   : > { %s8286_s28 = smov [#allocation6]   ;;  %s8287_s13 = smov [#allocation9]  }
 0x114   : > { %s1225_s1 = sshll.u32 %s8286_s28, 4  ;;  %s1249_s26 = sshll.u32 %s8287_s13, 4  ;;  %s1226_s1 = int_to_ptr.vmem [resolvable:$true] %s1225_s1  ;;  %s1250_s26 = int_to_ptr.vmem [resolvable:$true] %s1249_s26 }
 0x115   : > { %s7828_s16 = scalar_lea.vmem %s1226_s1, 16  ;;  %s7835_s0 = scalar_lea.vmem %s1226_s1, 32 }
 0x116   : > { %p7829_p3 = scmp.ne.s32.totalorder %s1226_s1, %s7828_s16  ;;  %p7836_p0 = scmp.lt.s32.totalorder %s1226_s1, %s1226_s1 }
 0x117   : > { %p7837_p1 = scmp.lt.s32.totalorder %s7835_s0, %s7828_s16 }
 0x118   : > { %p7831_p11 = pnand %p7829_p3, %p8587_p6 }
 0x119   : > { %p7838_p4 = por %p7837_p1, %p7836_p0 }
 0x11a   : > { %p7832_p13 = pneg %p7831_p11 }
 0x11c   : > { %p7839_p7 = pnand %p7838_p4, %p7832_p13 }
 0x11e   : > { %7842 = shalt.err (!%p7839_p7)
}
 0x11f   : > { %s9273_s4 = sld [smem:[#allocation59_spill]]  ;;  %s7854_s19 = scalar_lea.vmem %s1250_s26, 16 }
 0x120   : > { %p7855_p8 = scmp.ne.s32.totalorder %s1250_s26, %s7854_s19  ;;  %s7861_s10 = scalar_lea.vmem %s1250_s26, 32 }
 0x121   : > { %p7862_p2 = scmp.lt.s32.totalorder %s1250_s26, %s1250_s26  ;;  %p7863_p12 = scmp.lt.s32.totalorder %s7861_s10, %s7854_s19 }
 0x122   : > { %p7857_p10 = pnand %p7855_p8, %p8587_p6 }
 0x123   : > { %p7864_p3 = por %p7863_p12, %p7862_p2 }
 0x124   : > { %p7858_p9 = pneg %p7857_p10 }
 0x125   : > { %7176 = dma.hbm_to_vmem [thread:$0]  (!%p8577_p5), %s9273_s4, 16, %s1226_s1, [#allocation5]  }
 0x126   : > { %p7865_p11 = pnand %p7864_p3, %p7858_p9 }
 0x128   : > { %7868 = shalt.err (!%p7865_p11)
}
 0x129   : > { %s9274_s8 = sld [smem:[#allocation60_spill]]  ;;  %s8288_s28 = smov [#allocation12]  }
 0x12a   : > { %s1270_s13 = sshll.u32 %s8288_s28, 4  ;;  %s8289_s4 = smov [#allocation15]   ;;  %s1271_s13 = int_to_ptr.vmem [resolvable:$true] %s1270_s13 }
 0x12b   : > { %s1295_s1 = sshll.u32 %s8289_s4, 4  ;;  %s7880_s16 = scalar_lea.vmem %s1271_s13, 192  ;;  %s1296_s1 = int_to_ptr.vmem [resolvable:$true] %s1295_s1 }
 0x12c   : > { %p7881_p13 = scmp.ne.s32.totalorder %s1271_s13, %s7880_s16  ;;  %p7888_p4 = scmp.lt.s32.totalorder %s1271_s13, %s1271_s13 }
 0x12d   : > { %p7889_p7 = scmp.lt.s32.totalorder %s7880_s16, %s7880_s16 }
 0x12e   : > { %p7883_p0 = pnand %p7881_p13, %p8587_p6 }
 0x12f   : > { %7182 = dma.hbm_to_vmem [thread:$0]  (!%p8577_p5), %s9274_s8, 16, %s1250_s26, [#allocation8]  }
 0x130   : > { %p7884_p1 = pneg %p7883_p0  ;;  %p7890_p8 = por %p7889_p7, %p7888_p4 }
 0x132   : > { %p7891_p10 = pnand %p7890_p8, %p7884_p1 }
 0x134   : > { %7894 = shalt.err (!%p7891_p10)
}
 0x135   : > { %s9275_s26 = sld [smem:[#allocation61_spill]]  ;;  %s7906_s0 = scalar_lea.vmem %s1296_s1, 16 }
 0x136   : > { %p7907_p9 = scmp.ne.s32.totalorder %s1296_s1, %s7906_s0  ;;  %s7913_s19 = scalar_lea.vmem %s1296_s1, 32 }
 0x137   : > { %p7914_p3 = scmp.lt.s32.totalorder %s1296_s1, %s1296_s1  ;;  %p7915_p11 = scmp.lt.s32.totalorder %s7913_s19, %s7906_s0 }
 0x138   : > { %p7909_p2 = pnand %p7907_p9, %p8587_p6 }
 0x139   : > { %p7916_p13 = por %p7915_p11, %p7914_p3 }
 0x13a   : > { %p7910_p12 = pneg %p7909_p2 }
 0x13b   : > { %7188 = dma.hbm_to_vmem [thread:$0]  (!%p8577_p5), %s9275_s26, 192, %s1271_s13, [#allocation11], %s9270_s23, %s9270_s23, %s9269_s18  }
 0x13c   : > { %p7917_p0 = pnand %p7916_p13, %p7910_p12 }
 0x13e   : > { %7920 = shalt.err (!%p7917_p0)
}
 0x13f   : > { %s9276_s10 = sld [smem:[#allocation63_spill]]  ;;  %s8290_s8 = smov [#allocation18]  }
 0x140   : > { %s1319_s28 = sshll.u32 %s8290_s8, 4  ;;  %s8291_s13 = smov [#allocation21]   ;;  %s1320_s28 = int_to_ptr.vmem [resolvable:$true] %s1319_s28 }
 0x141   : > { %s1340_s4 = sshll.u32 %s8291_s13, 4  ;;  %s7932_s16 = scalar_lea.vmem %s1320_s28, 16  ;;  %s1341_s4 = int_to_ptr.vmem [resolvable:$true] %s1340_s4 }
 0x142   : > { %p7933_p1 = scmp.ne.s32.totalorder %s1320_s28, %s7932_s16  ;;  %s7939_s26 = scalar_lea.vmem %s1320_s28, 32 }
 0x143   : > { %p7940_p8 = scmp.lt.s32.totalorder %s1320_s28, %s1320_s28  ;;  %p7941_p10 = scmp.lt.s32.totalorder %s7939_s26, %s7932_s16 }
 0x144   : > { %p7935_p4 = pnand %p7933_p1, %p8587_p6 }
 0x145   : > { %7194 = dma.hbm_to_vmem [thread:$0]  (!%p8577_p5), %s9276_s10, 16, %s1296_s1, [#allocation14]  }
 0x146   : > { %p7936_p7 = pneg %p7935_p4  ;;  %p7942_p9 = por %p7941_p10, %p7940_p8 }
 0x148   : > { %p7943_p2 = pnand %p7942_p9, %p7936_p7 }
 0x14a   : > { %7946 = shalt.err (!%p7943_p2)
}
 0x14b   : > { %s9277_s0 = sld [smem:[#allocation65_spill]]  ;;  %s7958_s1 = scalar_lea.vmem %s1341_s4, 384 }
 0x14c   : > { %p7959_p12 = scmp.ne.s32.totalorder %s1341_s4, %s7958_s1  ;;  %p7966_p13 = scmp.lt.s32.totalorder %s1341_s4, %s1341_s4 }
 0x14d   : > { %p7967_p0 = scmp.lt.s32.totalorder %s7958_s1, %s7958_s1 }
 0x14e   : > { %p7961_p3 = pnand %p7959_p12, %p8587_p6 }
 0x14f   : > { %p7968_p1 = por %p7967_p0, %p7966_p13 }
 0x150   : > { %p7962_p11 = pneg %p7961_p3 }
 0x151   : > { %7200 = dma.hbm_to_vmem [thread:$0]  (!%p8577_p5), %s9277_s0, 16, %s1320_s28, [#allocation17]  }
 0x152   : > { %p7969_p4 = pnand %p7968_p1, %p7962_p11 }
 0x154   : > { %7972 = shalt.err (!%p7969_p4)
}
 0x155   : > { %s9278_s19 = sld [smem:[#allocation66_spill]]  ;;  %s8292_s10 = smov [#allocation24]  }
 0x156   : > { %s1365_s8 = sshll.u32 %s8292_s10, 4  ;;  %s8293_s28 = smov [#allocation27]   ;;  %s1366_s8 = int_to_ptr.vmem [resolvable:$true] %s1365_s8 }
 0x157   : > { %s1390_s13 = sshll.u32 %s8293_s28, 4  ;;  %s7984_s16 = scalar_lea.vmem %s1366_s8, 16  ;;  %s1391_s13 = int_to_ptr.vmem [resolvable:$true] %s1390_s13 }
 0x158   : > { %p7985_p7 = scmp.ne.s32.totalorder %s1366_s8, %s7984_s16  ;;  %s7991_s26 = scalar_lea.vmem %s1366_s8, 32 }
 0x159   : > { %p7992_p9 = scmp.lt.s32.totalorder %s1366_s8, %s1366_s8  ;;  %p7993_p2 = scmp.lt.s32.totalorder %s7991_s26, %s7984_s16 }
 0x15a   : > { %p7987_p8 = pnand %p7985_p7, %p8587_p6 }
 0x15b   : > { %7206 = dma.hbm_to_vmem [thread:$0]  (!%p8577_p5), %s9278_s19, 384, %s1341_s4, [#allocation20], %s9270_s23, %s9270_s23, %s9269_s18  }
 0x15c   : > { %p7988_p10 = pneg %p7987_p8  ;;  %p7994_p12 = por %p7993_p2, %p7992_p9 }
 0x15e   : > { %p7995_p3 = pnand %p7994_p12, %p7988_p10 }
 0x160   : > { %7998 = shalt.err (!%p7995_p3)
}
 0x161   : > { %s9279_s0 = sld [smem:[#allocation67_spill]]  ;;  %s8010_s18 = scalar_lea.vmem %s1391_s13, 16 }
 0x162   : > { %p8011_p11 = scmp.ne.s32.totalorder %s1391_s13, %s8010_s18  ;;  %s8017_s23 = scalar_lea.vmem %s1391_s13, 32 }
 0x163   : > { %p8018_p1 = scmp.lt.s32.totalorder %s1391_s13, %s1391_s13  ;;  %p8019_p4 = scmp.lt.s32.totalorder %s8017_s23, %s8010_s18 }
 0x164   : > { %p8013_p13 = pnand %p8011_p11, %p8587_p6 }
 0x165   : > { %p8020_p7 = por %p8019_p4, %p8018_p1 }
 0x166   : > { %p8014_p0 = pneg %p8013_p13 }
 0x167   : > { %7212 = dma.hbm_to_vmem [thread:$0]  (!%p8577_p5), %s9279_s0, 16, %s1366_s8, [#allocation23]  }
 0x168   : > { %p8021_p8 = pnand %p8020_p7, %p8014_p0 }
 0x16a   : > { %8024 = shalt.err (!%p8021_p8)
}
 0x16b   : > { %s9280_s4 = sld [smem:[#allocation70_spill]]  ;;  %s8294_s1 = smov [#allocation30]  }
 0x16c   : > { %s1415_s19 = sshll.u32 %s8294_s1, 4  ;;  %s8295_s10 = smov [#allocation33]   ;;  %s1416_s19 = int_to_ptr.vmem [resolvable:$true] %s1415_s19 }
 0x16d   : > { %s1440_s8 = sshll.u32 %s8295_s10, 4  ;;  %s8036_s28 = scalar_lea.vmem %s1416_s19, 16  ;;  %s1441_s8 = int_to_ptr.vmem [resolvable:$true] %s1440_s8 }
 0x16e   : > { %p8037_p10 = scmp.ne.s32.totalorder %s1416_s19, %s8036_s28  ;;  %s8043_s16 = scalar_lea.vmem %s1416_s19, 32 }
 0x16f   : > { %p8044_p12 = scmp.lt.s32.totalorder %s1416_s19, %s1416_s19  ;;  %p8045_p3 = scmp.lt.s32.totalorder %s8043_s16, %s8036_s28 }
 0x170   : > { %p8039_p9 = pnand %p8037_p10, %p8587_p6 }
 0x171   : > { %7218 = dma.hbm_to_vmem [thread:$0]  (!%p8577_p5), %s9280_s4, 16, %s1391_s13, [#allocation26]  }
 0x172   : > { %p8040_p2 = pneg %p8039_p9  ;;  %p8046_p11 = por %p8045_p3, %p8044_p12 }
 0x174   : > { %p8047_p13 = pnand %p8046_p11, %p8040_p2 }
 0x176   : > { %8050 = shalt.err (!%p8047_p13)
}
 0x177   : > { %s9281_s26 = sld [smem:[#allocation72_spill]]  ;;  %s8062_s13 = scalar_lea.vmem %s1441_s8, 16 }
 0x178   : > { %p8063_p0 = scmp.ne.s32.totalorder %s1441_s8, %s8062_s13  ;;  %s8069_s0 = scalar_lea.vmem %s1441_s8, 32 }
 0x179   : > { %p8070_p7 = scmp.lt.s32.totalorder %s1441_s8, %s1441_s8  ;;  %p8071_p8 = scmp.lt.s32.totalorder %s8069_s0, %s8062_s13 }
 0x17a   : > { %p8065_p1 = pnand %p8063_p0, %p8587_p6 }
 0x17b   : > { %p8072_p10 = por %p8071_p8, %p8070_p7 }
 0x17c   : > { %p8066_p4 = pneg %p8065_p1 }
 0x17d   : > { %7224 = dma.hbm_to_vmem [thread:$0]  (!%p8577_p5), %s9281_s26, 16, %s1416_s19, [#allocation29]  }
 0x17e   : > { %p8073_p9 = pnand %p8072_p10, %p8066_p4 }
 0x180   : > { %8076 = shalt.err (!%p8073_p9)
}
 0x181   : > { %s9282_s18 = sld [smem:[#allocation74_spill]]  ;;  %s8296_s23 = smov [#allocation36]  }
 0x182   : > { %s1465_s4 = sshll.u32 %s8296_s23, 4  ;;  %s8297_s1 = smov [#allocation39]   ;;  %s1466_s4 = int_to_ptr.vmem [resolvable:$true] %s1465_s4 }
 0x183   : > { %s1490_s19 = sshll.u32 %s8297_s1, 4  ;;  %s8088_s10 = scalar_lea.vmem %s1466_s4, 16  ;;  %s1491_s19 = int_to_ptr.vmem [resolvable:$true] %s1490_s19 }
 0x184   : > { %p8089_p2 = scmp.ne.s32.totalorder %s1466_s4, %s8088_s10  ;;  %s8095_s28 = scalar_lea.vmem %s1466_s4, 32 }
 0x185   : > { %p8096_p11 = scmp.lt.s32.totalorder %s1466_s4, %s1466_s4  ;;  %p8097_p13 = scmp.lt.s32.totalorder %s8095_s28, %s8088_s10 }
 0x186   : > { %p8091_p12 = pnand %p8089_p2, %p8587_p6 }
 0x187   : > { %7230 = dma.hbm_to_vmem [thread:$0]  (!%p8577_p5), %s9282_s18, 16, %s1441_s8, [#allocation32]  }
 0x188   : > { %p8092_p3 = pneg %p8091_p12  ;;  %p8098_p0 = por %p8097_p13, %p8096_p11 }
 0x18a   : > { %p8099_p1 = pnand %p8098_p0, %p8092_p3 }
 0x18c   : > { %8102 = shalt.err (!%p8099_p1)
}
 0x18d   : > { %s9283_s16 = sld [smem:[#allocation76_spill]]  ;;  %s8114_s8 = scalar_lea.vmem %s1491_s19, 16 }
 0x18e   : > { %p8115_p4 = scmp.ne.s32.totalorder %s1491_s19, %s8114_s8  ;;  %s8121_s26 = scalar_lea.vmem %s1491_s19, 32 }
 0x18f   : > { %p8122_p10 = scmp.lt.s32.totalorder %s1491_s19, %s1491_s19  ;;  %p8123_p9 = scmp.lt.s32.totalorder %s8121_s26, %s8114_s8 }
 0x190   : > { %p8117_p7 = pnand %p8115_p4, %p8587_p6 }
 0x191   : > { %p8124_p2 = por %p8123_p9, %p8122_p10 }
 0x192   : > { %p8118_p8 = pneg %p8117_p7 }
 0x193   : > { %7236 = dma.hbm_to_vmem [thread:$0]  (!%p8577_p5), %s9283_s16, 16, %s1466_s4, [#allocation35]  }
 0x194   : > { %p8125_p12 = pnand %p8124_p2, %p8118_p8 }
 0x196   : > { %8128 = shalt.err (!%p8125_p12)
}
 0x197   : > { %s9284_s13 = sld [smem:[#allocation78_spill]]  ;;  %s8298_s0 = smov [#allocation42]  }
 0x198   : > { %s1530_s18 = sshll.u32 %s8298_s0, 4  ;;  %s1531_s18 = int_to_ptr.vmem [resolvable:$true] %s1530_s18 }
 0x199   : > { %s8140_s23 = scalar_lea.vmem %s1531_s18, 16  ;;  %s8147_s4 = scalar_lea.vmem %s1531_s18, 32 }
 0x19a   : > { %p8141_p3 = scmp.ne.s32.totalorder %s1531_s18, %s8140_s23  ;;  %p8148_p0 = scmp.lt.s32.totalorder %s1531_s18, %s1531_s18 }
 0x19b   : > { %p8149_p1 = scmp.lt.s32.totalorder %s8147_s4, %s8140_s23 }
 0x19c   : > { %p8143_p11 = pnand %p8141_p3, %p8587_p6 }
 0x19d   : > { %7242 = dma.hbm_to_vmem [thread:$0]  (!%p8577_p5), %s9284_s13, 16, %s1491_s19, [#allocation38]  }
 0x19e   : > { %p8144_p13 = pneg %p8143_p11  ;;  %p8150_p4 = por %p8149_p1, %p8148_p0 }
 0x1a0   : > { %p8151_p7 = pnand %p8150_p4, %p8144_p13 }
 0x1a2   : > { %8154 = shalt.err (!%p8151_p7)
}
 0x1a3   : > { %s9285_s1 = sld [smem:[#allocation85_spill]]  ;;  %p9286_p8 = scmp.ne.s32.totalorder %s9264_s15, 0 }
 0x1a4   : > { %p9287_p10 = scmp.eq.s32.totalorder (!%p9286_p8), %s8562_s11, 0 }
 0x1a5   : > { %1581 = sbr.rel (%p9286_p8) target bundleno = 7100 (0x1bbc), region = 216 }
 0x1a9   : > { %7248 = dma.hbm_to_vmem [thread:$0]  (!%p8577_p5), %s9285_s1, 16, %s1531_s18, [#allocation41]  }
 0x1aa   : > { %8160 = dma.done.wait (%p9287_p10), [#allocation3], 96   ;;  %p9288_p9 = pmov %p9287_p10 }
 0x1ac   : > { %8162 = vsyncadd (%p9288_p9), [#allocation3], 4294967200  ;;  %p9289_p6 = pmov %p9288_p9 }
 0x1ae   : > { %8164 = dma.done.wait (%p9289_p6), [#allocation5], 32   ;;  %p9290_p2 = pmov %p9289_p6 }
 0x1b0   : > { %8166 = vsyncadd (%p9290_p2), [#allocation5], 4294967264  ;;  %p9291_p12 = pmov %p9290_p2 }
 0x1b1   : > { %p9292_p5 = pmov %p9290_p2 }
 0x1b2   : > { %8168 = dma.done.wait (%p9291_p12), [#allocation8], 208  }
 0x1b3   : > { %8170 = vsyncadd (%p9292_p5), [#allocation8], 4294967088  ;;  %p9293_p3 = pmov %p9290_p2 }
 0x1b4   : > { %p9294_p11 = pmov %p9290_p2 }
 0x1b5   : > { %8172 = dma.done.wait (%p9293_p3), [#allocation11], 208  }
 0x1b6   : > { %8174 = vsyncadd (%p9294_p11), [#allocation11], 4294967088  ;;  %p9295_p13 = pmov %p9290_p2 }
 0x1b7   : > { %p9296_p0 = pmov %p9290_p2 }
 0x1b8   : > { %8176 = dma.done.wait (%p9295_p13), [#allocation14], 32  }
 0x1b9   : > { %8178 = vsyncadd (%p9296_p0), [#allocation14], 4294967264  ;;  %p9297_p1 = pmov %p9296_p0 }
 0x1ba   : > { %p9298_p4 = pmov %p9296_p0 }
 0x1bb   : > { %8180 = dma.done.wait (%p9297_p1), [#allocation17], 400  }
 0x1bc   : > { %8182 = vsyncadd (%p9298_p4), [#allocation17], 4294966896  ;;  %p9299_p7 = pmov %p9296_p0 }
 0x1bd   : > { %p9300_p8 = pmov %p9296_p0 }
 0x1be   : > { %8184 = dma.done.wait (%p9299_p7), [#allocation20], 400  }
 0x1bf   : > { %8186 = vsyncadd (%p9300_p8), [#allocation20], 4294966896  ;;  %p9301_p10 = pmov %p9296_p0 }
 0x1c0   : > { %p9302_p9 = pmov %p9296_p0 }
 0x1c1   : > { %8188 = dma.done.wait (%p9301_p10), [#allocation23], 32  }
 0x1c2   : > { %8190 = vsyncadd (%p9302_p9), [#allocation23], 4294967264  ;;  %p9303_p6 = pmov %p9296_p0 }
 0x1c3   : > { %p9304_p2 = pmov %p9296_p0 }
 0x1c4   : > { %8192 = dma.done.wait (%p9303_p6), [#allocation26], 32  }
 0x1c5   : > { %8194 = vsyncadd (%p9304_p2), [#allocation26], 4294967264  ;;  %p9305_p12 = pmov %p9296_p0 }
 0x1c6   : > { %p9306_p5 = pmov %p9296_p0 }
 0x1c7   : > { %8196 = dma.done.wait (%p9305_p12), [#allocation29], 32  }
 0x1c8   : > { %8198 = vsyncadd (%p9306_p5), [#allocation29], 4294967264  ;;  %p9307_p3 = pmov %p9296_p0 }
 0x1c9   : > { %p9308_p11 = pmov %p9296_p0 }
 0x1ca   : > { %8200 = dma.done.wait (%p9307_p3), [#allocation32], 32  }
 0x1cb   : > { %8202 = vsyncadd (%p9308_p11), [#allocation32], 4294967264  ;;  %p9309_p13 = pmov %p9296_p0 }
 0x1cd   : > { %8204 = dma.done.wait (%p9309_p13), [#allocation35], 32  }
 0x1ce   : > { %8206 = vsyncadd (%p9296_p0), [#allocation35], 4294967264  ;;  %p9310_p1 = pmov %p9296_p0 }
 0x1cf   : > { %p9311_p4 = pmov %p9296_p0 }
 0x1d0   : > { %8208 = dma.done.wait (%p9310_p1), [#allocation38], 32  }
 0x1d1   : > { %8210 = vsyncadd (%p9311_p4), [#allocation38], 4294967264  ;;  %p9312_p7 = pmov %p9296_p0 }
 0x1d2   : > { %p9313_p8 = pmov %p9296_p0 }
 0x1d3   : > { %8212 = dma.done.wait (%p9312_p7), [#allocation41], 32  }
 0x1d4   : > { %8214 = vsyncadd (%p9313_p8), [#allocation41], 4294967264  ;;  %s9314_s15 = sld [smem:[#allocation57_spill]]  ;;  %p1801_p10 = scmp.lt.s32.totalorder %s8562_s11, 1  ;;  %v1812_v0 = vlaneseq  ;;  %v8299_v1 = vmov 0.0   ;;  %vm8300_vm0 = vmmov 0  }
 0x1d5   : > { %6621 = vmatprep.subr.bf16.mxu1 %v8299_v1  ;;  %6623 = vmatprep.mubr.msk.bf16.mxu1 %vm8300_vm0, %v8299_v1  ;;  %vm1869_vm1 = vcmask 130048   ;;  %vm1934_vm2 = vcmask 1041408   ;;  %v1929_v13 = vld [vmem:[#allocation2 + $0x2] sm:$0x3]  ;;  %vm1930_vm5 = vcmask 31744   ;;  %vm2156_vm8 = vcmask 1043456  }
 0x1d6   : > { %s9334_s11 = smov (!%p1801_p10, %s8562_s11), 1  ;;  %v1813_v2 = vshrl.u32 %v1812_v0, 7  ;;  %v1818_v3 = vand.u32 127, %v1812_v0  ;;  %v1936_v16 = vsel %vm1934_vm2, %v1929_v13, 0  ;;  %v2027_v22 = vld [vmem:[#allocation2 + $0x4] sm:$0x3] }
 0x1d7   : > { %s6439_s22 = sshll.u32 %s9334_s11, 4  ;;  %6622 = vmatpush3.bf16.msra.mxu1 %v1936_v16  ;;  %v2032_v23 = vsel %vm1934_vm2, %v2027_v22, 0  ;;  %v1927_v24 = vld [vmem:[#allocation2] sm:$0x3]  ;;  %v2151_v36 = vld [vmem:[#allocation7 + $0x4] sm:$0xf] }
 0x1d8   : > { %v1814_v4 = vadd.s32 8, %v1813_v2  ;;  %v6180_v5 = vadd.s32 4294967295, %v1813_v2  ;;  %v1816_v6 = vadd.s32 24, %v1813_v2  ;;  %v1844_v7 = vadd.s32 1, %v1813_v2  ;;  %6633 = vmatprep.subr.bf16.mxu1 %v8299_v1  ;;  %v6192_v42 = vld [vmem:[#allocation4] ss:$0 sm:$0xff] }
 0x1d9   : > { %v1983_v25 = vsel %vm1934_vm2, %v1927_v24, 0  ;;  %v2158_v37 = vsel %vm2156_vm8, %v2151_v36, 0  ;;  %v6193_v51 = vld [vmem:[#allocation6] ss:$0 sm:$0xff]  ;;  %vm2152_vm9 = vcmask 64512   ;;  %s9315_s19 = sld [smem:[#allocation68_spill]] }
 0x1da   : > { %s1805_s2 = scalar_lea.vmem %s9314_s15, %s6439_s22  ;;  %v6181_v8 = vadd.s32 4294967295, %v1814_v4  ;;  %vm1827_vm3 = vcmp.eq.s32.totalorder %v1818_v3, %v6180_v5  ;;  %v6186_v9 = vadd.s32 4294967280, %v1816_v6  ;;  %vm1848_vm4 = vcmp.eq.s32.totalorder %v1818_v3, %v1844_v7  ;;  %v2249_v59 = vld [vmem:[#allocation7 + $0x8] sm:$0xf]  ;;  %v2149_v61 = vld [vmem:[#allocation7] sm:$0xf] }
 0x1db   : > { %v1864_v10 = vld [vmem:[%s1805_s2] sm:$0xff]  ;;  %v1865_v11 = vld [vmem:[%s1805_s2 + $0x8] sm:$0xff]  ;;  %v1858_v12 = vsel %vm1827_vm3, 1.0, %v8299_v1  ;;  %v1860_v18 = vsel %vm1848_vm4, 1.0, %v8299_v1  ;;  %v2254_v60 = vsel %vm2156_vm8, %v2249_v59, 0  ;;  %v2205_v62 = vsel %vm2156_vm8, %v2149_v61, 0 }
 0x1dc   : > { %v1868_v14 = vpack.c.bf16 %v1865_v11, %v1864_v10  ;;  %vm1828_vm6 = vcmp.eq.s32.totalorder %v1818_v3, %v6181_v8  ;;  %v1845_v15 = vadd.s32 1, %v6186_v9  ;;  %v2371_v10 = vld [vmem:[#allocation12 + $0x4] sm:$0xf]  ;;  %v6207_v61 = vld [vmem:[#allocation15] ss:$0 sm:$0xff]  ;;  %vm3072_vm10 = vcmask 261120  }
 0x1dd   : > { %v1859_v17 = vsel %vm1828_vm6, 1.0, %v8299_v1  ;;  %v2376_v11 = vsel %vm2156_vm8, %v2371_v10, 0  ;;  %s9316_s10 = sld [smem:[#allocation71_spill]]  ;;  %vm3603_vm11 = vcmask 523264  }
 0x1de   : > { %6615 = vmatprep.subr.bf16.mxu0 %v1868_v14  ;;  %v8823_v19 = vpack.c.bf16 %v1859_v17, %v1858_v12  ;;  %vm1849_vm7 = vcmp.eq.s32.totalorder %v1818_v3, %v1845_v15  ;;  %6624 = vmatmul.mubr.msk.bf16.vlgmr.msra.gmra.mxu1 %vm1930_vm5, %v1868_v14  ;;  %s9317_s28 = sld [smem:[#allocation73_spill]] }
 0x1df   : > { %6616 = vmatpush3.bf16.msra.mxu0 %v1868_v14  ;;  %v1861_v20 = vsel %vm1849_vm7, 1.0, %v8299_v1  ;;  %6635 = vmatprep.mubr.msk.bf16.mxu1 %vm8300_vm0, %v8299_v1  ;;  %s9318_s16 = sld [smem:[#allocation75_spill]] }
 0x1e0   : > { %6617 = vmatprep.mubr.msk.bf16.mxu0 %vm1869_vm1, %v8823_v19  ;;  %v8829_v21 = vpack.c.bf16 %v1861_v20, %v1860_v18  ;;  %6627 = vmatprep.subr.bf16.mxu0 %v8299_v1  ;;  %v6199_v20 = vld [vmem:[#allocation9] ss:$0 sm:$0xff]  ;;  %s9319_s8 = sld [smem:[#allocation77_spill]] }
 0x1e1   : > { %6634 = vmatpush3.bf16.msra.mxu1 %v2032_v23  ;;  %s9320_s26 = sld [smem:[#allocation79_spill]] }
 0x1e2   : > { %6618 = vmatmul.mubr.msk.bf16.vlgmr.msra.gmra.mxu0 %vm1869_vm1, %v8829_v21  ;;  %6645 = vmatprep.subr.bf16.mxu1 %v8299_v1  ;;  %s9321_s13 = sld [smem:[#allocation81_spill]] }
 0x1e3   : > { %6629 = vmatprep.mubr.msk.bf16.mxu0 %vm8300_vm0, %v8299_v1  ;;  %6628 = vmatpush3.bf16.msra.mxu0 %v1983_v25  ;;  %s9322_s0 = sld [smem:[#allocation80_spill]] }
 0x1e4   : > { %s9323_s18 = sld [smem:[#allocation84_spill]] }
 0x1e5   : > { %s9324_s23 = sld [smem:[#allocation82_spill]] }
 0x1e6   : > { %s9325_s4 = sld [smem:[#allocation83_spill]] }
 0x1e7   : > { %s9326_s1 = sld [smem:[#allocation87_spill]] }
 0x1e8   : > { %s9327_s15 = sld [smem:[#allocation86_spill]] }
 0x1e9   : > { %s9328_s2 = sld [smem:[#allocation90_spill]] }
 0x29e   : > { %v1972_v26 = vpop.f32.mrf.mxu1 }
 0x2a0   : > { %v6625_v28 = vpop.f32.mrf.mxu1 }
 0x2a1   : > { %v6200_v28 = vld [vmem:[#allocation10] ss:$0 sm:$0xff] }
 0x2a2   : > { %v6619_v27 = vpop.f32.mrf.mxu0  ;;  %v1975_v30 = vpop.f32.mrf.mxu1 }
 0x2a4   : > { %v1910_v29 = vpop.f32.mrf.mxu0  ;;  %v6626_v32 = vpop.f32.mrf.mxu1 }
 0x2a6   : > { %v6620_v31 = vpop.f32.mrf.mxu0 }
 0x2a7   : > { %v1926_v33 = vpack.c.bf16 %v6620_v31, %v6619_v27 }
 0x2a8   : > { %v1913_v34 = vpop.f32.mrf.mxu0 }
 0x2a9   : > { %v1925_v35 = vpack.c.bf16 %v1913_v34, %v1910_v29  ;;  %6636 = vmatmul.mubr.msk.bf16.vlgmr.msra.gmra.mxu1 %vm1930_vm5, %v1926_v33  ;;  %v2467_v33 = vld [vmem:[#allocation12 + $0x8] sm:$0xf] }
 0x2aa   : > { %6647 = vmatprep.mubr.msk.bf16.mxu1 %vm8300_vm0, %v8299_v1  ;;  %6646 = vmatpush3.bf16.msra.mxu1 %v2158_v37  ;;  %v2472_v34 = vsel %vm2156_vm8, %v2467_v33, 0 }
 0x2ab   : > { %6630 = vmatmul.mubr.msk.bf16.vlgmr.msra.gmra.mxu0 %vm1930_vm5, %v1925_v35  ;;  %6657 = vmatprep.subr.bf16.mxu1 %v8299_v1  ;;  %v2369_v35 = vld [vmem:[#allocation12] sm:$0xf] }
 0x2ac   : > { %6641 = vmatprep.mubr.msk.bf16.mxu0 %vm1869_vm1, %v8823_v19  ;;  %v2423_v36 = vsel %vm2156_vm8, %v2369_v35, 0  ;;  %v6217_v35 = vld [vmem:[#allocation19] ss:$0 sm:$0xff] }
 0x369   : > { %v2068_v38 = vpop.f32.mrf.mxu1 }
 0x36b   : > { %v2019_v39 = vpop.f32.mrf.mxu0  ;;  %v6637_v40 = vpop.f32.mrf.mxu1 }
 0x36c   : > { %v2020_v41 = vadd.f32 %v2019_v39, %v1972_v26 }
 0x36d   : > { %v6631_v43 = vpop.f32.mrf.mxu0  ;;  %v2071_v44 = vpop.f32.mrf.mxu1 }
 0x36e   : > { %v2075_v45 = vadd.f32 %v2068_v38, %v2020_v41 }
 0x36f   : > { %v2022_v46 = vpop.f32.mrf.mxu0  ;;  %v6638_v47 = vpop.f32.mrf.mxu1 }
 0x370   : > { %v2083_v48 = vmul.f32 %v6192_v42, %v2075_v45  ;;  %v2023_v49 = vadd.f32 %v2022_v46, %v1975_v30  ;;  %v7393_v47 = vld [vmem:[#allocation16 + $0x8] sm:$0xff]  }
 0x371   : > { %v6632_v50 = vpop.f32.mrf.mxu0 }
 0x372   : > { %v2076_v52 = vadd.f32 %v2071_v44, %v2023_v49  ;;  %v2091_v54 = vadd.f32 %v6193_v51, %v2083_v48 }
 0x374   : > { %v2084_v53 = vmul.f32 %v6192_v42, %v2076_v52  ;;  %v2093_v56 = vmax.f32 %v2091_v54, 0.0  ;;  %v6206_v52 = vld [vmem:[#allocation13] ss:$0 sm:$0xff] }
 0x376   : > { %v2092_v55 = vadd.f32 %v6193_v51, %v2084_v53 }
 0x378   : > { %v2094_v57 = vmax.f32 %v2092_v55, 0.0 }
 0x37a   : > { %v2097_v58 = vpack.c.bf16 %v2094_v57, %v2093_v56 }
 0x37c   : > { %6639 = vmatprep.subr.bf16.mxu0 %v2097_v58  ;;  %6648 = vmatmul.mubr.msk.bf16.vlgmr.msra.gmra.mxu1 %vm2152_vm9, %v2097_v58 }
 0x37d   : > { %6640 = vmatpush3.bf16.msra.mxu0 %v2097_v58  ;;  %6659 = vmatprep.mubr.msk.bf16.mxu1 %vm8300_vm0, %v8299_v1 }
 0x37e   : > { %6651 = vmatprep.subr.bf16.mxu0 %v8299_v1  ;;  %6658 = vmatpush3.bf16.msra.mxu1 %v2254_v60 }
 0x37f   : > { %6669 = vmatprep.subr.bf16.mxu1 %v8299_v1 }
 0x380   : > { %6642 = vmatmul.mubr.msk.bf16.vlgmr.msra.gmra.mxu0 %vm1869_vm1, %v8829_v21 }
 0x381   : > { %6653 = vmatprep.mubr.msk.bf16.mxu0 %vm8300_vm0, %v8299_v1  ;;  %6652 = vmatpush3.bf16.msra.mxu0 %v2205_v62 }
 0x43c   : > { %v2194_v63 = vpop.f32.mrf.mxu1 }
 0x43e   : > { %v6649_v0 = vpop.f32.mrf.mxu1 }
 0x440   : > { %v6643_v2 = vpop.f32.mrf.mxu0  ;;  %v2197_v3 = vpop.f32.mrf.mxu1 }
 0x442   : > { %v2132_v4 = vpop.f32.mrf.mxu0  ;;  %v6650_v5 = vpop.f32.mrf.mxu1 }
 0x444   : > { %v6644_v6 = vpop.f32.mrf.mxu0 }
 0x445   : > { %v2148_v7 = vpack.c.bf16 %v6644_v6, %v6643_v2  ;;  %v7394_v6 = vld [vmem:[#allocation16 + $0x10] sm:$0xff]  }
 0x446   : > { %v2135_v8 = vpop.f32.mrf.mxu0 }
 0x447   : > { %v2147_v9 = vpack.c.bf16 %v2135_v8, %v2132_v4  ;;  %6660 = vmatmul.mubr.msk.bf16.vlgmr.msra.gmra.mxu1 %vm2152_vm9, %v2148_v7  ;;  %v7395_v7 = vld [vmem:[#allocation16] sm:$0xff]  }
 0x448   : > { %6671 = vmatprep.mubr.msk.bf16.mxu1 %vm8300_vm0, %v8299_v1  ;;  %6670 = vmatpush3.bf16.msra.mxu1 %v2376_v11 }
 0x449   : > { %6654 = vmatmul.mubr.msk.bf16.vlgmr.msra.gmra.mxu0 %vm2152_vm9, %v2147_v9  ;;  %6681 = vmatprep.subr.bf16.mxu1 %v8299_v1 }
 0x44a   : > { %6665 = vmatprep.mubr.msk.bf16.mxu0 %vm1869_vm1, %v8823_v19 }
 0x507   : > { %v2290_v12 = vpop.f32.mrf.mxu1 }
 0x509   : > { %v2241_v13 = vpop.f32.mrf.mxu0  ;;  %v6661_v14 = vpop.f32.mrf.mxu1 }
 0x50a   : > { %v2242_v15 = vadd.f32 %v2241_v13, %v2194_v63 }
 0x50b   : > { %v6655_v16 = vpop.f32.mrf.mxu0  ;;  %v2293_v17 = vpop.f32.mrf.mxu1 }
 0x50c   : > { %v2297_v18 = vadd.f32 %v2290_v12, %v2242_v15 }
 0x50d   : > { %v2244_v22 = vpop.f32.mrf.mxu0  ;;  %v6662_v23 = vpop.f32.mrf.mxu1 }
 0x50e   : > { %v2245_v24 = vadd.f32 %v2244_v22, %v2197_v3  ;;  %v2305_v26 = vmul.f32 %v6199_v20, %v2297_v18  ;;  %v7396_v18 = vld [vmem:[#allocation21 + $0x8] sm:$0xff]  }
 0x50f   : > { %v6656_v25 = vpop.f32.mrf.mxu0 }
 0x510   : > { %v2298_v27 = vadd.f32 %v2293_v17, %v2245_v24  ;;  %v2313_v30 = vadd.f32 %v6200_v28, %v2305_v26 }
 0x512   : > { %v2306_v29 = vmul.f32 %v6199_v20, %v2298_v27 }
 0x514   : > { %v2314_v31 = vadd.f32 %v6200_v28, %v2306_v29  ;;  %v6216_v28 = vld [vmem:[#allocation18] ss:$0 sm:$0xff] }
 0x516   : > { %v2317_v32 = vpack.c.bf16 %v2314_v31, %v2313_v30 }
 0x518   : > { %6663 = vmatprep.subr.bf16.mxu0 %v2317_v32  ;;  %6672 = vmatmul.mubr.msk.bf16.vlgmr.msra.gmra.mxu1 %vm2152_vm9, %v2317_v32 }
 0x519   : > { %6664 = vmatpush3.bf16.msra.mxu0 %v2317_v32  ;;  %6683 = vmatprep.mubr.msk.bf16.mxu1 %vm8300_vm0, %v8299_v1 }
 0x51a   : > { %6675 = vmatprep.subr.bf16.mxu0 %v8299_v1  ;;  %6682 = vmatpush3.bf16.msra.mxu1 %v2472_v34 }
 0x51b   : > { %6693 = vmatprep.subr.bf16.mxu1 %v8299_v1 }
 0x51c   : > { %6666 = vmatmul.mubr.msk.bf16.vlgmr.msra.gmra.mxu0 %vm1869_vm1, %v8829_v21 }
 0x51d   : > { %6677 = vmatprep.mubr.msk.bf16.mxu0 %vm8300_vm0, %v8299_v1  ;;  %6676 = vmatpush3.bf16.msra.mxu0 %v2423_v36 }
 0x5d8   : > { %v2412_v37 = vpop.f32.mrf.mxu1 }
 0x5da   : > { %v6673_v38 = vpop.f32.mrf.mxu1 }
 0x5dc   : > { %v6667_v39 = vpop.f32.mrf.mxu0  ;;  %v2415_v40 = vpop.f32.mrf.mxu1 }
 0x5de   : > { %v2352_v41 = vpop.f32.mrf.mxu0  ;;  %v6674_v42 = vpop.f32.mrf.mxu1 }
 0x5e0   : > { %v6668_v43 = vpop.f32.mrf.mxu0 }
 0x5e1   : > { %v2368_v44 = vpack.c.bf16 %v6668_v43, %v6667_v39 }
 0x5e2   : > { %v2355_v45 = vpop.f32.mrf.mxu0 }
 0x5e3   : > { %v2367_v46 = vpack.c.bf16 %v2355_v45, %v2352_v41  ;;  %6684 = vmatmul.mubr.msk.bf16.vlgmr.msra.gmra.mxu1 %vm2152_vm9, %v2368_v44  ;;  %v7398_v41 = vld [vmem:[#allocation21] sm:$0xff]  }
 0x5e4   : > { %6695 = vmatprep.mubr.msk.bf16.mxu1 %vm8300_vm0, %v8299_v1  ;;  %6694 = vmatpush3.bf16.msra.mxu1 %v7393_v47 }
 0x5e5   : > { %6678 = vmatmul.mubr.msk.bf16.vlgmr.msra.gmra.mxu0 %vm2152_vm9, %v2367_v46  ;;  %6705 = vmatprep.subr.bf16.mxu1 %v8299_v1 }
 0x5e6   : > { %6689 = vmatprep.mubr.msk.bf16.mxu0 %vm1869_vm1, %v8823_v19 }
 0x6a3   : > { %v2508_v48 = vpop.f32.mrf.mxu1 }
 0x6a5   : > { %v2459_v49 = vpop.f32.mrf.mxu0  ;;  %v6685_v50 = vpop.f32.mrf.mxu1 }
 0x6a6   : > { %v2460_v51 = vadd.f32 %v2459_v49, %v2412_v37 }
 0x6a7   : > { %v6679_v53 = vpop.f32.mrf.mxu0  ;;  %v2511_v54 = vpop.f32.mrf.mxu1 }
 0x6a8   : > { %v2515_v55 = vadd.f32 %v2508_v48, %v2460_v51  ;;  %v7400_v53 = vld [vmem:[%s9315_s19 + $0x10] sm:$0xff]  }
 0x6a9   : > { %v2462_v56 = vpop.f32.mrf.mxu0  ;;  %v6686_v57 = vpop.f32.mrf.mxu1 }
 0x6aa   : > { %v2523_v58 = vmul.f32 %v6206_v52, %v2515_v55  ;;  %v2463_v59 = vadd.f32 %v2462_v56, %v2415_v40  ;;  %v7397_v40 = vld [vmem:[#allocation21 + $0x10] sm:$0xff]  }
 0x6ab   : > { %v6680_v60 = vpop.f32.mrf.mxu0 }
 0x6ac   : > { %v2516_v62 = vadd.f32 %v2511_v54, %v2463_v59  ;;  %v2531_v0 = vadd.f32 %v6207_v61, %v2523_v58  ;;  %v6226_v58 = vld [vmem:[#allocation22] ss:$0 sm:$0xff] }
 0x6ae   : > { %v2524_v63 = vmul.f32 %v6206_v52, %v2516_v62  ;;  %v2533_v3 = vmax.f32 %v2531_v0, 0.0  ;;  %v7399_v52 = vld [vmem:[%s9315_s19 + $0x18] sm:$0xff]  }
 0x6b0   : > { %v2532_v2 = vadd.f32 %v6207_v61, %v2524_v63 }
 0x6b2   : > { %v2534_v4 = vmax.f32 %v2532_v2, 0.0 }
 0x6b4   : > { %v2537_v5 = vpack.c.bf16 %v2534_v4, %v2533_v3  ;;  %v6227_v4 = vld [vmem:[#allocation24] ss:$0 sm:$0xff] }
 0x6b6   : > { %6687 = vmatprep.subr.bf16.mxu0 %v2537_v5  ;;  %6696 = vmatmul.mubr.msk.bf16.vlgmr.msra.gmra.mxu1 %vm1869_vm1, %v2537_v5 }
 0x6b7   : > { %6688 = vmatpush3.bf16.msra.mxu0 %v2537_v5  ;;  %6707 = vmatprep.mubr.msk.bf16.mxu1 %vm8300_vm0, %v8299_v1 }
 0x6b8   : > { %6699 = vmatprep.subr.bf16.mxu0 %v8299_v1  ;;  %6706 = vmatpush3.bf16.msra.mxu1 %v7394_v6 }
 0x6b9   : > { %6717 = vmatprep.subr.bf16.mxu1 %v8299_v1 }
 0x6ba   : > { %6690 = vmatmul.mubr.msk.bf16.vlgmr.msra.gmra.mxu0 %vm1869_vm1, %v8829_v21 }
 0x6bb   : > { %6701 = vmatprep.mubr.msk.bf16.mxu0 %vm8300_vm0, %v8299_v1  ;;  %6700 = vmatpush3.bf16.msra.mxu0 %v7395_v7 }
 0x776   : > { %v2637_v8 = vpop.f32.mrf.mxu1 }
 0x778   : > { %v6697_v9 = vpop.f32.mrf.mxu1 }
 0x77a   : > { %v6691_v10 = vpop.f32.mrf.mxu0  ;;  %v2640_v11 = vpop.f32.mrf.mxu1 }
 0x77c   : > { %v2572_v12 = vpop.f32.mrf.mxu0  ;;  %v6698_v13 = vpop.f32.mrf.mxu1 }
 0x77d   : > { %v7402_v13 = vld [vmem:[%s9315_s19 + $0x8] sm:$0xff]  }
 0x77e   : > { %v6692_v14 = vpop.f32.mrf.mxu0 }
 0x77f   : > { %v2588_v15 = vpack.c.bf16 %v6692_v14, %v6691_v10  ;;  %v7403_v14 = vld [vmem:[%s9315_s19 + $0x20] sm:$0xff]  }
 0x780   : > { %v2575_v16 = vpop.f32.mrf.mxu0 }
 0x781   : > { %v2587_v17 = vpack.c.bf16 %v2575_v16, %v2572_v12  ;;  %6708 = vmatmul.mubr.msk.bf16.vlgmr.msra.gmra.mxu1 %vm1869_vm1, %v2588_v15  ;;  %v7401_v12 = vld [vmem:[%s9315_s19 + $0x28] sm:$0xff]   ;;  %v7404_v15 = vld [vmem:[%s9315_s19] sm:$0xff]  }
 0x782   : > { %6719 = vmatprep.mubr.msk.bf16.mxu1 %vm8300_vm0, %v8299_v1  ;;  %6718 = vmatpush3.bf16.msra.mxu1 %v7396_v18 }
 0x783   : > { %6702 = vmatmul.mubr.msk.bf16.vlgmr.msra.gmra.mxu0 %vm1869_vm1, %v2587_v17  ;;  %6729 = vmatprep.subr.bf16.mxu1 %v8299_v1 }
 0x784   : > { %6713 = vmatprep.mubr.msk.bf16.mxu0 %vm1869_vm1, %v8823_v19 }
 0x841   : > { %v2740_v20 = vpop.f32.mrf.mxu1 }
 0x843   : > { %v2687_v22 = vpop.f32.mrf.mxu0  ;;  %v6709_v23 = vpop.f32.mrf.mxu1 }
 0x844   : > { %v2688_v24 = vadd.f32 %v2687_v22, %v2637_v8 }
 0x845   : > { %v6703_v25 = vpop.f32.mrf.mxu0  ;;  %v2743_v26 = vpop.f32.mrf.mxu1 }
 0x846   : > { %v2747_v27 = vadd.f32 %v2740_v20, %v2688_v24 }
 0x847   : > { %v2690_v29 = vpop.f32.mrf.mxu0  ;;  %v6710_v30 = vpop.f32.mrf.mxu1 }
 0x848   : > { %v2691_v31 = vadd.f32 %v2690_v29, %v2640_v11  ;;  %v2755_v33 = vmul.f32 %v6216_v28, %v2747_v27  ;;  %v7406_v29 = vld [vmem:[%s9316_s10 + $0x10] sm:$0xff]  }
 0x849   : > { %v6704_v32 = vpop.f32.mrf.mxu0 }
 0x84a   : > { %v2748_v34 = vadd.f32 %v2743_v26, %v2691_v31  ;;  %v2763_v37 = vadd.f32 %v6217_v35, %v2755_v33 }
 0x84c   : > { %v2756_v36 = vmul.f32 %v6216_v28, %v2748_v34  ;;  %v7405_v28 = vld [vmem:[%s9316_s10 + $0x18] sm:$0xff]  }
 0x84e   : > { %v2764_v38 = vadd.f32 %v6217_v35, %v2756_v36 }
 0x850   : > { %v2767_v39 = vpack.c.bf16 %v2764_v38, %v2763_v37  ;;  %v6247_v37 = vld [vmem:[#allocation25] ss:$0 sm:$0xff] }
 0x852   : > { %6711 = vmatprep.subr.bf16.mxu0 %v2767_v39  ;;  %6720 = vmatmul.mubr.msk.bf16.vlgmr.msra.gmra.mxu1 %vm1869_vm1, %v2767_v39 }
 0x853   : > { %6712 = vmatpush3.bf16.msra.mxu0 %v2767_v39  ;;  %6731 = vmatprep.mubr.msk.bf16.mxu1 %vm8300_vm0, %v8299_v1 }
 0x854   : > { %6723 = vmatprep.subr.bf16.mxu0 %v8299_v1  ;;  %6730 = vmatpush3.bf16.msra.mxu1 %v7397_v40 }
 0x855   : > { %6741 = vmatprep.subr.bf16.mxu1 %v8299_v1 }
 0x856   : > { %6714 = vmatmul.mubr.msk.bf16.vlgmr.msra.gmra.mxu0 %vm1869_vm1, %v8829_v21 }
 0x857   : > { %6725 = vmatprep.mubr.msk.bf16.mxu0 %vm8300_vm0, %v8299_v1  ;;  %6724 = vmatpush3.bf16.msra.mxu0 %v7398_v41 }
 0x912   : > { %v2867_v42 = vpop.f32.mrf.mxu1 }
 0x914   : > { %v6721_v43 = vpop.f32.mrf.mxu1 }
 0x916   : > { %v6715_v44 = vpop.f32.mrf.mxu0  ;;  %v2870_v45 = vpop.f32.mrf.mxu1 }
 0x918   : > { %v2802_v46 = vpop.f32.mrf.mxu0  ;;  %v6722_v47 = vpop.f32.mrf.mxu1 }
 0x91a   : > { %v6716_v48 = vpop.f32.mrf.mxu0 }
 0x91b   : > { %v2818_v49 = vpack.c.bf16 %v6716_v48, %v6715_v44  ;;  %v6248_v44 = vld [vmem:[#allocation27] ss:$0 sm:$0xff] }
 0x91c   : > { %v2805_v50 = vpop.f32.mrf.mxu0 }
 0x91d   : > { %v2817_v51 = vpack.c.bf16 %v2805_v50, %v2802_v46  ;;  %6732 = vmatmul.mubr.msk.bf16.vlgmr.msra.gmra.mxu1 %vm1869_vm1, %v2818_v49  ;;  %v7407_v49 = vld [vmem:[%s9316_s10 + $0x28] sm:$0xff]  }
 0x91e   : > { %6745 = vmatprep.mubr.msk.bf16.mxu1 %vm8300_vm0, %v8299_v1  ;;  %6742 = vmatpush3.bf16.msra.mxu1 %v7399_v52  ;;  %v7408_v50 = vld [vmem:[%s9316_s10 + $0x8] sm:$0xff]   ;;  %v7410_v52 = vld [vmem:[%s9316_s10] sm:$0xff]  }
 0x91f   : > { %6726 = vmatmul.mubr.msk.bf16.vlgmr.msra.gmra.mxu0 %vm1869_vm1, %v2817_v51  ;;  %6743 = vmatprep.subr.bf16.mxu1 %v8299_v1  ;;  %v7409_v51 = vld [vmem:[%s9316_s10 + $0x20] sm:$0xff]  }
 0x920   : > { %6737 = vmatprep.mubr.msk.bf16.mxu0 %vm1869_vm1, %v8823_v19 }
 0x922   : > { %6744 = vmatpush3.bf16.msra.mxu1 %v7400_v53 }
 0x923   : > { %6757 = vmatprep.subr.bf16.mxu1 %v8299_v1 }
 0x9dd   : > { %v2970_v54 = vpop.f32.mrf.mxu1 }
 0x9df   : > { %v2917_v55 = vpop.f32.mrf.mxu0  ;;  %v6733_v56 = vpop.f32.mrf.mxu1 }
 0x9e0   : > { %v2918_v57 = vadd.f32 %v2917_v55, %v2867_v42 }
 0x9e1   : > { %v6727_v59 = vpop.f32.mrf.mxu0  ;;  %v2973_v60 = vpop.f32.mrf.mxu1 }
 0x9e2   : > { %v2977_v61 = vadd.f32 %v2970_v54, %v2918_v57 }
 0x9e3   : > { %v2920_v62 = vpop.f32.mrf.mxu0  ;;  %v6734_v63 = vpop.f32.mrf.mxu1 }
 0x9e4   : > { %v2985_v0 = vmul.f32 %v6226_v58, %v2977_v61  ;;  %v2921_v2 = vadd.f32 %v2920_v62, %v2870_v45  ;;  %v7411_v63 = vld [vmem:[%s9317_s28 + $0x38] sm:$0xff]  }
 0x9e5   : > { %v6728_v3 = vpop.f32.mrf.mxu0 }
 0x9e6   : > { %v2978_v5 = vadd.f32 %v2973_v60, %v2921_v2  ;;  %v2993_v7 = vadd.f32 %v6227_v4, %v2985_v0  ;;  %v7412_v0 = vld [vmem:[%s9317_s28 + $0x30] sm:$0xff]   ;;  %v7413_v2 = vld [vmem:[%s9317_s28 + $0x28] sm:$0xff]   ;;  %v7414_v3 = vld [vmem:[%s9317_s28 + $0x20] sm:$0xff]  }
 0x9e8   : > { %v2986_v6 = vmul.f32 %v6226_v58, %v2978_v5  ;;  %v2995_v9 = vmax.f32 %v2993_v7, 0.0 }
 0x9ea   : > { %v2994_v8 = vadd.f32 %v6227_v4, %v2986_v6 }
 0x9ec   : > { %v2996_v10 = vmax.f32 %v2994_v8, 0.0  ;;  %v6268_v8 = vld [vmem:[#allocation28] ss:$0 sm:$0xff] }
 0x9ee   : > { %v2999_v11 = vpack.c.bf16 %v2996_v10, %v2995_v9 }
 0x9f0   : > { %6735 = vmatprep.subr.bf16.mxu0 %v2999_v11  ;;  %6746 = vmatmul.mubr.msk.bf16.vlgmr.msra.gmra.mxu1 %vm3072_vm10, %v2999_v11 }
 0x9f1   : > { %6736 = vmatpush3.bf16.msra.mxu0 %v2999_v11  ;;  %6761 = vmatprep.mubr.msk.bf16.mxu1 %vm8300_vm0, %v8299_v1 }
 0x9f2   : > { %6749 = vmatprep.subr.bf16.mxu0 %v8299_v1  ;;  %6758 = vmatpush3.bf16.msra.mxu1 %v7401_v12 }
 0x9f3   : > { %6759 = vmatprep.subr.bf16.mxu1 %v8299_v1 }
 0x9f4   : > { %6738 = vmatmul.mubr.msk.bf16.vlgmr.msra.gmra.mxu0 %vm1869_vm1, %v8829_v21 }
 0x9f5   : > { %6753 = vmatprep.mubr.msk.bf16.mxu0 %vm8300_vm0, %v8299_v1  ;;  %6750 = vmatpush3.bf16.msra.mxu0 %v7402_v13 }
 0x9f6   : > { %6751 = vmatprep.subr.bf16.mxu0 %v8299_v1  ;;  %6760 = vmatpush3.bf16.msra.mxu1 %v7403_v14 }
 0x9f7   : > { %6771 = vmatprep.subr.bf16.mxu1 %v8299_v1 }
 0x9f9   : > { %6752 = vmatpush3.bf16.msra.mxu0 %v7404_v15 }
 0xab0   : > { %v3110_v16 = vpop.f32.mrf.mxu1 }
 0xab2   : > { %v6747_v17 = vpop.f32.mrf.mxu1 }
 0xab3   : > { %v6269_v17 = vld [vmem:[#allocation30] ss:$0 sm:$0xff] }
 0xab4   : > { %v6739_v18 = vpop.f32.mrf.mxu0  ;;  %v3113_v20 = vpop.f32.mrf.mxu1 }
 0xab6   : > { %v3034_v22 = vpop.f32.mrf.mxu0  ;;  %v6748_v23 = vpop.f32.mrf.mxu1 }
 0xab8   : > { %v6740_v24 = vpop.f32.mrf.mxu0 }
 0xab9   : > { %v3050_v25 = vpack.c.bf16 %v6740_v24, %v6739_v18 }
 0xaba   : > { %v3037_v26 = vpop.f32.mrf.mxu0 }
 0xabb   : > { %v3049_v27 = vpack.c.bf16 %v3037_v26, %v3034_v22  ;;  %6762 = vmatmul.mubr.msk.bf16.vlgmr.msra.gmra.mxu1 %vm3072_vm10, %v3050_v25  ;;  %v7415_v26 = vld [vmem:[%s9317_s28 + $0x58] sm:$0xff]  }
 0xabc   : > { %6775 = vmatprep.mubr.msk.bf16.mxu1 %vm8300_vm0, %v8299_v1  ;;  %6772 = vmatpush3.bf16.msra.mxu1 %v7405_v28  ;;  %v7416_v28 = vld [vmem:[%s9317_s28 + $0x18] sm:$0xff]  }
 0xabd   : > { %6754 = vmatmul.mubr.msk.bf16.vlgmr.msra.gmra.mxu0 %vm3072_vm10, %v3049_v27  ;;  %6773 = vmatprep.subr.bf16.mxu1 %v8299_v1 }
 0xabe   : > { %6767 = vmatprep.mubr.msk.bf16.mxu0 %vm1869_vm1, %v8823_v19 }
 0xac0   : > { %6774 = vmatpush3.bf16.msra.mxu1 %v7406_v29  ;;  %v7417_v29 = vld [vmem:[%s9317_s28 + $0x50] sm:$0xff]  }
 0xac1   : > { %6787 = vmatprep.subr.bf16.mxu1 %v8299_v1 }
 0xb7b   : > { %v3227_v30 = vpop.f32.mrf.mxu1 }
 0xb7d   : > { %v3166_v31 = vpop.f32.mrf.mxu0  ;;  %v6763_v32 = vpop.f32.mrf.mxu1 }
 0xb7e   : > { %v3167_v33 = vadd.f32 %v3166_v31, %v3110_v16  ;;  %v7419_v31 = vld [vmem:[%s9317_s28 + $0x48] sm:$0xff]  }
 0xb7f   : > { %v6755_v34 = vpop.f32.mrf.mxu0  ;;  %v3230_v35 = vpop.f32.mrf.mxu1  ;;  %v7420_v32 = vld [vmem:[%s9317_s28 + $0x8] sm:$0xff]  }
 0xb80   : > { %v3234_v36 = vadd.f32 %v3227_v30, %v3167_v33  ;;  %v7418_v30 = vld [vmem:[%s9317_s28 + $0x10] sm:$0xff]   ;;  %v7421_v33 = vld [vmem:[%s9317_s28 + $0x40] sm:$0xff]  }
 0xb81   : > { %v3169_v38 = vpop.f32.mrf.mxu0  ;;  %v6764_v39 = vpop.f32.mrf.mxu1  ;;  %v7422_v34 = vld [vmem:[%s9317_s28] sm:$0xff]  }
 0xb82   : > { %v3170_v40 = vadd.f32 %v3169_v38, %v3113_v20  ;;  %v3242_v42 = vmul.f32 %v6247_v37, %v3234_v36 }
 0xb83   : > { %v6756_v41 = vpop.f32.mrf.mxu0 }
 0xb84   : > { %v3235_v43 = vadd.f32 %v3230_v35, %v3170_v40  ;;  %v3250_v46 = vadd.f32 %v6248_v44, %v3242_v42 }
 0xb86   : > { %v3243_v45 = vmul.f32 %v6247_v37, %v3235_v43 }
 0xb88   : > { %v3251_v47 = vadd.f32 %v6248_v44, %v3243_v45  ;;  %v7428_v45 = vld [vmem:[%s9318_s16 + $0x18] sm:$0xff]  }
 0xb8a   : > { %v3254_v48 = vpack.c.bf16 %v3251_v47, %v3250_v46  ;;  %v7430_v46 = vld [vmem:[%s9318_s16 + $0x10] sm:$0xff]  }
 0xb8c   : > { %6765 = vmatprep.subr.bf16.mxu0 %v3254_v48  ;;  %6776 = vmatmul.mubr.msk.bf16.vlgmr.msra.gmra.mxu1 %vm3072_vm10, %v3254_v48 }
 0xb8d   : > { %6766 = vmatpush3.bf16.msra.mxu0 %v3254_v48  ;;  %6791 = vmatprep.mubr.msk.bf16.mxu1 %vm8300_vm0, %v8299_v1 }
 0xb8e   : > { %6779 = vmatprep.subr.bf16.mxu0 %v8299_v1  ;;  %6788 = vmatpush3.bf16.msra.mxu1 %v7407_v49 }
 0xb8f   : > { %6789 = vmatprep.subr.bf16.mxu1 %v8299_v1 }
 0xb90   : > { %6768 = vmatmul.mubr.msk.bf16.vlgmr.msra.gmra.mxu0 %vm1869_vm1, %v8829_v21 }
 0xb91   : > { %6783 = vmatprep.mubr.msk.bf16.mxu0 %vm8300_vm0, %v8299_v1  ;;  %6780 = vmatpush3.bf16.msra.mxu0 %v7408_v50 }
 0xb92   : > { %6781 = vmatprep.subr.bf16.mxu0 %v8299_v1  ;;  %6790 = vmatpush3.bf16.msra.mxu1 %v7409_v51  ;;  %v6303_v51 = vld [vmem:[#allocation31] ss:$0 sm:$0xff] }
 0xb93   : > { %6801 = vmatprep.subr.bf16.mxu1 %v8299_v1 }
 0xb95   : > { %6782 = vmatpush3.bf16.msra.mxu0 %v7410_v52 }
 0xc4c   : > { %v3364_v53 = vpop.f32.mrf.mxu1 }
 0xc4e   : > { %v6777_v54 = vpop.f32.mrf.mxu1 }
 0xc50   : > { %v6769_v55 = vpop.f32.mrf.mxu0  ;;  %v3367_v56 = vpop.f32.mrf.mxu1 }
 0xc52   : > { %v3289_v57 = vpop.f32.mrf.mxu0  ;;  %v6778_v58 = vpop.f32.mrf.mxu1 }
 0xc54   : > { %v6770_v59 = vpop.f32.mrf.mxu0 }
 0xc55   : > { %v3305_v60 = vpack.c.bf16 %v6770_v59, %v6769_v55  ;;  %v6304_v59 = vld [vmem:[#allocation33] ss:$0 sm:$0xff] }
 0xc56   : > { %v3292_v61 = vpop.f32.mrf.mxu0 }
 0xc57   : > { %v3304_v62 = vpack.c.bf16 %v3292_v61, %v3289_v57  ;;  %6792 = vmatmul.mubr.msk.bf16.vlgmr.msra.gmra.mxu1 %vm3072_vm10, %v3305_v60 }
 0xc58   : > { %6809 = vmatprep.mubr.msk.bf16.mxu1 %vm8300_vm0, %v8299_v1  ;;  %6802 = vmatpush3.bf16.msra.mxu1 %v7411_v63 }
 0xc59   : > { %6784 = vmatmul.mubr.msk.bf16.vlgmr.msra.gmra.mxu0 %vm3072_vm10, %v3304_v62  ;;  %6803 = vmatprep.subr.bf16.mxu1 %v8299_v1 }
 0xc5a   : > { %6797 = vmatprep.mubr.msk.bf16.mxu0 %vm1869_vm1, %v8823_v19 }
 0xc5c   : > { %6804 = vmatpush3.bf16.msra.mxu1 %v7412_v0 }
 0xc5d   : > { %6805 = vmatprep.subr.bf16.mxu1 %v8299_v1 }
 0xc60   : > { %6806 = vmatpush3.bf16.msra.mxu1 %v7413_v2 }
 0xc61   : > { %6807 = vmatprep.subr.bf16.mxu1 %v8299_v1 }
 0xc64   : > { %6808 = vmatpush3.bf16.msra.mxu1 %v7414_v3 }
 0xc65   : > { %6825 = vmatprep.subr.bf16.mxu1 %v8299_v1 }
 0xd17   : > { %v3481_v4 = vpop.f32.mrf.mxu1 }
 0xd19   : > { %v3420_v5 = vpop.f32.mrf.mxu0  ;;  %v6793_v6 = vpop.f32.mrf.mxu1 }
 0xd1a   : > { %v3421_v7 = vadd.f32 %v3420_v5, %v3364_v53 }
 0xd1b   : > { %v6785_v9 = vpop.f32.mrf.mxu0  ;;  %v3484_v10 = vpop.f32.mrf.mxu1 }
 0xd1c   : > { %v3488_v11 = vadd.f32 %v3481_v4, %v3421_v7 }
 0xd1d   : > { %v3423_v12 = vpop.f32.mrf.mxu0  ;;  %v6794_v13 = vpop.f32.mrf.mxu1 }
 0xd1e   : > { %v3496_v14 = vmul.f32 %v6268_v8, %v3488_v11  ;;  %v3424_v15 = vadd.f32 %v3423_v12, %v3367_v56  ;;  %v7423_v12 = vld [vmem:[%s9318_s16 + $0x38] sm:$0xff]   ;;  %v7424_v13 = vld [vmem:[%s9318_s16 + $0x30] sm:$0xff]  }
 0xd1f   : > { %v6786_v16 = vpop.f32.mrf.mxu0 }
 0xd20   : > { %v3489_v18 = vadd.f32 %v3484_v10, %v3424_v15  ;;  %v3504_v22 = vadd.f32 %v6269_v17, %v3496_v14  ;;  %v7425_v14 = vld [vmem:[%s9318_s16 + $0x28] sm:$0xff]   ;;  %v7426_v15 = vld [vmem:[%s9318_s16 + $0x20] sm:$0xff]   ;;  %v7427_v16 = vld [vmem:[%s9318_s16 + $0x58] sm:$0xff]  }
 0xd22   : > { %v3497_v20 = vmul.f32 %v6268_v8, %v3489_v18  ;;  %v3506_v24 = vmax.f32 %v3504_v22, 0.0  ;;  %v7431_v18 = vld [vmem:[%s9318_s16 + $0x48] sm:$0xff]   ;;  %v7433_v22 = vld [vmem:[%s9318_s16 + $0x40] sm:$0xff]  }
 0xd24   : > { %v3505_v23 = vadd.f32 %v6269_v17, %v3497_v20  ;;  %v7429_v17 = vld [vmem:[%s9318_s16 + $0x50] sm:$0xff]   ;;  %v7432_v20 = vld [vmem:[%s9318_s16 + $0x8] sm:$0xff]  }
 0xd26   : > { %v3507_v25 = vmax.f32 %v3505_v23, 0.0  ;;  %v7434_v23 = vld [vmem:[%s9318_s16] sm:$0xff]  }
 0xd28   : > { %v3510_v27 = vpack.c.bf16 %v3507_v25, %v3506_v24 }
 0xd2a   : > { %6795 = vmatprep.subr.bf16.mxu0 %v3510_v27  ;;  %6810 = vmatmul.mubr.msk.bf16.vlgmr.msra.gmra.mxu1 %vm3603_vm11, %v3510_v27 }
 0xd2b   : > { %6796 = vmatpush3.bf16.msra.mxu0 %v3510_v27  ;;  %6826 = vmatpush3.bf16.msra.mxu1 %v7415_v26 }
 0xd2c   : > { %6813 = vmatprep.subr.bf16.mxu0 %v8299_v1  ;;  %6827 = vmatprep.subr.bf16.mxu1 %v8299_v1 }
 0xd2d   : > { %6833 = vmatprep.mubr.msk.bf16.mxu1 %vm8300_vm0, %v8299_v1 }
 0xd2e   : > { %6798 = vmatmul.mubr.msk.bf16.vlgmr.msra.gmra.mxu0 %vm1869_vm1, %v8829_v21 }
 0xd2f   : > { %6814 = vmatpush3.bf16.msra.mxu0 %v7416_v28  ;;  %6821 = vmatprep.mubr.msk.bf16.mxu0 %vm8300_vm0, %v8299_v1 }
 0xd30   : > { %6815 = vmatprep.subr.bf16.mxu0 %v8299_v1  ;;  %6828 = vmatpush3.bf16.msra.mxu1 %v7417_v29 }
 0xd31   : > { %6829 = vmatprep.subr.bf16.mxu1 %v8299_v1 }
 0xd33   : > { %6816 = vmatpush3.bf16.msra.mxu0 %v7418_v30 }
 0xd34   : > { %6817 = vmatprep.subr.bf16.mxu0 %v8299_v1  ;;  %6830 = vmatpush3.bf16.msra.mxu1 %v7419_v31 }
 0xd35   : > { %6831 = vmatprep.subr.bf16.mxu1 %v8299_v1 }
 0xd37   : > { %6818 = vmatpush3.bf16.msra.mxu0 %v7420_v32 }
 0xd38   : > { %6819 = vmatprep.subr.bf16.mxu0 %v8299_v1  ;;  %6832 = vmatpush3.bf16.msra.mxu1 %v7421_v33 }
 0xd39   : > { %6855 = vmatprep.subr.bf16.mxu1 %v8299_v1 }
 0xd3b   : > { %6820 = vmatpush3.bf16.msra.mxu0 %v7422_v34 }
 0xdea   : > { %v3641_v35 = vpop.f32.mrf.mxu1 }
 0xdec   : > { %v6811_v36 = vpop.f32.mrf.mxu1 }
 0xdee   : > { %v6799_v37 = vpop.f32.mrf.mxu0  ;;  %v3644_v38 = vpop.f32.mrf.mxu1 }
 0xdf0   : > { %v3545_v39 = vpop.f32.mrf.mxu0  ;;  %v6812_v40 = vpop.f32.mrf.mxu1 }
 0xdf2   : > { %v6800_v41 = vpop.f32.mrf.mxu0 }
 0xdf3   : > { %v3561_v42 = vpack.c.bf16 %v6800_v41, %v6799_v37 }
 0xdf4   : > { %v3548_v43 = vpop.f32.mrf.mxu0 }
 0xdf5   : > { %v3560_v44 = vpack.c.bf16 %v3548_v43, %v3545_v39  ;;  %6834 = vmatmul.mubr.msk.bf16.vlgmr.msra.gmra.mxu1 %vm3603_vm11, %v3561_v42 }
 0xdf6   : > { %6863 = vmatprep.mubr.msk.bf16.mxu1 %vm8300_vm0, %v8299_v1  ;;  %6856 = vmatpush3.bf16.msra.mxu1 %v7428_v45 }
 0xdf7   : > { %6822 = vmatmul.mubr.msk.bf16.vlgmr.msra.gmra.mxu0 %vm3603_vm11, %v3560_v44  ;;  %6857 = vmatprep.subr.bf16.mxu1 %v8299_v1 }
 0xdf8   : > { %6839 = vmatprep.mubr.msk.bf16.mxu0 %vm1869_vm1, %v8823_v19 }
 0xdfa   : > { %6858 = vmatpush3.bf16.msra.mxu1 %v7430_v46 }
 0xdfb   : > { %6859 = vmatprep.subr.bf16.mxu1 %v8299_v1 }
 0xdfe   : > { %6860 = vmatpush3.bf16.msra.mxu1 %v7432_v20 }
 0xdff   : > { %6861 = vmatprep.subr.bf16.mxu1 %v8299_v1 }
 0xe02   : > { %6862 = vmatpush3.bf16.msra.mxu1 %v7434_v23 }
 0xeb5   : > { %v3786_v47 = vpop.f32.mrf.mxu1 }
 0xeb7   : > { %v3709_v48 = vpop.f32.mrf.mxu0  ;;  %v6835_v49 = vpop.f32.mrf.mxu1 }
 0xeb8   : > { %v3710_v50 = vadd.f32 %v3709_v48, %v3641_v35 }
 0xeb9   : > { %v6823_v52 = vpop.f32.mrf.mxu0  ;;  %v3789_v53 = vpop.f32.mrf.mxu1 }
 0xeba   : > { %v3793_v54 = vadd.f32 %v3786_v47, %v3710_v50  ;;  %v6339_v47 = vld [vmem:[#allocation36] ss:$0 sm:$0xff] }
 0xebb   : > { %v3712_v55 = vpop.f32.mrf.mxu0  ;;  %v6836_v56 = vpop.f32.mrf.mxu1 }
 0xebc   : > { %v3801_v57 = vmul.f32 %v6303_v51, %v3793_v54  ;;  %v3713_v58 = vadd.f32 %v3712_v55, %v3644_v38  ;;  %v6338_v38 = vld [vmem:[#allocation34] ss:$0 sm:$0xff]  ;;  %v7435_v55 = vld [vmem:[%s9319_s8 + $0x18] sm:$0xff]   ;;  %v7436_v56 = vld [vmem:[%s9319_s8 + $0x10] sm:$0xff]  }
 0xebd   : > { %v6824_v60 = vpop.f32.mrf.mxu0 }
 0xebe   : > { %v3794_v61 = vadd.f32 %v3789_v53, %v3713_v58  ;;  %v3809_v62 = vadd.f32 %v6304_v59, %v3801_v57  ;;  %v7437_v57 = vld [vmem:[%s9319_s8 + $0x28] sm:$0xff]   ;;  %v7440_v60 = vld [vmem:[%s9319_s8] sm:$0xff]  }
 0xebf   : > { %v7438_v58 = vld [vmem:[%s9319_s8 + $0x8] sm:$0xff]  }
 0xec0   : > { %v3802_v63 = vmul.f32 %v6303_v51, %v3794_v61  ;;  %v3811_v2 = vsel %vm3603_vm11, %v3809_v62, 0.0 }
 0xec2   : > { %v3810_v0 = vadd.f32 %v6304_v59, %v3802_v63  ;;  %v7439_v59 = vld [vmem:[%s9319_s8 + $0x20] sm:$0xff]  }
 0xec4   : > { %v3812_v3 = vsel %vm3603_vm11, %v3810_v0, 0.0 }
 0xec5   : > { %v3813_v4 = vadd.f32 %v3812_v3, %v3811_v2 }
 0xec7   : > { %v3814_v5 = vrot.slane %v3813_v4, 4 }
 0xec9   : > { %v3815_v6 = vadd.f32 %v3814_v5, %v3813_v4 }
 0xecb   : > { %v3816_v7 = vrot.slane %v3815_v6, 2 }
 0xecd   : > { %v3817_v8 = vadd.f32 %v3816_v7, %v3815_v6 }
 0xecf   : > { %v3818_v9 = vrot.slane %v3817_v8, 1 }
 0xed1   : > { %v3819_v10 = vadd.f32 %v3818_v9, %v3817_v8  ;;  %v7441_v8 = vld [vmem:[%s9320_s26 + $0x18] sm:$0xff]   ;;  %v7442_v9 = vld [vmem:[%s9320_s26 + $0x10] sm:$0xff]  }
 0xed3   : > { %v3822_v11 = vpack.c.bf16 %v3819_v10, %v3819_v10 }
 0xed5   : > { %6837 = vmatprep.subr.bf16.mxu0 %v3822_v11 }
 0xed6   : > { %6838 = vmatpush3.bf16.msra.mxu0 %v3822_v11 }
 0xed7   : > { %6843 = vmatprep.subr.bf16.mxu0 %v8299_v1 }
 0xed9   : > { %6840 = vmatmul.mubr.msk.bf16.vlgmr.msra.gmra.mxu0 %vm1869_vm1, %v8829_v21 }
 0xeda   : > { %6844 = vmatpush3.bf16.msra.mxu0 %v7423_v12  ;;  %6851 = vmatprep.mubr.msk.bf16.mxu0 %vm8300_vm0, %v8299_v1 }
 0xedb   : > { %6845 = vmatprep.subr.bf16.mxu0 %v8299_v1 }
 0xede   : > { %6846 = vmatpush3.bf16.msra.mxu0 %v7424_v13 }
 0xedf   : > { %6847 = vmatprep.subr.bf16.mxu0 %v8299_v1 }
 0xee2   : > { %6848 = vmatpush3.bf16.msra.mxu0 %v7425_v14 }
 0xee3   : > { %6849 = vmatprep.subr.bf16.mxu0 %v8299_v1 }
 0xee6   : > { %6850 = vmatpush3.bf16.msra.mxu0 %v7426_v15 }
 0xee7   : > { %6867 = vmatprep.subr.bf16.mxu0 %v8299_v1 }
 0xee9   : > { %6852 = vmatmul.mubr.msk.bf16.vlgmr.msra.gmra.mxu0 %vm3603_vm11, %v3822_v11 }
 0xeea   : > { %6868 = vmatpush3.bf16.msra.mxu0 %v7427_v16  ;;  %6875 = vmatprep.mubr.msk.bf16.mxu0 %vm8300_vm0, %v8299_v1 }
 0xeeb   : > { %6869 = vmatprep.subr.bf16.mxu0 %v8299_v1 }
 0xeee   : > { %6870 = vmatpush3.bf16.msra.mxu0 %v7429_v17  ;;  %v6359_v17 = vld [vmem:[#allocation37] ss:$0 sm:$0xff] }
 0xeef   : > { %6871 = vmatprep.subr.bf16.mxu0 %v8299_v1 }
 0xef2   : > { %6872 = vmatpush3.bf16.msra.mxu0 %v7431_v18 }
 0xef3   : > { %6873 = vmatprep.subr.bf16.mxu0 %v8299_v1 }
 0xef6   : > { %6874 = vmatpush3.bf16.msra.mxu0 %v7433_v22 }
 0xef7   : > { %6893 = vmatprep.subr.bf16.mxu0 %v8299_v1 }
 0xf99   : > { %v6841_v24 = vpop.f32.mrf.mxu0 }
 0xf9b   : > { %v3857_v25 = vpop.f32.mrf.mxu0 }
 0xf9d   : > { %v6842_v26 = vpop.f32.mrf.mxu0 }
 0xf9e   : > { %v3873_v27 = vpack.c.bf16 %v6842_v26, %v6841_v24  ;;  %v6360_v26 = vld [vmem:[#allocation39] ss:$0 sm:$0xff] }
 0xf9f   : > { %v3860_v28 = vpop.f32.mrf.mxu0 }
 0xfa0   : > { %v3872_v29 = vpack.c.bf16 %v3860_v28, %v3857_v25  ;;  %6876 = vmatmul.mubr.msk.bf16.vlgmr.msra.gmra.mxu0 %vm3603_vm11, %v3873_v27 }
 0xfa1   : > { %6897 = vmatprep.mubr.msk.bf16.mxu0 %vm8300_vm0, %v8299_v1  ;;  %6894 = vmatpush3.bf16.msra.mxu0 %v7438_v58 }
 0xfa2   : > { %6864 = vmatmul.mubr.msk.bf16.vlgmr.msra.gmra.mxu1 %vm3603_vm11, %v3872_v29  ;;  %6895 = vmatprep.subr.bf16.mxu0 %v8299_v1 }
 0xfa3   : > { %6881 = vmatprep.mubr.msk.bf16.mxu1 %vm1869_vm1, %v8823_v19 }
 0xfa5   : > { %6896 = vmatpush3.bf16.msra.mxu0 %v7440_v60 }
 0xfa9   : > { %v3952_v30 = vpop.f32.mrf.mxu0 }
 0xfab   : > { %v6853_v31 = vpop.f32.mrf.mxu0 }
 0xfac   : > { %v7443_v31 = vld [vmem:[%s9320_s26 + $0x28] sm:$0xff]  }
 0xfad   : > { %v3955_v32 = vpop.f32.mrf.mxu0 }
 0xfaf   : > { %v6854_v33 = vpop.f32.mrf.mxu0 }
 0xfb0   : > { %v7445_v33 = vld [vmem:[%s9320_s26 + $0x20] sm:$0xff]  }
0x1060   : > { %v4097_v34 = vpop.f32.mrf.mxu0 }
0x1062   : > { %v4020_v35 = vpop.f32.mrf.mxu1  ;;  %v6877_v36 = vpop.f32.mrf.mxu0 }
0x1063   : > { %v4021_v37 = vadd.f32 %v4020_v35, %v3952_v30 }
0x1064   : > { %v6865_v39 = vpop.f32.mrf.mxu1  ;;  %v4100_v40 = vpop.f32.mrf.mxu0 }
0x1065   : > { %v4104_v41 = vadd.f32 %v4097_v34, %v4021_v37  ;;  %v7446_v34 = vld [vmem:[%s9320_s26] sm:$0xff]  }
0x1066   : > { %v4023_v42 = vpop.f32.mrf.mxu1  ;;  %v6878_v43 = vpop.f32.mrf.mxu0 }
0x1067   : > { %v4112_v44 = vmul.f32 %v6338_v38, %v4104_v41  ;;  %v4024_v45 = vadd.f32 %v4023_v42, %v3955_v32  ;;  %v7444_v32 = vld [vmem:[%s9320_s26 + $0x8] sm:$0xff]  }
0x1068   : > { %v6866_v46 = vpop.f32.mrf.mxu1 }
0x1069   : > { %v4105_v48 = vadd.f32 %v4100_v40, %v4024_v45  ;;  %v4120_v50 = vadd.f32 %v6339_v47, %v4112_v44  ;;  %v7447_v45 = vld [vmem:[%s9321_s13 + $0x8] sm:$0xff]  }
0x106b   : > { %v4113_v49 = vmul.f32 %v6338_v38, %v4105_v48  ;;  %v4122_v52 = vmax.f32 %v4120_v50, 0.0  ;;  %v6380_v50 = vld [vmem:[#allocation40] ss:$0 sm:$0xff] }
0x106d   : > { %v4121_v51 = vadd.f32 %v6339_v47, %v4113_v49 }
0x106f   : > { %v4123_v53 = vmax.f32 %v4121_v51, 0.0 }
0x1071   : > { %v4126_v54 = vpack.c.bf16 %v4123_v53, %v4122_v52 }
0x1073   : > { %6879 = vmatprep.subr.bf16.mxu1 %v4126_v54 }
0x1074   : > { %6880 = vmatpush3.bf16.msra.mxu1 %v4126_v54 }
0x1075   : > { %6885 = vmatprep.subr.bf16.mxu1 %v8299_v1 }
0x1077   : > { %6882 = vmatmul.mubr.msk.bf16.vlgmr.msra.gmra.mxu1 %vm1869_vm1, %v8829_v21 }
0x1078   : > { %6886 = vmatpush3.bf16.msra.mxu1 %v7435_v55  ;;  %6889 = vmatprep.mubr.msk.bf16.mxu1 %vm8300_vm0, %v8299_v1 }
0x1079   : > { %6887 = vmatprep.subr.bf16.mxu1 %v8299_v1 }
0x107c   : > { %6888 = vmatpush3.bf16.msra.mxu1 %v7436_v56 }
0x107d   : > { %6901 = vmatprep.subr.bf16.mxu1 %v8299_v1 }
0x107f   : > { %6890 = vmatmul.mubr.msk.bf16.vlgmr.msra.gmra.mxu1 %vm3072_vm10, %v4126_v54 }
0x1080   : > { %6905 = vmatprep.mubr.msk.bf16.mxu1 %vm8300_vm0, %v8299_v1  ;;  %6902 = vmatpush3.bf16.msra.mxu1 %v7437_v57 }
0x1081   : > { %6903 = vmatprep.subr.bf16.mxu1 %v8299_v1 }
0x1084   : > { %6904 = vmatpush3.bf16.msra.mxu1 %v7439_v59  ;;  %v6381_v59 = vld [vmem:[%s9322_s0] ss:$0 sm:$0xff]  ;;  %s9329_s0 = sld [smem:[#allocation88_spill]] }
0x1085   : > { %6915 = vmatprep.subr.bf16.mxu1 %v8299_v1 }
0x1137   : > { %v6883_v61 = vpop.f32.mrf.mxu1 }
0x1139   : > { %v4161_v62 = vpop.f32.mrf.mxu1 }
0x113b   : > { %v6884_v63 = vpop.f32.mrf.mxu1 }
0x113c   : > { %v4177_v0 = vpack.c.bf16 %v6884_v63, %v6883_v61 }
0x113d   : > { %v4164_v2 = vpop.f32.mrf.mxu1 }
0x113e   : > { %v4176_v3 = vpack.c.bf16 %v4164_v2, %v4161_v62  ;;  %6906 = vmatmul.mubr.msk.bf16.vlgmr.msra.gmra.mxu1 %vm3072_vm10, %v4177_v0 }
0x113f   : > { %v4236_v4 = vpop.f32.mrf.mxu1  ;;  %6919 = vmatprep.mubr.msk.bf16.mxu1 %vm8300_vm0, %v8299_v1  ;;  %6916 = vmatpush3.bf16.msra.mxu1 %v7441_v8 }
0x1140   : > { %6898 = vmatmul.mubr.msk.bf16.vlgmr.msra.gmra.mxu0 %vm3072_vm10, %v4176_v3  ;;  %6917 = vmatprep.subr.bf16.mxu1 %v8299_v1 }
0x1141   : > { %v6891_v5 = vpop.f32.mrf.mxu1  ;;  %6911 = vmatprep.mubr.msk.bf16.mxu0 %vm1869_vm1, %v8823_v19 }
0x1142   : > { %v7449_v5 = vld [vmem:[%s9321_s13] sm:$0xff]  }
0x1143   : > { %v4239_v6 = vpop.f32.mrf.mxu1  ;;  %6918 = vmatpush3.bf16.msra.mxu1 %v7442_v9 }
0x1144   : > { %6931 = vmatprep.subr.bf16.mxu1 %v8299_v1 }
0x1145   : > { %v6892_v7 = vpop.f32.mrf.mxu1 }
0x11fe   : > { %v4353_v10 = vpop.f32.mrf.mxu1 }
0x1200   : > { %v4292_v11 = vpop.f32.mrf.mxu0  ;;  %v6907_v12 = vpop.f32.mrf.mxu1 }
0x1201   : > { %v4293_v13 = vadd.f32 %v4292_v11, %v4236_v4  ;;  %v7448_v4 = vld [vmem:[%s9321_s13 + $0x10] sm:$0xff]  }
0x1202   : > { %v6899_v14 = vpop.f32.mrf.mxu0  ;;  %v4356_v15 = vpop.f32.mrf.mxu1 }
0x1203   : > { %v4360_v16 = vadd.f32 %v4353_v10, %v4293_v13 }
0x1204   : > { %v4295_v18 = vpop.f32.mrf.mxu0  ;;  %v6908_v20 = vpop.f32.mrf.mxu1 }
0x1205   : > { %v4296_v22 = vadd.f32 %v4295_v18, %v4239_v6  ;;  %v4368_v24 = vmul.f32 %v6359_v17, %v4360_v16  ;;  %v7450_v16 = vld [vmem:[%s9323_s18 + $0x8] sm:$0xff]  }
0x1206   : > { %v6900_v23 = vpop.f32.mrf.mxu0 }
0x1207   : > { %v4361_v25 = vadd.f32 %v4356_v15, %v4296_v22  ;;  %v4376_v28 = vadd.f32 %v6360_v26, %v4368_v24 }
0x1209   : > { %v4369_v27 = vmul.f32 %v6359_v17, %v4361_v25 }
0x120b   : > { %v4377_v29 = vadd.f32 %v6360_v26, %v4369_v27  ;;  %v6394_v26 = vld [vmem:[%s9324_s23] ss:$0 sm:$0xff]  ;;  %s9330_s23 = sld [smem:[#allocation89_spill]] }
0x120d   : > { %v4380_v30 = vpack.c.bf16 %v4377_v29, %v4376_v28 }
0x120f   : > { %6909 = vmatprep.subr.bf16.mxu0 %v4380_v30  ;;  %6920 = vmatmul.mubr.msk.bf16.vlgmr.msra.gmra.mxu1 %vm3072_vm10, %v4380_v30 }
0x1210   : > { %6910 = vmatpush3.bf16.msra.mxu0 %v4380_v30  ;;  %6935 = vmatprep.mubr.msk.bf16.mxu1 %vm8300_vm0, %v8299_v1 }
0x1211   : > { %6923 = vmatprep.subr.bf16.mxu0 %v8299_v1  ;;  %6932 = vmatpush3.bf16.msra.mxu1 %v7443_v31 }
0x1212   : > { %6933 = vmatprep.subr.bf16.mxu1 %v8299_v1 }
0x1213   : > { %6912 = vmatmul.mubr.msk.bf16.vlgmr.msra.gmra.mxu0 %vm1869_vm1, %v8829_v21 }
0x1214   : > { %6927 = vmatprep.mubr.msk.bf16.mxu0 %vm8300_vm0, %v8299_v1  ;;  %6924 = vmatpush3.bf16.msra.mxu0 %v7444_v32 }
0x1215   : > { %6925 = vmatprep.subr.bf16.mxu0 %v8299_v1  ;;  %6934 = vmatpush3.bf16.msra.mxu1 %v7445_v33  ;;  %v6395_v33 = vld [vmem:[%s9325_s4] ss:$0 sm:$0xff]  ;;  %s9331_s4 = sld [smem:[#allocation91_spill]] }
0x1216   : > { %6945 = vmatprep.subr.bf16.mxu1 %v8299_v1 }
0x1218   : > { %6926 = vmatpush3.bf16.msra.mxu0 %v7446_v34 }
0x12cf   : > { %v4490_v35 = vpop.f32.mrf.mxu1 }
0x12d1   : > { %v6921_v36 = vpop.f32.mrf.mxu1 }
0x12d3   : > { %v6913_v37 = vpop.f32.mrf.mxu0  ;;  %v4493_v38 = vpop.f32.mrf.mxu1 }
0x12d5   : > { %v4415_v39 = vpop.f32.mrf.mxu0  ;;  %v6922_v40 = vpop.f32.mrf.mxu1 }
0x12d7   : > { %v6914_v41 = vpop.f32.mrf.mxu0 }
0x12d8   : > { %v4431_v42 = vpack.c.bf16 %v6914_v41, %v6913_v37 }
0x12d9   : > { %v4418_v43 = vpop.f32.mrf.mxu0 }
0x12da   : > { %v4430_v44 = vpack.c.bf16 %v4418_v43, %v4415_v39  ;;  %6936 = vmatmul.mubr.msk.bf16.vlgmr.msra.gmra.mxu1 %vm3072_vm10, %v4431_v42  ;;  %v7452_v39 = vld [vmem:[%s9323_s18] sm:$0xff]  }
0x12db   : > { %6947 = vmatprep.mubr.msk.bf16.mxu1 %vm8300_vm0, %v8299_v1  ;;  %6946 = vmatpush3.bf16.msra.mxu1 %v7447_v45 }
0x12dc   : > { %6928 = vmatmul.mubr.msk.bf16.vlgmr.msra.gmra.mxu0 %vm3072_vm10, %v4430_v44  ;;  %6957 = vmatprep.subr.bf16.mxu1 %v8299_v1 }
0x12dd   : > { %6941 = vmatprep.mubr.msk.bf16.mxu0 %vm1869_vm1, %v8823_v19 }
0x139a   : > { %v4607_v46 = vpop.f32.mrf.mxu1 }
0x139c   : > { %v4546_v47 = vpop.f32.mrf.mxu0  ;;  %v6937_v48 = vpop.f32.mrf.mxu1 }
0x139d   : > { %v4547_v49 = vadd.f32 %v4546_v47, %v4490_v35 }
0x139e   : > { %v6929_v51 = vpop.f32.mrf.mxu0  ;;  %v4610_v52 = vpop.f32.mrf.mxu1 }
0x139f   : > { %v4614_v53 = vadd.f32 %v4607_v46, %v4547_v49 }
0x13a0   : > { %v4549_v54 = vpop.f32.mrf.mxu0  ;;  %v6938_v55 = vpop.f32.mrf.mxu1 }
0x13a1   : > { %v4622_v56 = vmul.f32 %v6380_v50, %v4614_v53  ;;  %v4550_v57 = vadd.f32 %v4549_v54, %v4493_v38  ;;  %v7451_v38 = vld [vmem:[%s9323_s18 + $0x10] sm:$0xff]  }
0x13a2   : > { %v6930_v58 = vpop.f32.mrf.mxu0 }
0x13a3   : > { %v4615_v60 = vadd.f32 %v4610_v52, %v4550_v57  ;;  %v4630_v62 = vadd.f32 %v6381_v59, %v4622_v56  ;;  %v6408_v56 = vld [vmem:[#allocation42] ss:$0 sm:$0xff] }
0x13a5   : > { %v4623_v61 = vmul.f32 %v6380_v50, %v4615_v60  ;;  %v4632_v0 = vmax.f32 %v4630_v62, 0.0  ;;  %v6412_v50 = vld [vmem:[%s9326_s1 + $0x4] sm:$0xf] }
0x13a6   : > { %v5157_v51 = vsel %vm2156_vm8, %v6412_v50, 0 }
0x13a7   : > { %v4631_v63 = vadd.f32 %v6381_v59, %v4623_v61 }
0x13a9   : > { %v4633_v2 = vmax.f32 %v4631_v63, 0.0 }
0x13ab   : > { %v4636_v3 = vpack.c.bf16 %v4633_v2, %v4632_v0  ;;  %v6409_v2 = vld [vmem:[%s9327_s15] ss:$0 sm:$0xff]  ;;  %s9332_s15 = sld [smem:[#allocation92_spill]] }
0x13ad   : > { %6939 = vmatprep.subr.bf16.mxu0 %v4636_v3  ;;  %6948 = vmatmul.mubr.msk.bf16.vlgmr.msra.gmra.mxu1 %vm1869_vm1, %v4636_v3 }
0x13ae   : > { %6940 = vmatpush3.bf16.msra.mxu0 %v4636_v3  ;;  %6959 = vmatprep.mubr.msk.bf16.mxu1 %vm8300_vm0, %v8299_v1 }
0x13af   : > { %6951 = vmatprep.subr.bf16.mxu0 %v8299_v1  ;;  %6958 = vmatpush3.bf16.msra.mxu1 %v7448_v4 }
0x13b0   : > { %6969 = vmatprep.subr.bf16.mxu1 %v8299_v1 }
0x13b1   : > { %6942 = vmatmul.mubr.msk.bf16.vlgmr.msra.gmra.mxu0 %vm1869_vm1, %v8829_v21 }
0x13b2   : > { %6953 = vmatprep.mubr.msk.bf16.mxu0 %vm8300_vm0, %v8299_v1  ;;  %6952 = vmatpush3.bf16.msra.mxu0 %v7449_v5 }
0x146d   : > { %v4736_v6 = vpop.f32.mrf.mxu1 }
0x146f   : > { %v6949_v7 = vpop.f32.mrf.mxu1 }
0x1471   : > { %v6943_v8 = vpop.f32.mrf.mxu0  ;;  %v4739_v9 = vpop.f32.mrf.mxu1 }
0x1473   : > { %v4671_v10 = vpop.f32.mrf.mxu0  ;;  %v6950_v11 = vpop.f32.mrf.mxu1 }
0x1475   : > { %v6944_v12 = vpop.f32.mrf.mxu0 }
0x1476   : > { %v4687_v13 = vpack.c.bf16 %v6944_v12, %v6943_v8  ;;  %v5150_v12 = vld [vmem:[%s9326_s1] sm:$0xf] }
0x1477   : > { %v4674_v14 = vpop.f32.mrf.mxu0 }
0x1478   : > { %v4686_v15 = vpack.c.bf16 %v4674_v14, %v4671_v10  ;;  %6960 = vmatmul.mubr.msk.bf16.vlgmr.msra.gmra.mxu1 %vm1869_vm1, %v4687_v13  ;;  %v6415_v10 = vld [vmem:[%s9326_s1 + $0x8] sm:$0xf]  ;;  %v5204_v13 = vsel %vm2156_vm8, %v5150_v12, 0  ;;  %v6427_v12 = vld [vmem:[%s9332_s15] ss:$0 sm:$0xff] }
0x1479   : > { %6971 = vmatprep.mubr.msk.bf16.mxu1 %vm8300_vm0, %v8299_v1  ;;  %6970 = vmatpush3.bf16.msra.mxu1 %v7450_v16  ;;  %v5253_v11 = vsel %vm2156_vm8, %v6415_v10, 0 }
0x147a   : > { %6954 = vmatmul.mubr.msk.bf16.vlgmr.msra.gmra.mxu0 %vm1869_vm1, %v4686_v15  ;;  %6981 = vmatprep.subr.bf16.mxu1 %v8299_v1 }
0x147b   : > { %6965 = vmatprep.mubr.msk.bf16.mxu0 %vm1869_vm1, %v8823_v19 }
0x1538   : > { %v4839_v17 = vpop.f32.mrf.mxu1 }
0x153a   : > { %v4786_v18 = vpop.f32.mrf.mxu0  ;;  %v6961_v20 = vpop.f32.mrf.mxu1 }
0x153b   : > { %v4787_v22 = vadd.f32 %v4786_v18, %v4736_v6 }
0x153c   : > { %v6955_v23 = vpop.f32.mrf.mxu0  ;;  %v4842_v24 = vpop.f32.mrf.mxu1 }
0x153d   : > { %v4846_v25 = vadd.f32 %v4839_v17, %v4787_v22 }
0x153e   : > { %v4789_v27 = vpop.f32.mrf.mxu0  ;;  %v6962_v28 = vpop.f32.mrf.mxu1 }
0x153f   : > { %v4790_v29 = vadd.f32 %v4789_v27, %v4739_v9  ;;  %v4854_v31 = vmul.f32 %v6394_v26, %v4846_v25 }
0x1540   : > { %v6956_v30 = vpop.f32.mrf.mxu0 }
0x1541   : > { %v4847_v32 = vadd.f32 %v4842_v24, %v4790_v29  ;;  %v4862_v35 = vadd.f32 %v6395_v33, %v4854_v31 }
0x1543   : > { %v4855_v34 = vmul.f32 %v6394_v26, %v4847_v32  ;;  %v6421_v26 = vld [vmem:[%s9328_s2 + $0x4] sm:$0xf] }
0x1544   : > { %v5375_v27 = vsel %vm2156_vm8, %v6421_v26, 0 }
0x1545   : > { %v4863_v36 = vadd.f32 %v6395_v33, %v4855_v34 }
0x1547   : > { %v4866_v37 = vpack.c.bf16 %v4863_v36, %v4862_v35  ;;  %v6417_v35 = vld [vmem:[%s9329_s0] ss:$0 sm:$0xff]  ;;  %s1810_s0 = scalar_lea.vmem %s8554_s25, %s6439_s22 }
0x1549   : > { %6963 = vmatprep.subr.bf16.mxu0 %v4866_v37  ;;  %6972 = vmatmul.mubr.msk.bf16.vlgmr.msra.gmra.mxu1 %vm1869_vm1, %v4866_v37 }
0x154a   : > { %6964 = vmatpush3.bf16.msra.mxu0 %v4866_v37  ;;  %6983 = vmatprep.mubr.msk.bf16.mxu1 %vm8300_vm0, %v8299_v1 }
0x154b   : > { %6975 = vmatprep.subr.bf16.mxu0 %v8299_v1  ;;  %6982 = vmatpush3.bf16.msra.mxu1 %v7451_v38 }
0x154c   : > { %6993 = vmatprep.subr.bf16.mxu1 %v8299_v1 }
0x154d   : > { %6966 = vmatmul.mubr.msk.bf16.vlgmr.msra.gmra.mxu0 %vm1869_vm1, %v8829_v21 }
0x154e   : > { %6977 = vmatprep.mubr.msk.bf16.mxu0 %vm8300_vm0, %v8299_v1  ;;  %6976 = vmatpush3.bf16.msra.mxu0 %v7452_v39 }
0x1609   : > { %v4966_v40 = vpop.f32.mrf.mxu1 }
0x160b   : > { %v6973_v41 = vpop.f32.mrf.mxu1 }
0x160d   : > { %v6967_v42 = vpop.f32.mrf.mxu0  ;;  %v4969_v43 = vpop.f32.mrf.mxu1 }
0x160f   : > { %v4901_v44 = vpop.f32.mrf.mxu0  ;;  %v6974_v45 = vpop.f32.mrf.mxu1 }
0x1611   : > { %v6968_v46 = vpop.f32.mrf.mxu0 }
0x1612   : > { %v4917_v47 = vpack.c.bf16 %v6968_v46, %v6967_v42  ;;  %v6418_v42 = vld [vmem:[%s9330_s23] ss:$0 sm:$0xff] }
0x1613   : > { %v4904_v48 = vpop.f32.mrf.mxu0 }
0x1614   : > { %v4916_v49 = vpack.c.bf16 %v4904_v48, %v4901_v44  ;;  %6984 = vmatmul.mubr.msk.bf16.vlgmr.msra.gmra.mxu1 %vm1869_vm1, %v4917_v47  ;;  %v6424_v47 = vld [vmem:[%s9328_s2 + $0x8] sm:$0xf] }
0x1615   : > { %6995 = vmatprep.mubr.msk.bf16.mxu1 %vm8300_vm0, %v8299_v1  ;;  %6994 = vmatpush3.bf16.msra.mxu1 %v5157_v51  ;;  %v5471_v48 = vsel %vm2156_vm8, %v6424_v47, 0 }
0x1616   : > { %6978 = vmatmul.mubr.msk.bf16.vlgmr.msra.gmra.mxu0 %vm1869_vm1, %v4916_v49  ;;  %7005 = vmatprep.subr.bf16.mxu1 %v8299_v1  ;;  %v5368_v49 = vld [vmem:[%s9328_s2] sm:$0xf] }
0x1617   : > { %6989 = vmatprep.mubr.msk.bf16.mxu0 %vm1869_vm1, %v8823_v19  ;;  %v5422_v50 = vsel %vm2156_vm8, %v5368_v49, 0 }
0x16d4   : > { %v5069_v52 = vpop.f32.mrf.mxu1 }
0x16d6   : > { %v5016_v53 = vpop.f32.mrf.mxu0  ;;  %v6985_v54 = vpop.f32.mrf.mxu1 }
0x16d7   : > { %v5017_v55 = vadd.f32 %v5016_v53, %v4966_v40 }
0x16d8   : > { %v6979_v57 = vpop.f32.mrf.mxu0  ;;  %v5072_v58 = vpop.f32.mrf.mxu1 }
0x16d9   : > { %v5076_v59 = vadd.f32 %v5069_v52, %v5017_v55 }
0x16da   : > { %v5019_v60 = vpop.f32.mrf.mxu0  ;;  %v6986_v61 = vpop.f32.mrf.mxu1 }
0x16db   : > { %v5084_v62 = vmul.f32 %v6408_v56, %v5076_v59  ;;  %v5020_v63 = vadd.f32 %v5019_v60, %v4969_v43  ;;  %v6430_v61 = vld [vmem:[%s8539_s3 + $0x2] sm:$0x3] }
0x16dc   : > { %v6980_v0 = vpop.f32.mrf.mxu0 }
0x16dd   : > { %v5077_v3 = vadd.f32 %v5072_v58, %v5020_v63  ;;  %v5092_v5 = vadd.f32 %v6409_v2, %v5084_v62  ;;  %v5595_v62 = vsel %vm1934_vm2, %v6430_v61, 0 }
0x16df   : > { %v5085_v4 = vmul.f32 %v6408_v56, %v5077_v3  ;;  %v5094_v7 = vmax.f32 %v5092_v5, 0.0 }
0x16e1   : > { %v5093_v6 = vadd.f32 %v6409_v2, %v5085_v4  ;;  %v6426_v4 = vld [vmem:[%s9331_s4] ss:$0 sm:$0xff] }
0x16e3   : > { %v5095_v8 = vmax.f32 %v5093_v6, 0.0 }
0x16e5   : > { %v5098_v9 = vpack.c.bf16 %v5095_v8, %v5094_v7 }
0x16e7   : > { %6987 = vmatprep.subr.bf16.mxu0 %v5098_v9  ;;  %6996 = vmatmul.mubr.msk.bf16.vlgmr.msra.gmra.mxu1 %vm2152_vm9, %v5098_v9 }
0x16e8   : > { %6988 = vmatpush3.bf16.msra.mxu0 %v5098_v9  ;;  %7007 = vmatprep.mubr.msk.bf16.mxu1 %vm8300_vm0, %v8299_v1 }
0x16e9   : > { %6999 = vmatprep.subr.bf16.mxu0 %v8299_v1  ;;  %7006 = vmatpush3.bf16.msra.mxu1 %v5253_v11 }
0x16ea   : > { %7017 = vmatprep.subr.bf16.mxu1 %v8299_v1 }
0x16eb   : > { %6990 = vmatmul.mubr.msk.bf16.vlgmr.msra.gmra.mxu0 %vm1869_vm1, %v8829_v21 }
0x16ec   : > { %7001 = vmatprep.mubr.msk.bf16.mxu0 %vm8300_vm0, %v8299_v1  ;;  %7000 = vmatpush3.bf16.msra.mxu0 %v5204_v13 }
0x17a7   : > { %v5193_v14 = vpop.f32.mrf.mxu1 }
0x17a9   : > { %v6997_v15 = vpop.f32.mrf.mxu1 }
0x17ab   : > { %v6991_v16 = vpop.f32.mrf.mxu0  ;;  %v5196_v17 = vpop.f32.mrf.mxu1 }
0x17ad   : > { %v5133_v18 = vpop.f32.mrf.mxu0  ;;  %v6998_v20 = vpop.f32.mrf.mxu1 }
0x17af   : > { %v6992_v22 = vpop.f32.mrf.mxu0 }
0x17b0   : > { %v5149_v23 = vpack.c.bf16 %v6992_v22, %v6991_v16  ;;  %v6433_v22 = vld [vmem:[%s8539_s3 + $0x4] sm:$0x3] }
0x17b1   : > { %v5136_v24 = vpop.f32.mrf.mxu0 }
0x17b2   : > { %v5148_v25 = vpack.c.bf16 %v5136_v24, %v5133_v18  ;;  %7008 = vmatmul.mubr.msk.bf16.vlgmr.msra.gmra.mxu1 %vm2152_vm9, %v5149_v23  ;;  %v5691_v23 = vsel %vm1934_vm2, %v6433_v22, 0  ;;  %v5588_v24 = vld [vmem:[%s8539_s3] sm:$0x3] }
0x17b3   : > { %7019 = vmatprep.mubr.msk.bf16.mxu1 %vm8300_vm0, %v8299_v1  ;;  %7018 = vmatpush3.bf16.msra.mxu1 %v5375_v27 }
0x17b4   : > { %7002 = vmatmul.mubr.msk.bf16.vlgmr.msra.gmra.mxu0 %vm2152_vm9, %v5148_v25  ;;  %7029 = vmatprep.subr.bf16.mxu1 %v8299_v1  ;;  %v5642_v25 = vsel %vm1934_vm2, %v5588_v24, 0 }
0x17b5   : > { %7013 = vmatprep.mubr.msk.bf16.mxu0 %vm1869_vm1, %v8823_v19 }
0x1872   : > { %v5289_v28 = vpop.f32.mrf.mxu1 }
0x1874   : > { %v5240_v29 = vpop.f32.mrf.mxu0  ;;  %v7009_v30 = vpop.f32.mrf.mxu1 }
0x1875   : > { %v5241_v31 = vadd.f32 %v5240_v29, %v5193_v14 }
0x1876   : > { %v7003_v32 = vpop.f32.mrf.mxu0  ;;  %v5292_v33 = vpop.f32.mrf.mxu1 }
0x1877   : > { %v5296_v34 = vadd.f32 %v5289_v28, %v5241_v31 }
0x1878   : > { %v5243_v36 = vpop.f32.mrf.mxu0  ;;  %v7010_v37 = vpop.f32.mrf.mxu1 }
0x1879   : > { %v5244_v38 = vadd.f32 %v5243_v36, %v5196_v17  ;;  %v5304_v40 = vmul.f32 %v6417_v35, %v5296_v34 }
0x187a   : > { %v7004_v39 = vpop.f32.mrf.mxu0 }
0x187b   : > { %v5297_v41 = vadd.f32 %v5292_v33, %v5244_v38  ;;  %v5312_v44 = vadd.f32 %v6418_v42, %v5304_v40  ;;  %v6435_v38 = vld [vmem:[%s8544_s14] ss:$0 sm:$0xff] }
0x187d   : > { %v5305_v43 = vmul.f32 %v6417_v35, %v5297_v41 }
0x187f   : > { %v5313_v45 = vadd.f32 %v6418_v42, %v5305_v43  ;;  %v6436_v42 = vld [vmem:[%s8549_s17] ss:$0 sm:$0xff] }
0x1881   : > { %v5316_v46 = vpack.c.bf16 %v5313_v45, %v5312_v44 }
0x1883   : > { %7011 = vmatprep.subr.bf16.mxu0 %v5316_v46  ;;  %7020 = vmatmul.mubr.msk.bf16.vlgmr.msra.gmra.mxu1 %vm2152_vm9, %v5316_v46 }
0x1884   : > { %7012 = vmatpush3.bf16.msra.mxu0 %v5316_v46  ;;  %7031 = vmatprep.mubr.msk.bf16.mxu1 %vm8300_vm0, %v8299_v1 }
0x1885   : > { %7023 = vmatprep.subr.bf16.mxu0 %v8299_v1  ;;  %7030 = vmatpush3.bf16.msra.mxu1 %v5471_v48 }
0x1886   : > { %7041 = vmatprep.subr.bf16.mxu1 %v8299_v1 }
0x1887   : > { %7014 = vmatmul.mubr.msk.bf16.vlgmr.msra.gmra.mxu0 %vm1869_vm1, %v8829_v21 }
0x1888   : > { %7025 = vmatprep.mubr.msk.bf16.mxu0 %vm8300_vm0, %v8299_v1  ;;  %7024 = vmatpush3.bf16.msra.mxu0 %v5422_v50 }
0x1943   : > { %v5411_v51 = vpop.f32.mrf.mxu1 }
0x1945   : > { %v7021_v52 = vpop.f32.mrf.mxu1 }
0x1947   : > { %v7015_v53 = vpop.f32.mrf.mxu0  ;;  %v5414_v54 = vpop.f32.mrf.mxu1 }
0x1949   : > { %v5351_v55 = vpop.f32.mrf.mxu0  ;;  %v7022_v56 = vpop.f32.mrf.mxu1 }
0x194b   : > { %v7016_v57 = vpop.f32.mrf.mxu0 }
0x194c   : > { %v5367_v58 = vpack.c.bf16 %v7016_v57, %v7015_v53 }
0x194d   : > { %v5354_v59 = vpop.f32.mrf.mxu0 }
0x194e   : > { %v5366_v60 = vpack.c.bf16 %v5354_v59, %v5351_v55  ;;  %7032 = vmatmul.mubr.msk.bf16.vlgmr.msra.gmra.mxu1 %vm2152_vm9, %v5367_v58 }
0x194f   : > { %7043 = vmatprep.mubr.msk.bf16.mxu1 %vm8300_vm0, %v8299_v1  ;;  %7042 = vmatpush3.bf16.msra.mxu1 %v5595_v62 }
0x1950   : > { %7026 = vmatmul.mubr.msk.bf16.vlgmr.msra.gmra.mxu0 %vm2152_vm9, %v5366_v60  ;;  %7053 = vmatprep.subr.bf16.mxu1 %v8299_v1 }
0x1951   : > { %7037 = vmatprep.mubr.msk.bf16.mxu0 %vm1869_vm1, %v8823_v19 }
0x1a0e   : > { %v5507_v63 = vpop.f32.mrf.mxu1 }
0x1a10   : > { %v5458_v0 = vpop.f32.mrf.mxu0  ;;  %v7033_v2 = vpop.f32.mrf.mxu1 }
0x1a11   : > { %v5459_v3 = vadd.f32 %v5458_v0, %v5411_v51 }
0x1a12   : > { %v7027_v5 = vpop.f32.mrf.mxu0  ;;  %v5510_v6 = vpop.f32.mrf.mxu1 }
0x1a13   : > { %v5514_v7 = vadd.f32 %v5507_v63, %v5459_v3 }
0x1a14   : > { %v5461_v8 = vpop.f32.mrf.mxu0  ;;  %v7034_v9 = vpop.f32.mrf.mxu1 }
0x1a15   : > { %v5522_v10 = vmul.f32 %v6426_v4, %v5514_v7  ;;  %v5462_v11 = vadd.f32 %v5461_v8, %v5414_v54 }
0x1a16   : > { %v7028_v19 = vpop.f32.mrf.mxu0 }
0x1a17   : > { %v5515_v13 = vadd.f32 %v5510_v6, %v5462_v11  ;;  %v5530_v15 = vadd.f32 %v6427_v12, %v5522_v10 }
0x1a19   : > { %v5523_v14 = vmul.f32 %v6426_v4, %v5515_v13  ;;  %v5532_v17 = vmax.f32 %v5530_v15, 0.0 }
0x1a1b   : > { %v5531_v16 = vadd.f32 %v6427_v12, %v5523_v14 }
0x1a1d   : > { %v5533_v18 = vmax.f32 %v5531_v16, 0.0 }
0x1a1f   : > { %v5536_v20 = vpack.c.bf16 %v5533_v18, %v5532_v17 }
0x1a21   : > { %7035 = vmatprep.subr.bf16.mxu0 %v5536_v20  ;;  %7044 = vmatmul.mubr.msk.bf16.vlgmr.msra.gmra.mxu1 %vm1930_vm5, %v5536_v20 }
0x1a22   : > { %7036 = vmatpush3.bf16.msra.mxu0 %v5536_v20  ;;  %7055 = vmatprep.mubr.msk.bf16.mxu1 %vm8300_vm0, %v8299_v1 }
0x1a23   : > { %7047 = vmatprep.subr.bf16.mxu0 %v8299_v1  ;;  %7054 = vmatpush3.bf16.msra.mxu1 %v5691_v23 }
0x1a25   : > { %7038 = vmatmul.mubr.msk.bf16.vlgmr.msra.gmra.mxu0 %vm1869_vm1, %v8829_v21 }
0x1a26   : > { %7049 = vmatprep.mubr.msk.bf16.mxu0 %vm8300_vm0, %v8299_v1  ;;  %7048 = vmatpush3.bf16.msra.mxu0 %v5642_v25 }
0x1ae1   : > { %v5631_v26 = vpop.f32.mrf.mxu1 }
0x1ae3   : > { %v7045_v27 = vpop.f32.mrf.mxu1 }
0x1ae5   : > { %v7039_v28 = vpop.f32.mrf.mxu0  ;;  %v5634_v29 = vpop.f32.mrf.mxu1 }
0x1ae7   : > { %v5571_v30 = vpop.f32.mrf.mxu0  ;;  %v7046_v31 = vpop.f32.mrf.mxu1 }
0x1ae9   : > { %v7040_v21 = vpop.f32.mrf.mxu0 }
0x1aea   : > { %v5587_v32 = vpack.c.bf16 %v7040_v21, %v7039_v28 }
0x1aeb   : > { %v5574_v33 = vpop.f32.mrf.mxu0 }
0x1aec   : > { %v5586_v1 = vpack.c.bf16 %v5574_v33, %v5571_v30  ;;  %7056 = vmatmul.mubr.msk.bf16.vlgmr.msra.gmra.mxu1 %vm1930_vm5, %v5587_v32 }
0x1aee   : > { %7050 = vmatmul.mubr.msk.bf16.vlgmr.msra.gmra.mxu0 %vm1930_vm5, %v5586_v1 }
0x1bac   : > { %v5727_v34 = vpop.f32.mrf.mxu1 }
0x1bae   : > { %v5678_v35 = vpop.f32.mrf.mxu0  ;;  %v7057_v36 = vpop.f32.mrf.mxu1 }
0x1baf   : > { %v5679_v37 = vadd.f32 %v5678_v35, %v5631_v26 }
0x1bb0   : > { %v7051_v39 = vpop.f32.mrf.mxu0  ;;  %v5730_v40 = vpop.f32.mrf.mxu1 }
0x1bb1   : > { %v5734_v41 = vadd.f32 %v5727_v34, %v5679_v37 }
0x1bb2   : > { %v5681_v43 = vpop.f32.mrf.mxu0  ;;  %v7058_v44 = vpop.f32.mrf.mxu1 }
0x1bb3   : > { %v5742_v45 = vmul.f32 %v6435_v38, %v5734_v41  ;;  %v5682_v46 = vadd.f32 %v5681_v43, %v5634_v29 }
0x1bb4   : > { %v7052_v47 = vpop.f32.mrf.mxu0 }
0x1bb5   : > { %v5750_v48 = vadd.f32 %v6436_v42, %v5742_v45  ;;  %v5735_v49 = vadd.f32 %v5730_v40, %v5682_v46 }
0x1bb7   : > { %5752 = vst.msk [vmem:[%s1810_s0] sm:$0xff] %vm1930_vm5, %v5750_v48  ;;  %v5743_v50 = vmul.f32 %v6435_v38, %v5735_v49 }
0x1bb9   : > { %v5751_v51 = vadd.f32 %v6436_v42, %v5743_v50 }
0x1bbb   : > { %5753 = vst.msk [vmem:[%s1810_s0 + $0x8] sm:$0xff] %vm1930_vm5, %v5751_v51 }
0x1bbc PF: > { %s123_s7 = sadd.s32 1, %s8217_s7  }
0x1bbd   : > { %p120_p9 = scmp.ge.s32.totalorder %s123_s7, 4  }
0x1bbf   :  { %122 = sbr.rel (!%p120_p9) target bundleno = 102 (0x66), region = 436 }
0x1bc4   :  { %5775 = vsyncpa [#allocation3], 1 }
0x1bc5   :  { %5777 = vsyncpa [#allocation3 + $0x1], 1 }
0x1bc6   :  { %5778 = vsyncpa [#allocation5], 1 }
0x1bc7   :  { %5779 = vsyncpa [#allocation8], 1 }
0x1bc8   :  { %5780 = vsyncpa [#allocation11], 1 }
0x1bc9   :  { %5781 = vsyncpa [#allocation14], 1 }
0x1bca   :  { %5782 = vsyncpa [#allocation17], 1 }
0x1bcb   :  { %5783 = vsyncpa [#allocation20], 1 }
0x1bcc   :  { %5784 = vsyncpa [#allocation23], 1 }
0x1bcd   :  { %5785 = vsyncpa [#allocation26], 1 }
0x1bce   :  { %5786 = vsyncpa [#allocation29], 1 }
0x1bcf   :  { %5787 = vsyncpa [#allocation32], 1 }
0x1bd0   :  { %5788 = vsyncpa [#allocation35], 1 }
0x1bd1   :  { %5789 = vsyncpa [#allocation38], 1 }
0x1bd2   :  { %5790 = vsyncpa [#allocation41], 1 }

</bundles_post_ra>
